<compile_context>
chip_gen: v6e
topology: v6e:2x2x1
jax: 0.10.0
libtpu: 0.0.40
codegen_flags: <defaults>
</compile_context>

<pallas_src>
import functools

import jax
import jax.numpy as jnp
from jax import lax
from jax.experimental import pallas as pl
from jax.experimental.pallas import tpu as pltpu

HIDDEN = 128        # conv / GRU width (matches the module)
MLP = 64            # layer1 / layer2 width
CHUNK = 16          # GRU time-loop chunk (fully unrolled register steps)
TILE_CHUNKS = 16    # chunks per grid tile -> TILE_L up to 256 timesteps
LANES = 128         # lane width for the padded, lane-dense output


def drqn_kernel(x_ref, w1_ref, b1_ref, w2_ref, b2_ref,
                wih_ref, bih_ref, whh_rz_ref, whh_n_ref, bhn_ref,
                wl1_ref, bl1_ref, wl2_ref, bl2_ref, wl3_ref, bl3_ref,
                out_ref, g_scratch, h_carry):
    # Zero initial hidden state on the first L-tile only (h_carry persists across tiles).
    @pl.when(pl.program_id(0) == 0)
    def _():
        h_carry[...] = jnp.zeros_like(h_carry)

    x = x_ref[...].astype(jnp.bfloat16)                        # (TILE_L, n_obs_pad)
    tile_l = x.shape[0]

    # ---- conv1 / conv2 (kernel_size=1 == per-timestep Linear), bf16 MXU, f32 acc ----
    h1 = jnp.maximum(
        jnp.dot(x, w1_ref[...], preferred_element_type=jnp.float32) + b1_ref[...], 0.0)
    h2 = jnp.maximum(
        jnp.dot(h1.astype(jnp.bfloat16), w2_ref[...],
                preferred_element_type=jnp.float32) + b2_ref[...], 0.0)

    # ---- GRU input-gate pre-activations for this tile (hidden r/z biases pre-folded) ----
    g_scratch[...] = (
        jnp.dot(h2.astype(jnp.bfloat16), wih_ref[...],
                preferred_element_type=jnp.float32) + bih_ref[...])   # (TILE_L, 384) f32

    # Stationary weights for the serial recurrence + fused head (loaded once per tile).
    whh_rz = whh_rz_ref[...]      # (128, 256) bf16
    whh_n = whh_n_ref[...]        # (128, 128) bf16
    bhn = bhn_ref[...]            # (1, 128) f32
    wl1 = wl1_ref[...]
    bl1 = bl1_ref[...]
    wl2 = wl2_ref[...]
    bl2 = bl2_ref[...]
    wl3 = wl3_ref[...]
    bl3 = bl3_ref[...]

    n_chunks = tile_l // CHUNK

    def chunk_step(c, h_prev):                                 # h_prev: (1, 128) f32
        base = pl.multiple_of(c * CHUNK, CHUNK)
        g_blk = g_scratch[pl.ds(base, CHUNK), :]               # dense (CHUNK, 384) load
        h = h_prev
        rows = []
        for i in range(CHUNK):                                 # unrolled register-only steps
            g = g_blk[i:i + 1, :]                              # (1, 384) static row slice
            h_b = h.astype(jnp.bfloat16)
            hh_rz = jnp.dot(h_b, whh_rz, preferred_element_type=jnp.float32)  # (1, 256)
            hh_n = jnp.dot(h_b, whh_n, preferred_element_type=jnp.float32)    # (1, 128)
            rz = jax.nn.sigmoid(g[:, :2 * HIDDEN] + hh_rz)     # one EUP pass for r and z
            r = rz[:, :HIDDEN]
            z = rz[:, HIDDEN:]
            n = jnp.tanh(g[:, 2 * HIDDEN:] + r * (hh_n + bhn))
            h = (1.0 - z) * n + z * h
            rows.append(h)
        h_blk = jnp.concatenate(rows, axis=0)                  # (CHUNK, 128) f32

        # Fused MLP head for this chunk: relu -> layer1+relu -> layer2+relu -> layer3.
        a0 = jnp.maximum(h_blk, 0.0).astype(jnp.bfloat16)
        y1 = jnp.maximum(
            jnp.dot(a0, wl1, preferred_element_type=jnp.float32) + bl1, 0.0)
        y2 = jnp.maximum(
            jnp.dot(y1.astype(jnp.bfloat16), wl2,
                    preferred_element_type=jnp.float32) + bl2, 0.0)
        out_ref[pl.ds(base, CHUNK), :] = (
            jnp.dot(y2.astype(jnp.bfloat16), wl3,
                    preferred_element_type=jnp.float32) + bl3)        # lane-dense (CHUNK, 128)
        return h

    h_final = lax.fori_loop(0, n_chunks, chunk_step, h_carry[...])
    h_carry[...] = h_final


def _vmem_limit_bytes(tile_l, n_obs_pad, out_pad):
    f32, bf16 = 4, 2
    # double-buffered x / out tiles
    io = 2 * f32 * tile_l * (n_obs_pad + out_pad)
    # weights (bf16) + biases (f32); pipeline double-buffers inputs
    wbytes = bf16 * (n_obs_pad * HIDDEN + HIDDEN * HIDDEN + HIDDEN * 3 * HIDDEN
                     + HIDDEN * 2 * HIDDEN + HIDDEN * HIDDEN
                     + HIDDEN * MLP + MLP * MLP + MLP * out_pad)
    bbytes = f32 * (2 * HIDDEN + 3 * HIDDEN + HIDDEN + 2 * MLP + out_pad + HIDDEN)
    # VMEM scratch (per-tile g pre-activations + carried hidden state)
    scratch = f32 * (tile_l * 3 * HIDDEN + HIDDEN)
    # traced intermediates: h1, h2 (+ bf16 copies), g before store, head temporaries
    interm = (tile_l * (f32 + bf16) * (2 * HIDDEN + 3 * HIDDEN)
              + tile_l * f32 * (2 * MLP + out_pad))
    need = io + 2 * (wbytes + bbytes) + scratch + interm + (4 << 20)
    # Never request the full 64 MiB physical VMEM of v7x; leave compiler headroom.
    return int(min(max(need, 16 << 20), 48 << 20))


def prepare_params(params):
    """One-time weight prep: bias folding, whh split, bf16 casts, lane padding."""
    bf16 = jnp.bfloat16
    n_obs = params["w1"].shape[0]
    n_actions = params["wl3"].shape[1]
    n_obs_pad = max(8, pl.cdiv(n_obs, 8) * 8)
    out_pad = pl.cdiv(n_actions, LANES) * LANES
    # Fold hidden r/z biases (b_hr, b_hz) into the input-gate bias; keep b_hn separate
    # (it is multiplied by the reset gate inside the recurrence).
    bih_fold = params["bih"] + jnp.concatenate(
        [params["bhh"][:, :2 * HIDDEN], jnp.zeros((1, HIDDEN), jnp.float32)], axis=1)
    w1_p = jnp.pad(params["w1"], ((0, n_obs_pad - n_obs), (0, 0)))
    wl3_p = jnp.pad(params["wl3"], ((0, 0), (0, out_pad - n_actions)))
    bl3_p = jnp.pad(params["bl3"], ((0, 0), (0, out_pad - n_actions)))
    whh = params["whh"]
    return dict(
        n_obs=n_obs, n_obs_pad=n_obs_pad, n_actions=n_actions, out_pad=out_pad,
        w1=w1_p.astype(bf16), b1=params["b1"],
        w2=params["w2"].astype(bf16), b2=params["b2"],
        wih=params["wih"].astype(bf16), bih=bih_fold,
        whh_rz=whh[:, :2 * HIDDEN].astype(bf16),   # serial-chain weights in bf16
        whh_n=whh[:, 2 * HIDDEN:].astype(bf16),
        bhn=params["bhh"][:, 2 * HIDDEN:],
        wl1=params["wl1"].astype(bf16), bl1=params["bl1"],
        wl2=params["wl2"].astype(bf16), bl2=params["bl2"],
        wl3=wl3_p.astype(bf16), bl3=bl3_p,
    )


def drqn_forward(x, prep):
    L, n_obs = x.shape
    assert n_obs == prep["n_obs"]
    n_obs_pad = prep["n_obs_pad"]
    out_pad = prep["out_pad"]
    n_actions = prep["n_actions"]

    # L-tiling: each grid step handles tile_l timesteps; GRU is causal so the zero-padded
    # tail is computed then discarded.
    l_chunks = pl.cdiv(L, CHUNK)
    tile_chunks = min(l_chunks, TILE_CHUNKS)
    tile_l = tile_chunks * CHUNK
    n_tiles = pl.cdiv(l_chunks, tile_chunks)
    l_pad = n_tiles * tile_l
    x_p = jnp.pad(x, ((0, l_pad - L), (0, n_obs_pad - n_obs)))

    weight_args = (prep["w1"], prep["b1"], prep["w2"], prep["b2"],
                   prep["wih"], prep["bih"], prep["whh_rz"], prep["whh_n"], prep["bhn"],
                   prep["wl1"], prep["bl1"], prep["wl2"], prep["bl2"],
                   prep["wl3"], prep["bl3"])
    in_specs = ([pl.BlockSpec((tile_l, n_obs_pad), lambda i: (i, 0))]
                + [pl.BlockSpec(a.shape, lambda i: (0, 0)) for a in weight_args])

    out = pl.pallas_call(
        drqn_kernel,
        grid=(n_tiles,),
        out_shape=jax.ShapeDtypeStruct((l_pad, out_pad), jnp.float32),
        in_specs=in_specs,
        out_specs=pl.BlockSpec((tile_l, out_pad), lambda i: (i, 0)),
        scratch_shapes=[
            pltpu.VMEM((tile_l, 3 * HIDDEN), jnp.float32),   # per-tile GRU input preacts
            pltpu.VMEM((1, HIDDEN), jnp.float32),            # hidden state carried across tiles
        ],
        compiler_params=pltpu.CompilerParams(
            dimension_semantics=("arbitrary",),
            vmem_limit_bytes=_vmem_limit_bytes(tile_l, n_obs_pad, out_pad)),
    )(x_p, *weight_args)
    return out[:L, :n_actions]


def init_params(key, n_obs, n_actions):
    # Deterministic synthetic init. Weights stored pre-transposed so the kernel computes
    # (L, in) @ (in, out):
    #   conv*.weight (out,in,1)  -> (in,out);  gru.weight_*h_l0 (3H,H) -> (H,3H)
    #   linear.weight (out,in)   -> (in,out)
    ks = jax.random.split(key, 14)
    scale = 0.1

    def w(k, shape):
        return (scale * jax.random.normal(k, shape)).astype(jnp.float32)

    return dict(
        w1=w(ks[0], (n_obs, HIDDEN)),        b1=w(ks[1], (1, HIDDEN)),
        w2=w(ks[2], (HIDDEN, HIDDEN)),       b2=w(ks[3], (1, HIDDEN)),
        wih=w(ks[4], (HIDDEN, 3 * HIDDEN)),  bih=w(ks[5], (1, 3 * HIDDEN)),
        whh=w(ks[6], (HIDDEN, 3 * HIDDEN)),  bhh=w(ks[7], (1, 3 * HIDDEN)),
        wl1=w(ks[8], (HIDDEN, MLP)),         bl1=w(ks[9], (1, MLP)),
        wl2=w(ks[10], (MLP, MLP)),           bl2=w(ks[11], (1, MLP)),
        wl3=w(ks[12], (MLP, n_actions)),     bl3=w(ks[13], (1, n_actions)),
    )


def drqn_reference(x, params):
    # Pure-JAX f32 replica of the PyTorch forward (gate order [r, z, n], zero h0).
    h1 = jax.nn.relu(x @ params["w1"] + params["b1"])
    h2 = jax.nn.relu(h1 @ params["w2"] + params["b2"])
    g = h2 @ params["wih"] + params["bih"]

    def step(h, g_t):
        hh = h @ params["whh"] + params["bhh"]
        r = jax.nn.sigmoid(g_t[:, :HIDDEN] + hh[:, :HIDDEN])
        z = jax.nn.sigmoid(g_t[:, HIDDEN:2 * HIDDEN] + hh[:, HIDDEN:2 * HIDDEN])
        n = jnp.tanh(g_t[:, 2 * HIDDEN:] + r * hh[:, 2 * HIDDEN:])
        h_new = (1.0 - z) * n + z * h
        return h_new, h_new

    _, hs = lax.scan(step, jnp.zeros((1, HIDDEN), jnp.float32), g[:, None, :])
    H = jax.nn.relu(hs[:, 0, :])
    y1 = jax.nn.relu(H @ params["wl1"] + params["bl1"])
    y2 = jax.nn.relu(y1 @ params["wl2"] + params["bl2"])
    return y2 @ params["wl3"] + params["bl3"]


if __name__ == "__main__":
    n_observations = 4
    n_actions = 4
    seq_len = 8

    key = jax.random.PRNGKey(0)
    k_params, k_x, k_x_long = jax.random.split(key, 3)
    params = init_params(k_params, n_observations, n_actions)
    prep = prepare_params(params)          # one-time weight prep (fold/split/cast/pad)

    # Small sequence (module-typical shape): single-tile path.
    x = jax.random.normal(k_x, (seq_len, n_observations), dtype=jnp.float32)
    out = jax.block_until_ready(drqn_forward(x, prep))
    ref = drqn_reference(x, params)
    assert out.shape == (seq_len, n_actions), out.shape
    assert jnp.allclose(out, ref, atol=2e-2, rtol=2e-2), (out, ref)

    # Longer sequence: exercises the L-tiled grid with the hidden state carried across tiles.
    seq_long = 300
    x_long = jax.random.normal(k_x_long, (seq_long, n_observations), dtype=jnp.float32)
    out_long = jax.block_until_ready(drqn_forward(x_long, prep))
    ref_long = drqn_reference(x_long, params)
    assert out_long.shape == (seq_long, n_actions), out_long.shape
    assert jnp.allclose(out_long, ref_long, atol=2e-2, rtol=2e-2)

    print("KERNEL_OK")
</pallas_src>

<mosaic_0001>
module attributes {stable_mosaic.version = 11 : i64} {
  func.func @drqn_kernel(%arg0: i32, %arg1: memref<16x8xf32, #tpu.memory_space<vmem>>, %arg2: memref<8x128xbf16, #tpu.memory_space<vmem>>, %arg3: memref<1x128xf32, #tpu.memory_space<vmem>>, %arg4: memref<128x128xbf16, #tpu.memory_space<vmem>>, %arg5: memref<1x128xf32, #tpu.memory_space<vmem>>, %arg6: memref<128x384xbf16, #tpu.memory_space<vmem>>, %arg7: memref<1x384xf32, #tpu.memory_space<vmem>>, %arg8: memref<128x256xbf16, #tpu.memory_space<vmem>>, %arg9: memref<128x128xbf16, #tpu.memory_space<vmem>>, %arg10: memref<1x128xf32, #tpu.memory_space<vmem>>, %arg11: memref<128x64xbf16, #tpu.memory_space<vmem>>, %arg12: memref<1x64xf32, #tpu.memory_space<vmem>>, %arg13: memref<64x64xbf16, #tpu.memory_space<vmem>>, %arg14: memref<1x64xf32, #tpu.memory_space<vmem>>, %arg15: memref<64x128xbf16, #tpu.memory_space<vmem>>, %arg16: memref<1x128xf32, #tpu.memory_space<vmem>>, %arg17: memref<16x128xf32, #tpu.memory_space<vmem>>, %arg18: memref<16x384xf32, #tpu.memory_space<vmem>>, %arg19: memref<1x128xf32, #tpu.memory_space<vmem>>) attributes {dimension_semantics = [#tpu.dimension_semantics<arbitrary>], iteration_bounds = array<i64: 1>, scalar_prefetch = 0 : i64, scratch_operands = 2 : i64, tpu.core_type = #tpu.core_type<tc>, window_params = [{transform_indices = @transform_0, window_bounds = array<i64: 16, 8>}, {pipeline_mode = #tpu.pipeline_mode<synchronous>, transform_indices = @transform_1, window_bounds = array<i64: 8, 128>}, {pipeline_mode = #tpu.pipeline_mode<synchronous>, transform_indices = @transform_2, window_bounds = array<i64: 1, 128>}, {pipeline_mode = #tpu.pipeline_mode<synchronous>, transform_indices = @transform_3, window_bounds = array<i64: 128, 128>}, {pipeline_mode = #tpu.pipeline_mode<synchronous>, transform_indices = @transform_4, window_bounds = array<i64: 1, 128>}, {pipeline_mode = #tpu.pipeline_mode<synchronous>, transform_indices = @transform_5, window_bounds = array<i64: 128, 384>}, {pipeline_mode = #tpu.pipeline_mode<synchronous>, transform_indices = @transform_6, window_bounds = array<i64: 1, 384>}, {pipeline_mode = #tpu.pipeline_mode<synchronous>, transform_indices = @transform_7, window_bounds = array<i64: 128, 256>}, {pipeline_mode = #tpu.pipeline_mode<synchronous>, transform_indices = @transform_8, window_bounds = array<i64: 128, 128>}, {pipeline_mode = #tpu.pipeline_mode<synchronous>, transform_indices = @transform_9, window_bounds = array<i64: 1, 128>}, {pipeline_mode = #tpu.pipeline_mode<synchronous>, transform_indices = @transform_10, window_bounds = array<i64: 128, 64>}, {pipeline_mode = #tpu.pipeline_mode<synchronous>, transform_indices = @transform_11, window_bounds = array<i64: 1, 64>}, {pipeline_mode = #tpu.pipeline_mode<synchronous>, transform_indices = @transform_12, window_bounds = array<i64: 64, 64>}, {pipeline_mode = #tpu.pipeline_mode<synchronous>, transform_indices = @transform_13, window_bounds = array<i64: 1, 64>}, {pipeline_mode = #tpu.pipeline_mode<synchronous>, transform_indices = @transform_14, window_bounds = array<i64: 64, 128>}, {pipeline_mode = #tpu.pipeline_mode<synchronous>, transform_indices = @transform_15, window_bounds = array<i64: 1, 128>}, {transform_indices = @transform_16, window_bounds = array<i64: 16, 128>}]} {
    %c0_i32 = arith.constant 0 : i32
    %0 = arith.cmpi eq, %arg0, %c0_i32 : i32
    %1 = arith.extui %0 : i1 to i32
    %c0_i32_0 = arith.constant 0 : i32
    %2 = arith.cmpi ne, %1, %c0_i32_0 : i32
    scf.if %2 {
      %cst_115 = arith.constant 0.000000e+00 : f32
      %431 = vector.broadcast %cst_115 : f32 to vector<1x128xf32>
      %c0_116 = arith.constant 0 : index
      %c0_117 = arith.constant 0 : index
      %432 = vector.load %arg19[%c0_116, %c0_117] : memref<1x128xf32, #tpu.memory_space<vmem>>, vector<1x128xf32>
      tpu.vector_store %arg19[%c0_116, %c0_117], %431 {strides = array<i32>} : memref<1x128xf32, #tpu.memory_space<vmem>>, vector<1x128xf32>,
    } else {
    }
    %c0 = arith.constant 0 : index
    %c0_1 = arith.constant 0 : index
    %3 = vector.load %arg1[%c0, %c0_1] : memref<16x8xf32, #tpu.memory_space<vmem>>, vector<16x8xf32>
    %4 = arith.truncf %3 : vector<16x8xf32> to vector<16x8xbf16>
    %c0_2 = arith.constant 0 : index
    %c0_3 = arith.constant 0 : index
    %5 = vector.load %arg2[%c0_2, %c0_3] : memref<8x128xbf16, #tpu.memory_space<vmem>>, vector<8x128xbf16>
    %cst = arith.constant dense<0.000000e+00> : vector<16x128xf32>
    %6 = tpu.matmul %4, %5, %cst {dimension_numbers = #tpu.dot_dimension_numbers<[1], [0], [0], [1], [0, 0, 1, 1], [], []>} : vector<16x8xbf16>, vector<8x128xbf16>, vector<16x128xf32> -> vector<16x128xf32>
    %c0_4 = arith.constant 0 : index
    %c0_5 = arith.constant 0 : index
    %7 = vector.load %arg3[%c0_4, %c0_5] : memref<1x128xf32, #tpu.memory_space<vmem>>, vector<1x128xf32>
    %8 = vector.broadcast %7 : vector<1x128xf32> to vector<16x128xf32>
    %9 = arith.addf %6, %8 : vector<16x128xf32>
    %cst_6 = arith.constant 0.000000e+00 : f32
    %10 = vector.broadcast %cst_6 : f32 to vector<16x128xf32>
    %11 = arith.maximumf %9, %10 : vector<16x128xf32>
    %12 = arith.truncf %11 : vector<16x128xf32> to vector<16x128xbf16>
    %c0_7 = arith.constant 0 : index
    %c0_8 = arith.constant 0 : index
    %13 = vector.load %arg4[%c0_7, %c0_8] : memref<128x128xbf16, #tpu.memory_space<vmem>>, vector<128x128xbf16>
    %cst_9 = arith.constant dense<0.000000e+00> : vector<16x128xf32>
    %14 = tpu.matmul %12, %13, %cst_9 {dimension_numbers = #tpu.dot_dimension_numbers<[1], [0], [0], [1], [0, 0, 1, 1], [], []>} : vector<16x128xbf16>, vector<128x128xbf16>, vector<16x128xf32> -> vector<16x128xf32>
    %c0_10 = arith.constant 0 : index
    %c0_11 = arith.constant 0 : index
    %15 = vector.load %arg5[%c0_10, %c0_11] : memref<1x128xf32, #tpu.memory_space<vmem>>, vector<1x128xf32>
    %16 = vector.broadcast %15 : vector<1x128xf32> to vector<16x128xf32>
    %17 = arith.addf %14, %16 : vector<16x128xf32>
    %cst_12 = arith.constant 0.000000e+00 : f32
    %18 = vector.broadcast %cst_12 : f32 to vector<16x128xf32>
    %19 = arith.maximumf %17, %18 : vector<16x128xf32>
    %20 = arith.truncf %19 : vector<16x128xf32> to vector<16x128xbf16>
    %c0_13 = arith.constant 0 : index
    %c0_14 = arith.constant 0 : index
    %21 = vector.load %arg6[%c0_13, %c0_14] : memref<128x384xbf16, #tpu.memory_space<vmem>>, vector<128x384xbf16>
    %cst_15 = arith.constant dense<0.000000e+00> : vector<16x384xf32>
    %22 = tpu.matmul %20, %21, %cst_15 {dimension_numbers = #tpu.dot_dimension_numbers<[1], [0], [0], [1], [0, 0, 1, 1], [], []>} : vector<16x128xbf16>, vector<128x384xbf16>, vector<16x384xf32> -> vector<16x384xf32>
    %c0_16 = arith.constant 0 : index
    %c0_17 = arith.constant 0 : index
    %23 = vector.load %arg7[%c0_16, %c0_17] : memref<1x384xf32, #tpu.memory_space<vmem>>, vector<1x384xf32>
    %24 = vector.broadcast %23 : vector<1x384xf32> to vector<16x384xf32>
    %25 = arith.addf %22, %24 : vector<16x384xf32>
    %c0_18 = arith.constant 0 : index
    %c0_19 = arith.constant 0 : index
    %26 = vector.load %arg18[%c0_18, %c0_19] : memref<16x384xf32, #tpu.memory_space<vmem>>, vector<16x384xf32>
    tpu.vector_store %arg18[%c0_18, %c0_19], %25 {strides = array<i32>} : memref<16x384xf32, #tpu.memory_space<vmem>>, vector<16x384xf32>,
    %c0_20 = arith.constant 0 : index
    %c0_21 = arith.constant 0 : index
    %27 = vector.load %arg8[%c0_20, %c0_21] : memref<128x256xbf16, #tpu.memory_space<vmem>>, vector<128x256xbf16>
    %c0_22 = arith.constant 0 : index
    %c0_23 = arith.constant 0 : index
    %28 = vector.load %arg9[%c0_22, %c0_23] : memref<128x128xbf16, #tpu.memory_space<vmem>>, vector<128x128xbf16>
    %c0_24 = arith.constant 0 : index
    %c0_25 = arith.constant 0 : index
    %29 = vector.load %arg10[%c0_24, %c0_25] : memref<1x128xf32, #tpu.memory_space<vmem>>, vector<1x128xf32>
    %c0_26 = arith.constant 0 : index
    %c0_27 = arith.constant 0 : index
    %30 = vector.load %arg11[%c0_26, %c0_27] : memref<128x64xbf16, #tpu.memory_space<vmem>>, vector<128x64xbf16>
    %c0_28 = arith.constant 0 : index
    %c0_29 = arith.constant 0 : index
    %31 = vector.load %arg12[%c0_28, %c0_29] : memref<1x64xf32, #tpu.memory_space<vmem>>, vector<1x64xf32>
    %c0_30 = arith.constant 0 : index
    %c0_31 = arith.constant 0 : index
    %32 = vector.load %arg13[%c0_30, %c0_31] : memref<64x64xbf16, #tpu.memory_space<vmem>>, vector<64x64xbf16>
    %c0_32 = arith.constant 0 : index
    %c0_33 = arith.constant 0 : index
    %33 = vector.load %arg14[%c0_32, %c0_33] : memref<1x64xf32, #tpu.memory_space<vmem>>, vector<1x64xf32>
    %c0_34 = arith.constant 0 : index
    %c0_35 = arith.constant 0 : index
    %34 = vector.load %arg15[%c0_34, %c0_35] : memref<64x128xbf16, #tpu.memory_space<vmem>>, vector<64x128xbf16>
    %c0_36 = arith.constant 0 : index
    %c0_37 = arith.constant 0 : index
    %35 = vector.load %arg16[%c0_36, %c0_37] : memref<1x128xf32, #tpu.memory_space<vmem>>, vector<1x128xf32>
    %c0_38 = arith.constant 0 : index
    %c0_39 = arith.constant 0 : index
    %36 = vector.load %arg19[%c0_38, %c0_39] : memref<1x128xf32, #tpu.memory_space<vmem>>, vector<1x128xf32>
    %c0_i32_40 = arith.constant 0 : i32
    %c16_i32 = arith.constant 16 : i32
    %37 = arith.muli %c0_i32_40, %c16_i32 : i32
    %38 = tpu.assume_multiple %37, 16 : i32
    %39 = arith.index_cast %38 : i32 to index
    %c0_41 = arith.constant 0 : index
    %40 = vector.load %arg18[%39, %c0_41] : memref<16x384xf32, #tpu.memory_space<vmem>>, vector<16x384xf32>
    %41 = vector.extract_strided_slice %40 {offsets = [0, 0], sizes = [1, 384], strides = [1, 1]} : vector<16x384xf32> to vector<1x384xf32>
    %42 = arith.truncf %36 : vector<1x128xf32> to vector<1x128xbf16>
    %cst_42 = arith.constant dense<0.000000e+00> : vector<1x256xf32>
    %43 = tpu.matmul %42, %27, %cst_42 {dimension_numbers = #tpu.dot_dimension_numbers<[1], [0], [0], [1], [0, 0, 1, 1], [], []>} : vector<1x128xbf16>, vector<128x256xbf16>, vector<1x256xf32> -> vector<1x256xf32>
    %cst_43 = arith.constant dense<0.000000e+00> : vector<1x128xf32>
    %44 = tpu.matmul %42, %28, %cst_43 {dimension_numbers = #tpu.dot_dimension_numbers<[1], [0], [0], [1], [0, 0, 1, 1], [], []>} : vector<1x128xbf16>, vector<128x128xbf16>, vector<1x128xf32> -> vector<1x128xf32>
    %45 = vector.extract_strided_slice %41 {offsets = [0, 0], sizes = [1, 256], strides = [1, 1]} : vector<1x384xf32> to vector<1x256xf32>
    %46 = arith.addf %45, %43 : vector<1x256xf32>
    %47 = arith.negf %46 : vector<1x256xf32>
    %48 = math.exp %47 : vector<1x256xf32>
    %cst_44 = arith.constant 1.000000e+00 : f32
    %49 = vector.broadcast %cst_44 : f32 to vector<1x256xf32>
    %50 = arith.addf %49, %48 : vector<1x256xf32>
    %51 = arith.divf %49, %50 : vector<1x256xf32>
    %52 = vector.extract_strided_slice %51 {offsets = [0, 0], sizes = [1, 128], strides = [1, 1]} : vector<1x256xf32> to vector<1x128xf32>
    %53 = vector.extract_strided_slice %51 {offsets = [0, 128], sizes = [1, 128], strides = [1, 1]} : vector<1x256xf32> to vector<1x128xf32>
    %54 = vector.extract_strided_slice %41 {offsets = [0, 256], sizes = [1, 128], strides = [1, 1]} : vector<1x384xf32> to vector<1x128xf32>
    %55 = arith.addf %44, %29 : vector<1x128xf32>
    %56 = arith.mulf %52, %55 : vector<1x128xf32>
    %57 = arith.addf %54, %56 : vector<1x128xf32>
    %58 = math.tanh %57 : vector<1x128xf32>
    %cst_45 = arith.constant 1.000000e+00 : f32
    %59 = vector.broadcast %cst_45 : f32 to vector<1x128xf32>
    %60 = arith.subf %59, %53 : vector<1x128xf32>
    %61 = arith.mulf %60, %58 : vector<1x128xf32>
    %62 = arith.mulf %53, %36 : vector<1x128xf32>
    %63 = arith.addf %61, %62 : vector<1x128xf32>
    %64 = vector.extract_strided_slice %40 {offsets = [1, 0], sizes = [1, 384], strides = [1, 1]} : vector<16x384xf32> to vector<1x384xf32>
    %65 = arith.truncf %63 : vector<1x128xf32> to vector<1x128xbf16>
    %cst_46 = arith.constant dense<0.000000e+00> : vector<1x256xf32>
    %66 = tpu.matmul %65, %27, %cst_46 {dimension_numbers = #tpu.dot_dimension_numbers<[1], [0], [0], [1], [0, 0, 1, 1], [], []>} : vector<1x128xbf16>, vector<128x256xbf16>, vector<1x256xf32> -> vector<1x256xf32>
    %cst_47 = arith.constant dense<0.000000e+00> : vector<1x128xf32>
    %67 = tpu.matmul %65, %28, %cst_47 {dimension_numbers = #tpu.dot_dimension_numbers<[1], [0], [0], [1], [0, 0, 1, 1], [], []>} : vector<1x128xbf16>, vector<128x128xbf16>, vector<1x128xf32> -> vector<1x128xf32>
    %68 = vector.extract_strided_slice %64 {offsets = [0, 0], sizes = [1, 256], strides = [1, 1]} : vector<1x384xf32> to vector<1x256xf32>
    %69 = arith.addf %68, %66 : vector<1x256xf32>
    %70 = arith.negf %69 : vector<1x256xf32>
    %71 = math.exp %70 : vector<1x256xf32>
    %cst_48 = arith.constant 1.000000e+00 : f32
    %72 = vector.broadcast %cst_48 : f32 to vector<1x256xf32>
    %73 = arith.addf %72, %71 : vector<1x256xf32>
    %74 = arith.divf %72, %73 : vector<1x256xf32>
    %75 = vector.extract_strided_slice %74 {offsets = [0, 0], sizes = [1, 128], strides = [1, 1]} : vector<1x256xf32> to vector<1x128xf32>
    %76 = vector.extract_strided_slice %74 {offsets = [0, 128], sizes = [1, 128], strides = [1, 1]} : vector<1x256xf32> to vector<1x128xf32>
    %77 = vector.extract_strided_slice %64 {offsets = [0, 256], sizes = [1, 128], strides = [1, 1]} : vector<1x384xf32> to vector<1x128xf32>
    %78 = arith.addf %67, %29 : vector<1x128xf32>
    %79 = arith.mulf %75, %78 : vector<1x128xf32>
    %80 = arith.addf %77, %79 : vector<1x128xf32>
    %81 = math.tanh %80 : vector<1x128xf32>
    %cst_49 = arith.constant 1.000000e+00 : f32
    %82 = vector.broadcast %cst_49 : f32 to vector<1x128xf32>
    %83 = arith.subf %82, %76 : vector<1x128xf32>
    %84 = arith.mulf %83, %81 : vector<1x128xf32>
    %85 = arith.mulf %76, %63 : vector<1x128xf32>
    %86 = arith.addf %84, %85 : vector<1x128xf32>
    %87 = vector.extract_strided_slice %40 {offsets = [2, 0], sizes = [1, 384], strides = [1, 1]} : vector<16x384xf32> to vector<1x384xf32>
    %88 = arith.truncf %86 : vector<1x128xf32> to vector<1x128xbf16>
    %cst_50 = arith.constant dense<0.000000e+00> : vector<1x256xf32>
    %89 = tpu.matmul %88, %27, %cst_50 {dimension_numbers = #tpu.dot_dimension_numbers<[1], [0], [0], [1], [0, 0, 1, 1], [], []>} : vector<1x128xbf16>, vector<128x256xbf16>, vector<1x256xf32> -> vector<1x256xf32>
    %cst_51 = arith.constant dense<0.000000e+00> : vector<1x128xf32>
    %90 = tpu.matmul %88, %28, %cst_51 {dimension_numbers = #tpu.dot_dimension_numbers<[1], [0], [0], [1], [0, 0, 1, 1], [], []>} : vector<1x128xbf16>, vector<128x128xbf16>, vector<1x128xf32> -> vector<1x128xf32>
    %91 = vector.extract_strided_slice %87 {offsets = [0, 0], sizes = [1, 256], strides = [1, 1]} : vector<1x384xf32> to vector<1x256xf32>
    %92 = arith.addf %91, %89 : vector<1x256xf32>
    %93 = arith.negf %92 : vector<1x256xf32>
    %94 = math.exp %93 : vector<1x256xf32>
    %cst_52 = arith.constant 1.000000e+00 : f32
    %95 = vector.broadcast %cst_52 : f32 to vector<1x256xf32>
    %96 = arith.addf %95, %94 : vector<1x256xf32>
    %97 = arith.divf %95, %96 : vector<1x256xf32>
    %98 = vector.extract_strided_slice %97 {offsets = [0, 0], sizes = [1, 128], strides = [1, 1]} : vector<1x256xf32> to vector<1x128xf32>
    %99 = vector.extract_strided_slice %97 {offsets = [0, 128], sizes = [1, 128], strides = [1, 1]} : vector<1x256xf32> to vector<1x128xf32>
    %100 = vector.extract_strided_slice %87 {offsets = [0, 256], sizes = [1, 128], strides = [1, 1]} : vector<1x384xf32> to vector<1x128xf32>
    %101 = arith.addf %90, %29 : vector<1x128xf32>
    %102 = arith.mulf %98, %101 : vector<1x128xf32>
    %103 = arith.addf %100, %102 : vector<1x128xf32>
    %104 = math.tanh %103 : vector<1x128xf32>
    %cst_53 = arith.constant 1.000000e+00 : f32
    %105 = vector.broadcast %cst_53 : f32 to vector<1x128xf32>
    %106 = arith.subf %105, %99 : vector<1x128xf32>
    %107 = arith.mulf %106, %104 : vector<1x128xf32>
    %108 = arith.mulf %99, %86 : vector<1x128xf32>
    %109 = arith.addf %107, %108 : vector<1x128xf32>
    %110 = vector.extract_strided_slice %40 {offsets = [3, 0], sizes = [1, 384], strides = [1, 1]} : vector<16x384xf32> to vector<1x384xf32>
    %111 = arith.truncf %109 : vector<1x128xf32> to vector<1x128xbf16>
    %cst_54 = arith.constant dense<0.000000e+00> : vector<1x256xf32>
    %112 = tpu.matmul %111, %27, %cst_54 {dimension_numbers = #tpu.dot_dimension_numbers<[1], [0], [0], [1], [0, 0, 1, 1], [], []>} : vector<1x128xbf16>, vector<128x256xbf16>, vector<1x256xf32> -> vector<1x256xf32>
    %cst_55 = arith.constant dense<0.000000e+00> : vector<1x128xf32>
    %113 = tpu.matmul %111, %28, %cst_55 {dimension_numbers = #tpu.dot_dimension_numbers<[1], [0], [0], [1], [0, 0, 1, 1], [], []>} : vector<1x128xbf16>, vector<128x128xbf16>, vector<1x128xf32> -> vector<1x128xf32>
    %114 = vector.extract_strided_slice %110 {offsets = [0, 0], sizes = [1, 256], strides = [1, 1]} : vector<1x384xf32> to vector<1x256xf32>
    %115 = arith.addf %114, %112 : vector<1x256xf32>
    %116 = arith.negf %115 : vector<1x256xf32>
    %117 = math.exp %116 : vector<1x256xf32>
    %cst_56 = arith.constant 1.000000e+00 : f32
    %118 = vector.broadcast %cst_56 : f32 to vector<1x256xf32>
    %119 = arith.addf %118, %117 : vector<1x256xf32>
    %120 = arith.divf %118, %119 : vector<1x256xf32>
    %121 = vector.extract_strided_slice %120 {offsets = [0, 0], sizes = [1, 128], strides = [1, 1]} : vector<1x256xf32> to vector<1x128xf32>
    %122 = vector.extract_strided_slice %120 {offsets = [0, 128], sizes = [1, 128], strides = [1, 1]} : vector<1x256xf32> to vector<1x128xf32>
    %123 = vector.extract_strided_slice %110 {offsets = [0, 256], sizes = [1, 128], strides = [1, 1]} : vector<1x384xf32> to vector<1x128xf32>
    %124 = arith.addf %113, %29 : vector<1x128xf32>
    %125 = arith.mulf %121, %124 : vector<1x128xf32>
    %126 = arith.addf %123, %125 : vector<1x128xf32>
    %127 = math.tanh %126 : vector<1x128xf32>
    %cst_57 = arith.constant 1.000000e+00 : f32
    %128 = vector.broadcast %cst_57 : f32 to vector<1x128xf32>
    %129 = arith.subf %128, %122 : vector<1x128xf32>
    %130 = arith.mulf %129, %127 : vector<1x128xf32>
    %131 = arith.mulf %122, %109 : vector<1x128xf32>
    %132 = arith.addf %130, %131 : vector<1x128xf32>
    %133 = vector.extract_strided_slice %40 {offsets = [4, 0], sizes = [1, 384], strides = [1, 1]} : vector<16x384xf32> to vector<1x384xf32>
    %134 = arith.truncf %132 : vector<1x128xf32> to vector<1x128xbf16>
    %cst_58 = arith.constant dense<0.000000e+00> : vector<1x256xf32>
    %135 = tpu.matmul %134, %27, %cst_58 {dimension_numbers = #tpu.dot_dimension_numbers<[1], [0], [0], [1], [0, 0, 1, 1], [], []>} : vector<1x128xbf16>, vector<128x256xbf16>, vector<1x256xf32> -> vector<1x256xf32>
    %cst_59 = arith.constant dense<0.000000e+00> : vector<1x128xf32>
    %136 = tpu.matmul %134, %28, %cst_59 {dimension_numbers = #tpu.dot_dimension_numbers<[1], [0], [0], [1], [0, 0, 1, 1], [], []>} : vector<1x128xbf16>, vector<128x128xbf16>, vector<1x128xf32> -> vector<1x128xf32>
    %137 = vector.extract_strided_slice %133 {offsets = [0, 0], sizes = [1, 256], strides = [1, 1]} : vector<1x384xf32> to vector<1x256xf32>
    %138 = arith.addf %137, %135 : vector<1x256xf32>
    %139 = arith.negf %138 : vector<1x256xf32>
    %140 = math.exp %139 : vector<1x256xf32>
    %cst_60 = arith.constant 1.000000e+00 : f32
    %141 = vector.broadcast %cst_60 : f32 to vector<1x256xf32>
    %142 = arith.addf %141, %140 : vector<1x256xf32>
    %143 = arith.divf %141, %142 : vector<1x256xf32>
    %144 = vector.extract_strided_slice %143 {offsets = [0, 0], sizes = [1, 128], strides = [1, 1]} : vector<1x256xf32> to vector<1x128xf32>
    %145 = vector.extract_strided_slice %143 {offsets = [0, 128], sizes = [1, 128], strides = [1, 1]} : vector<1x256xf32> to vector<1x128xf32>
    %146 = vector.extract_strided_slice %133 {offsets = [0, 256], sizes = [1, 128], strides = [1, 1]} : vector<1x384xf32> to vector<1x128xf32>
    %147 = arith.addf %136, %29 : vector<1x128xf32>
    %148 = arith.mulf %144, %147 : vector<1x128xf32>
    %149 = arith.addf %146, %148 : vector<1x128xf32>
    %150 = math.tanh %149 : vector<1x128xf32>
    %cst_61 = arith.constant 1.000000e+00 : f32
    %151 = vector.broadcast %cst_61 : f32 to vector<1x128xf32>
    %152 = arith.subf %151, %145 : vector<1x128xf32>
    %153 = arith.mulf %152, %150 : vector<1x128xf32>
    %154 = arith.mulf %145, %132 : vector<1x128xf32>
    %155 = arith.addf %153, %154 : vector<1x128xf32>
    %156 = vector.extract_strided_slice %40 {offsets = [5, 0], sizes = [1, 384], strides = [1, 1]} : vector<16x384xf32> to vector<1x384xf32>
    %157 = arith.truncf %155 : vector<1x128xf32> to vector<1x128xbf16>
    %cst_62 = arith.constant dense<0.000000e+00> : vector<1x256xf32>
    %158 = tpu.matmul %157, %27, %cst_62 {dimension_numbers = #tpu.dot_dimension_numbers<[1], [0], [0], [1], [0, 0, 1, 1], [], []>} : vector<1x128xbf16>, vector<128x256xbf16>, vector<1x256xf32> -> vector<1x256xf32>
    %cst_63 = arith.constant dense<0.000000e+00> : vector<1x128xf32>
    %159 = tpu.matmul %157, %28, %cst_63 {dimension_numbers = #tpu.dot_dimension_numbers<[1], [0], [0], [1], [0, 0, 1, 1], [], []>} : vector<1x128xbf16>, vector<128x128xbf16>, vector<1x128xf32> -> vector<1x128xf32>
    %160 = vector.extract_strided_slice %156 {offsets = [0, 0], sizes = [1, 256], strides = [1, 1]} : vector<1x384xf32> to vector<1x256xf32>
    %161 = arith.addf %160, %158 : vector<1x256xf32>
    %162 = arith.negf %161 : vector<1x256xf32>
    %163 = math.exp %162 : vector<1x256xf32>
    %cst_64 = arith.constant 1.000000e+00 : f32
    %164 = vector.broadcast %cst_64 : f32 to vector<1x256xf32>
    %165 = arith.addf %164, %163 : vector<1x256xf32>
    %166 = arith.divf %164, %165 : vector<1x256xf32>
    %167 = vector.extract_strided_slice %166 {offsets = [0, 0], sizes = [1, 128], strides = [1, 1]} : vector<1x256xf32> to vector<1x128xf32>
    %168 = vector.extract_strided_slice %166 {offsets = [0, 128], sizes = [1, 128], strides = [1, 1]} : vector<1x256xf32> to vector<1x128xf32>
    %169 = vector.extract_strided_slice %156 {offsets = [0, 256], sizes = [1, 128], strides = [1, 1]} : vector<1x384xf32> to vector<1x128xf32>
    %170 = arith.addf %159, %29 : vector<1x128xf32>
    %171 = arith.mulf %167, %170 : vector<1x128xf32>
    %172 = arith.addf %169, %171 : vector<1x128xf32>
    %173 = math.tanh %172 : vector<1x128xf32>
    %cst_65 = arith.constant 1.000000e+00 : f32
    %174 = vector.broadcast %cst_65 : f32 to vector<1x128xf32>
    %175 = arith.subf %174, %168 : vector<1x128xf32>
    %176 = arith.mulf %175, %173 : vector<1x128xf32>
    %177 = arith.mulf %168, %155 : vector<1x128xf32>
    %178 = arith.addf %176, %177 : vector<1x128xf32>
    %179 = vector.extract_strided_slice %40 {offsets = [6, 0], sizes = [1, 384], strides = [1, 1]} : vector<16x384xf32> to vector<1x384xf32>
    %180 = arith.truncf %178 : vector<1x128xf32> to vector<1x128xbf16>
    %cst_66 = arith.constant dense<0.000000e+00> : vector<1x256xf32>
    %181 = tpu.matmul %180, %27, %cst_66 {dimension_numbers = #tpu.dot_dimension_numbers<[1], [0], [0], [1], [0, 0, 1, 1], [], []>} : vector<1x128xbf16>, vector<128x256xbf16>, vector<1x256xf32> -> vector<1x256xf32>
    %cst_67 = arith.constant dense<0.000000e+00> : vector<1x128xf32>
    %182 = tpu.matmul %180, %28, %cst_67 {dimension_numbers = #tpu.dot_dimension_numbers<[1], [0], [0], [1], [0, 0, 1, 1], [], []>} : vector<1x128xbf16>, vector<128x128xbf16>, vector<1x128xf32> -> vector<1x128xf32>
    %183 = vector.extract_strided_slice %179 {offsets = [0, 0], sizes = [1, 256], strides = [1, 1]} : vector<1x384xf32> to vector<1x256xf32>
    %184 = arith.addf %183, %181 : vector<1x256xf32>
    %185 = arith.negf %184 : vector<1x256xf32>
    %186 = math.exp %185 : vector<1x256xf32>
    %cst_68 = arith.constant 1.000000e+00 : f32
    %187 = vector.broadcast %cst_68 : f32 to vector<1x256xf32>
    %188 = arith.addf %187, %186 : vector<1x256xf32>
    %189 = arith.divf %187, %188 : vector<1x256xf32>
    %190 = vector.extract_strided_slice %189 {offsets = [0, 0], sizes = [1, 128], strides = [1, 1]} : vector<1x256xf32> to vector<1x128xf32>
    %191 = vector.extract_strided_slice %189 {offsets = [0, 128], sizes = [1, 128], strides = [1, 1]} : vector<1x256xf32> to vector<1x128xf32>
    %192 = vector.extract_strided_slice %179 {offsets = [0, 256], sizes = [1, 128], strides = [1, 1]} : vector<1x384xf32> to vector<1x128xf32>
    %193 = arith.addf %182, %29 : vector<1x128xf32>
    %194 = arith.mulf %190, %193 : vector<1x128xf32>
    %195 = arith.addf %192, %194 : vector<1x128xf32>
    %196 = math.tanh %195 : vector<1x128xf32>
    %cst_69 = arith.constant 1.000000e+00 : f32
    %197 = vector.broadcast %cst_69 : f32 to vector<1x128xf32>
    %198 = arith.subf %197, %191 : vector<1x128xf32>
    %199 = arith.mulf %198, %196 : vector<1x128xf32>
    %200 = arith.mulf %191, %178 : vector<1x128xf32>
    %201 = arith.addf %199, %200 : vector<1x128xf32>
    %202 = vector.extract_strided_slice %40 {offsets = [7, 0], sizes = [1, 384], strides = [1, 1]} : vector<16x384xf32> to vector<1x384xf32>
    %203 = arith.truncf %201 : vector<1x128xf32> to vector<1x128xbf16>
    %cst_70 = arith.constant dense<0.000000e+00> : vector<1x256xf32>
    %204 = tpu.matmul %203, %27, %cst_70 {dimension_numbers = #tpu.dot_dimension_numbers<[1], [0], [0], [1], [0, 0, 1, 1], [], []>} : vector<1x128xbf16>, vector<128x256xbf16>, vector<1x256xf32> -> vector<1x256xf32>
    %cst_71 = arith.constant dense<0.000000e+00> : vector<1x128xf32>
    %205 = tpu.matmul %203, %28, %cst_71 {dimension_numbers = #tpu.dot_dimension_numbers<[1], [0], [0], [1], [0, 0, 1, 1], [], []>} : vector<1x128xbf16>, vector<128x128xbf16>, vector<1x128xf32> -> vector<1x128xf32>
    %206 = vector.extract_strided_slice %202 {offsets = [0, 0], sizes = [1, 256], strides = [1, 1]} : vector<1x384xf32> to vector<1x256xf32>
    %207 = arith.addf %206, %204 : vector<1x256xf32>
    %208 = arith.negf %207 : vector<1x256xf32>
    %209 = math.exp %208 : vector<1x256xf32>
    %cst_72 = arith.constant 1.000000e+00 : f32
    %210 = vector.broadcast %cst_72 : f32 to vector<1x256xf32>
    %211 = arith.addf %210, %209 : vector<1x256xf32>
    %212 = arith.divf %210, %211 : vector<1x256xf32>
    %213 = vector.extract_strided_slice %212 {offsets = [0, 0], sizes = [1, 128], strides = [1, 1]} : vector<1x256xf32> to vector<1x128xf32>
    %214 = vector.extract_strided_slice %212 {offsets = [0, 128], sizes = [1, 128], strides = [1, 1]} : vector<1x256xf32> to vector<1x128xf32>
    %215 = vector.extract_strided_slice %202 {offsets = [0, 256], sizes = [1, 128], strides = [1, 1]} : vector<1x384xf32> to vector<1x128xf32>
    %216 = arith.addf %205, %29 : vector<1x128xf32>
    %217 = arith.mulf %213, %216 : vector<1x128xf32>
    %218 = arith.addf %215, %217 : vector<1x128xf32>
    %219 = math.tanh %218 : vector<1x128xf32>
    %cst_73 = arith.constant 1.000000e+00 : f32
    %220 = vector.broadcast %cst_73 : f32 to vector<1x128xf32>
    %221 = arith.subf %220, %214 : vector<1x128xf32>
    %222 = arith.mulf %221, %219 : vector<1x128xf32>
    %223 = arith.mulf %214, %201 : vector<1x128xf32>
    %224 = arith.addf %222, %223 : vector<1x128xf32>
    %225 = vector.extract_strided_slice %40 {offsets = [8, 0], sizes = [1, 384], strides = [1, 1]} : vector<16x384xf32> to vector<1x384xf32>
    %226 = arith.truncf %224 : vector<1x128xf32> to vector<1x128xbf16>
    %cst_74 = arith.constant dense<0.000000e+00> : vector<1x256xf32>
    %227 = tpu.matmul %226, %27, %cst_74 {dimension_numbers = #tpu.dot_dimension_numbers<[1], [0], [0], [1], [0, 0, 1, 1], [], []>} : vector<1x128xbf16>, vector<128x256xbf16>, vector<1x256xf32> -> vector<1x256xf32>
    %cst_75 = arith.constant dense<0.000000e+00> : vector<1x128xf32>
    %228 = tpu.matmul %226, %28, %cst_75 {dimension_numbers = #tpu.dot_dimension_numbers<[1], [0], [0], [1], [0, 0, 1, 1], [], []>} : vector<1x128xbf16>, vector<128x128xbf16>, vector<1x128xf32> -> vector<1x128xf32>
    %229 = vector.extract_strided_slice %225 {offsets = [0, 0], sizes = [1, 256], strides = [1, 1]} : vector<1x384xf32> to vector<1x256xf32>
    %230 = arith.addf %229, %227 : vector<1x256xf32>
    %231 = arith.negf %230 : vector<1x256xf32>
    %232 = math.exp %231 : vector<1x256xf32>
    %cst_76 = arith.constant 1.000000e+00 : f32
    %233 = vector.broadcast %cst_76 : f32 to vector<1x256xf32>
    %234 = arith.addf %233, %232 : vector<1x256xf32>
    %235 = arith.divf %233, %234 : vector<1x256xf32>
    %236 = vector.extract_strided_slice %235 {offsets = [0, 0], sizes = [1, 128], strides = [1, 1]} : vector<1x256xf32> to vector<1x128xf32>
    %237 = vector.extract_strided_slice %235 {offsets = [0, 128], sizes = [1, 128], strides = [1, 1]} : vector<1x256xf32> to vector<1x128xf32>
    %238 = vector.extract_strided_slice %225 {offsets = [0, 256], sizes = [1, 128], strides = [1, 1]} : vector<1x384xf32> to vector<1x128xf32>
    %239 = arith.addf %228, %29 : vector<1x128xf32>
    %240 = arith.mulf %236, %239 : vector<1x128xf32>
    %241 = arith.addf %238, %240 : vector<1x128xf32>
    %242 = math.tanh %241 : vector<1x128xf32>
    %cst_77 = arith.constant 1.000000e+00 : f32
    %243 = vector.broadcast %cst_77 : f32 to vector<1x128xf32>
    %244 = arith.subf %243, %237 : vector<1x128xf32>
    %245 = arith.mulf %244, %242 : vector<1x128xf32>
    %246 = arith.mulf %237, %224 : vector<1x128xf32>
    %247 = arith.addf %245, %246 : vector<1x128xf32>
    %248 = vector.extract_strided_slice %40 {offsets = [9, 0], sizes = [1, 384], strides = [1, 1]} : vector<16x384xf32> to vector<1x384xf32>
    %249 = arith.truncf %247 : vector<1x128xf32> to vector<1x128xbf16>
    %cst_78 = arith.constant dense<0.000000e+00> : vector<1x256xf32>
    %250 = tpu.matmul %249, %27, %cst_78 {dimension_numbers = #tpu.dot_dimension_numbers<[1], [0], [0], [1], [0, 0, 1, 1], [], []>} : vector<1x128xbf16>, vector<128x256xbf16>, vector<1x256xf32> -> vector<1x256xf32>
    %cst_79 = arith.constant dense<0.000000e+00> : vector<1x128xf32>
    %251 = tpu.matmul %249, %28, %cst_79 {dimension_numbers = #tpu.dot_dimension_numbers<[1], [0], [0], [1], [0, 0, 1, 1], [], []>} : vector<1x128xbf16>, vector<128x128xbf16>, vector<1x128xf32> -> vector<1x128xf32>
    %252 = vector.extract_strided_slice %248 {offsets = [0, 0], sizes = [1, 256], strides = [1, 1]} : vector<1x384xf32> to vector<1x256xf32>
    %253 = arith.addf %252, %250 : vector<1x256xf32>
    %254 = arith.negf %253 : vector<1x256xf32>
    %255 = math.exp %254 : vector<1x256xf32>
    %cst_80 = arith.constant 1.000000e+00 : f32
    %256 = vector.broadcast %cst_80 : f32 to vector<1x256xf32>
    %257 = arith.addf %256, %255 : vector<1x256xf32>
    %258 = arith.divf %256, %257 : vector<1x256xf32>
    %259 = vector.extract_strided_slice %258 {offsets = [0, 0], sizes = [1, 128], strides = [1, 1]} : vector<1x256xf32> to vector<1x128xf32>
    %260 = vector.extract_strided_slice %258 {offsets = [0, 128], sizes = [1, 128], strides = [1, 1]} : vector<1x256xf32> to vector<1x128xf32>
    %261 = vector.extract_strided_slice %248 {offsets = [0, 256], sizes = [1, 128], strides = [1, 1]} : vector<1x384xf32> to vector<1x128xf32>
    %262 = arith.addf %251, %29 : vector<1x128xf32>
    %263 = arith.mulf %259, %262 : vector<1x128xf32>
    %264 = arith.addf %261, %263 : vector<1x128xf32>
    %265 = math.tanh %264 : vector<1x128xf32>
    %cst_81 = arith.constant 1.000000e+00 : f32
    %266 = vector.broadcast %cst_81 : f32 to vector<1x128xf32>
    %267 = arith.subf %266, %260 : vector<1x128xf32>
    %268 = arith.mulf %267, %265 : vector<1x128xf32>
    %269 = arith.mulf %260, %247 : vector<1x128xf32>
    %270 = arith.addf %268, %269 : vector<1x128xf32>
    %271 = vector.extract_strided_slice %40 {offsets = [10, 0], sizes = [1, 384], strides = [1, 1]} : vector<16x384xf32> to vector<1x384xf32>
    %272 = arith.truncf %270 : vector<1x128xf32> to vector<1x128xbf16>
    %cst_82 = arith.constant dense<0.000000e+00> : vector<1x256xf32>
    %273 = tpu.matmul %272, %27, %cst_82 {dimension_numbers = #tpu.dot_dimension_numbers<[1], [0], [0], [1], [0, 0, 1, 1], [], []>} : vector<1x128xbf16>, vector<128x256xbf16>, vector<1x256xf32> -> vector<1x256xf32>
    %cst_83 = arith.constant dense<0.000000e+00> : vector<1x128xf32>
    %274 = tpu.matmul %272, %28, %cst_83 {dimension_numbers = #tpu.dot_dimension_numbers<[1], [0], [0], [1], [0, 0, 1, 1], [], []>} : vector<1x128xbf16>, vector<128x128xbf16>, vector<1x128xf32> -> vector<1x128xf32>
    %275 = vector.extract_strided_slice %271 {offsets = [0, 0], sizes = [1, 256], strides = [1, 1]} : vector<1x384xf32> to vector<1x256xf32>
    %276 = arith.addf %275, %273 : vector<1x256xf32>
    %277 = arith.negf %276 : vector<1x256xf32>
    %278 = math.exp %277 : vector<1x256xf32>
    %cst_84 = arith.constant 1.000000e+00 : f32
    %279 = vector.broadcast %cst_84 : f32 to vector<1x256xf32>
    %280 = arith.addf %279, %278 : vector<1x256xf32>
    %281 = arith.divf %279, %280 : vector<1x256xf32>
    %282 = vector.extract_strided_slice %281 {offsets = [0, 0], sizes = [1, 128], strides = [1, 1]} : vector<1x256xf32> to vector<1x128xf32>
    %283 = vector.extract_strided_slice %281 {offsets = [0, 128], sizes = [1, 128], strides = [1, 1]} : vector<1x256xf32> to vector<1x128xf32>
    %284 = vector.extract_strided_slice %271 {offsets = [0, 256], sizes = [1, 128], strides = [1, 1]} : vector<1x384xf32> to vector<1x128xf32>
    %285 = arith.addf %274, %29 : vector<1x128xf32>
    %286 = arith.mulf %282, %285 : vector<1x128xf32>
    %287 = arith.addf %284, %286 : vector<1x128xf32>
    %288 = math.tanh %287 : vector<1x128xf32>
    %cst_85 = arith.constant 1.000000e+00 : f32
    %289 = vector.broadcast %cst_85 : f32 to vector<1x128xf32>
    %290 = arith.subf %289, %283 : vector<1x128xf32>
    %291 = arith.mulf %290, %288 : vector<1x128xf32>
    %292 = arith.mulf %283, %270 : vector<1x128xf32>
    %293 = arith.addf %291, %292 : vector<1x128xf32>
    %294 = vector.extract_strided_slice %40 {offsets = [11, 0], sizes = [1, 384], strides = [1, 1]} : vector<16x384xf32> to vector<1x384xf32>
    %295 = arith.truncf %293 : vector<1x128xf32> to vector<1x128xbf16>
    %cst_86 = arith.constant dense<0.000000e+00> : vector<1x256xf32>
    %296 = tpu.matmul %295, %27, %cst_86 {dimension_numbers = #tpu.dot_dimension_numbers<[1], [0], [0], [1], [0, 0, 1, 1], [], []>} : vector<1x128xbf16>, vector<128x256xbf16>, vector<1x256xf32> -> vector<1x256xf32>
    %cst_87 = arith.constant dense<0.000000e+00> : vector<1x128xf32>
    %297 = tpu.matmul %295, %28, %cst_87 {dimension_numbers = #tpu.dot_dimension_numbers<[1], [0], [0], [1], [0, 0, 1, 1], [], []>} : vector<1x128xbf16>, vector<128x128xbf16>, vector<1x128xf32> -> vector<1x128xf32>
    %298 = vector.extract_strided_slice %294 {offsets = [0, 0], sizes = [1, 256], strides = [1, 1]} : vector<1x384xf32> to vector<1x256xf32>
    %299 = arith.addf %298, %296 : vector<1x256xf32>
    %300 = arith.negf %299 : vector<1x256xf32>
    %301 = math.exp %300 : vector<1x256xf32>
    %cst_88 = arith.constant 1.000000e+00 : f32
    %302 = vector.broadcast %cst_88 : f32 to vector<1x256xf32>
    %303 = arith.addf %302, %301 : vector<1x256xf32>
    %304 = arith.divf %302, %303 : vector<1x256xf32>
    %305 = vector.extract_strided_slice %304 {offsets = [0, 0], sizes = [1, 128], strides = [1, 1]} : vector<1x256xf32> to vector<1x128xf32>
    %306 = vector.extract_strided_slice %304 {offsets = [0, 128], sizes = [1, 128], strides = [1, 1]} : vector<1x256xf32> to vector<1x128xf32>
    %307 = vector.extract_strided_slice %294 {offsets = [0, 256], sizes = [1, 128], strides = [1, 1]} : vector<1x384xf32> to vector<1x128xf32>
    %308 = arith.addf %297, %29 : vector<1x128xf32>
    %309 = arith.mulf %305, %308 : vector<1x128xf32>
    %310 = arith.addf %307, %309 : vector<1x128xf32>
    %311 = math.tanh %310 : vector<1x128xf32>
    %cst_89 = arith.constant 1.000000e+00 : f32
    %312 = vector.broadcast %cst_89 : f32 to vector<1x128xf32>
    %313 = arith.subf %312, %306 : vector<1x128xf32>
    %314 = arith.mulf %313, %311 : vector<1x128xf32>
    %315 = arith.mulf %306, %293 : vector<1x128xf32>
    %316 = arith.addf %314, %315 : vector<1x128xf32>
    %317 = vector.extract_strided_slice %40 {offsets = [12, 0], sizes = [1, 384], strides = [1, 1]} : vector<16x384xf32> to vector<1x384xf32>
    %318 = arith.truncf %316 : vector<1x128xf32> to vector<1x128xbf16>
    %cst_90 = arith.constant dense<0.000000e+00> : vector<1x256xf32>
    %319 = tpu.matmul %318, %27, %cst_90 {dimension_numbers = #tpu.dot_dimension_numbers<[1], [0], [0], [1], [0, 0, 1, 1], [], []>} : vector<1x128xbf16>, vector<128x256xbf16>, vector<1x256xf32> -> vector<1x256xf32>
    %cst_91 = arith.constant dense<0.000000e+00> : vector<1x128xf32>
    %320 = tpu.matmul %318, %28, %cst_91 {dimension_numbers = #tpu.dot_dimension_numbers<[1], [0], [0], [1], [0, 0, 1, 1], [], []>} : vector<1x128xbf16>, vector<128x128xbf16>, vector<1x128xf32> -> vector<1x128xf32>
    %321 = vector.extract_strided_slice %317 {offsets = [0, 0], sizes = [1, 256], strides = [1, 1]} : vector<1x384xf32> to vector<1x256xf32>
    %322 = arith.addf %321, %319 : vector<1x256xf32>
    %323 = arith.negf %322 : vector<1x256xf32>
    %324 = math.exp %323 : vector<1x256xf32>
    %cst_92 = arith.constant 1.000000e+00 : f32
    %325 = vector.broadcast %cst_92 : f32 to vector<1x256xf32>
    %326 = arith.addf %325, %324 : vector<1x256xf32>
    %327 = arith.divf %325, %326 : vector<1x256xf32>
    %328 = vector.extract_strided_slice %327 {offsets = [0, 0], sizes = [1, 128], strides = [1, 1]} : vector<1x256xf32> to vector<1x128xf32>
    %329 = vector.extract_strided_slice %327 {offsets = [0, 128], sizes = [1, 128], strides = [1, 1]} : vector<1x256xf32> to vector<1x128xf32>
    %330 = vector.extract_strided_slice %317 {offsets = [0, 256], sizes = [1, 128], strides = [1, 1]} : vector<1x384xf32> to vector<1x128xf32>
    %331 = arith.addf %320, %29 : vector<1x128xf32>
    %332 = arith.mulf %328, %331 : vector<1x128xf32>
    %333 = arith.addf %330, %332 : vector<1x128xf32>
    %334 = math.tanh %333 : vector<1x128xf32>
    %cst_93 = arith.constant 1.000000e+00 : f32
    %335 = vector.broadcast %cst_93 : f32 to vector<1x128xf32>
    %336 = arith.subf %335, %329 : vector<1x128xf32>
    %337 = arith.mulf %336, %334 : vector<1x128xf32>
    %338 = arith.mulf %329, %316 : vector<1x128xf32>
    %339 = arith.addf %337, %338 : vector<1x128xf32>
    %340 = vector.extract_strided_slice %40 {offsets = [13, 0], sizes = [1, 384], strides = [1, 1]} : vector<16x384xf32> to vector<1x384xf32>
    %341 = arith.truncf %339 : vector<1x128xf32> to vector<1x128xbf16>
    %cst_94 = arith.constant dense<0.000000e+00> : vector<1x256xf32>
    %342 = tpu.matmul %341, %27, %cst_94 {dimension_numbers = #tpu.dot_dimension_numbers<[1], [0], [0], [1], [0, 0, 1, 1], [], []>} : vector<1x128xbf16>, vector<128x256xbf16>, vector<1x256xf32> -> vector<1x256xf32>
    %cst_95 = arith.constant dense<0.000000e+00> : vector<1x128xf32>
    %343 = tpu.matmul %341, %28, %cst_95 {dimension_numbers = #tpu.dot_dimension_numbers<[1], [0], [0], [1], [0, 0, 1, 1], [], []>} : vector<1x128xbf16>, vector<128x128xbf16>, vector<1x128xf32> -> vector<1x128xf32>
    %344 = vector.extract_strided_slice %340 {offsets = [0, 0], sizes = [1, 256], strides = [1, 1]} : vector<1x384xf32> to vector<1x256xf32>
    %345 = arith.addf %344, %342 : vector<1x256xf32>
    %346 = arith.negf %345 : vector<1x256xf32>
    %347 = math.exp %346 : vector<1x256xf32>
    %cst_96 = arith.constant 1.000000e+00 : f32
    %348 = vector.broadcast %cst_96 : f32 to vector<1x256xf32>
    %349 = arith.addf %348, %347 : vector<1x256xf32>
    %350 = arith.divf %348, %349 : vector<1x256xf32>
    %351 = vector.extract_strided_slice %350 {offsets = [0, 0], sizes = [1, 128], strides = [1, 1]} : vector<1x256xf32> to vector<1x128xf32>
    %352 = vector.extract_strided_slice %350 {offsets = [0, 128], sizes = [1, 128], strides = [1, 1]} : vector<1x256xf32> to vector<1x128xf32>
    %353 = vector.extract_strided_slice %340 {offsets = [0, 256], sizes = [1, 128], strides = [1, 1]} : vector<1x384xf32> to vector<1x128xf32>
    %354 = arith.addf %343, %29 : vector<1x128xf32>
    %355 = arith.mulf %351, %354 : vector<1x128xf32>
    %356 = arith.addf %353, %355 : vector<1x128xf32>
    %357 = math.tanh %356 : vector<1x128xf32>
    %cst_97 = arith.constant 1.000000e+00 : f32
    %358 = vector.broadcast %cst_97 : f32 to vector<1x128xf32>
    %359 = arith.subf %358, %352 : vector<1x128xf32>
    %360 = arith.mulf %359, %357 : vector<1x128xf32>
    %361 = arith.mulf %352, %339 : vector<1x128xf32>
    %362 = arith.addf %360, %361 : vector<1x128xf32>
    %363 = vector.extract_strided_slice %40 {offsets = [14, 0], sizes = [1, 384], strides = [1, 1]} : vector<16x384xf32> to vector<1x384xf32>
    %364 = arith.truncf %362 : vector<1x128xf32> to vector<1x128xbf16>
    %cst_98 = arith.constant dense<0.000000e+00> : vector<1x256xf32>
    %365 = tpu.matmul %364, %27, %cst_98 {dimension_numbers = #tpu.dot_dimension_numbers<[1], [0], [0], [1], [0, 0, 1, 1], [], []>} : vector<1x128xbf16>, vector<128x256xbf16>, vector<1x256xf32> -> vector<1x256xf32>
    %cst_99 = arith.constant dense<0.000000e+00> : vector<1x128xf32>
    %366 = tpu.matmul %364, %28, %cst_99 {dimension_numbers = #tpu.dot_dimension_numbers<[1], [0], [0], [1], [0, 0, 1, 1], [], []>} : vector<1x128xbf16>, vector<128x128xbf16>, vector<1x128xf32> -> vector<1x128xf32>
    %367 = vector.extract_strided_slice %363 {offsets = [0, 0], sizes = [1, 256], strides = [1, 1]} : vector<1x384xf32> to vector<1x256xf32>
    %368 = arith.addf %367, %365 : vector<1x256xf32>
    %369 = arith.negf %368 : vector<1x256xf32>
    %370 = math.exp %369 : vector<1x256xf32>
    %cst_100 = arith.constant 1.000000e+00 : f32
    %371 = vector.broadcast %cst_100 : f32 to vector<1x256xf32>
    %372 = arith.addf %371, %370 : vector<1x256xf32>
    %373 = arith.divf %371, %372 : vector<1x256xf32>
    %374 = vector.extract_strided_slice %373 {offsets = [0, 0], sizes = [1, 128], strides = [1, 1]} : vector<1x256xf32> to vector<1x128xf32>
    %375 = vector.extract_strided_slice %373 {offsets = [0, 128], sizes = [1, 128], strides = [1, 1]} : vector<1x256xf32> to vector<1x128xf32>
    %376 = vector.extract_strided_slice %363 {offsets = [0, 256], sizes = [1, 128], strides = [1, 1]} : vector<1x384xf32> to vector<1x128xf32>
    %377 = arith.addf %366, %29 : vector<1x128xf32>
    %378 = arith.mulf %374, %377 : vector<1x128xf32>
    %379 = arith.addf %376, %378 : vector<1x128xf32>
    %380 = math.tanh %379 : vector<1x128xf32>
    %cst_101 = arith.constant 1.000000e+00 : f32
    %381 = vector.broadcast %cst_101 : f32 to vector<1x128xf32>
    %382 = arith.subf %381, %375 : vector<1x128xf32>
    %383 = arith.mulf %382, %380 : vector<1x128xf32>
    %384 = arith.mulf %375, %362 : vector<1x128xf32>
    %385 = arith.addf %383, %384 : vector<1x128xf32>
    %386 = vector.extract_strided_slice %40 {offsets = [15, 0], sizes = [1, 384], strides = [1, 1]} : vector<16x384xf32> to vector<1x384xf32>
    %387 = arith.truncf %385 : vector<1x128xf32> to vector<1x128xbf16>
    %cst_102 = arith.constant dense<0.000000e+00> : vector<1x256xf32>
    %388 = tpu.matmul %387, %27, %cst_102 {dimension_numbers = #tpu.dot_dimension_numbers<[1], [0], [0], [1], [0, 0, 1, 1], [], []>} : vector<1x128xbf16>, vector<128x256xbf16>, vector<1x256xf32> -> vector<1x256xf32>
    %cst_103 = arith.constant dense<0.000000e+00> : vector<1x128xf32>
    %389 = tpu.matmul %387, %28, %cst_103 {dimension_numbers = #tpu.dot_dimension_numbers<[1], [0], [0], [1], [0, 0, 1, 1], [], []>} : vector<1x128xbf16>, vector<128x128xbf16>, vector<1x128xf32> -> vector<1x128xf32>
    %390 = vector.extract_strided_slice %386 {offsets = [0, 0], sizes = [1, 256], strides = [1, 1]} : vector<1x384xf32> to vector<1x256xf32>
    %391 = arith.addf %390, %388 : vector<1x256xf32>
    %392 = arith.negf %391 : vector<1x256xf32>
    %393 = math.exp %392 : vector<1x256xf32>
    %cst_104 = arith.constant 1.000000e+00 : f32
    %394 = vector.broadcast %cst_104 : f32 to vector<1x256xf32>
    %395 = arith.addf %394, %393 : vector<1x256xf32>
    %396 = arith.divf %394, %395 : vector<1x256xf32>
    %397 = vector.extract_strided_slice %396 {offsets = [0, 0], sizes = [1, 128], strides = [1, 1]} : vector<1x256xf32> to vector<1x128xf32>
    %398 = vector.extract_strided_slice %396 {offsets = [0, 128], sizes = [1, 128], strides = [1, 1]} : vector<1x256xf32> to vector<1x128xf32>
    %399 = vector.extract_strided_slice %386 {offsets = [0, 256], sizes = [1, 128], strides = [1, 1]} : vector<1x384xf32> to vector<1x128xf32>
    %400 = arith.addf %389, %29 : vector<1x128xf32>
    %401 = arith.mulf %397, %400 : vector<1x128xf32>
    %402 = arith.addf %399, %401 : vector<1x128xf32>
    %403 = math.tanh %402 : vector<1x128xf32>
    %cst_105 = arith.constant 1.000000e+00 : f32
    %404 = vector.broadcast %cst_105 : f32 to vector<1x128xf32>
    %405 = arith.subf %404, %398 : vector<1x128xf32>
    %406 = arith.mulf %405, %403 : vector<1x128xf32>
    %407 = arith.mulf %398, %385 : vector<1x128xf32>
    %408 = arith.addf %406, %407 : vector<1x128xf32>
    %409 = tpu.concatenate %63, %86, %109, %132, %155, %178, %201, %224, %247, %270, %293, %316, %339, %362, %385, %408 in 0 : vector<1x128xf32>, vector<1x128xf32>, vector<1x128xf32>, vector<1x128xf32>, vector<1x128xf32>, vector<1x128xf32>, vector<1x128xf32>, vector<1x128xf32>, vector<1x128xf32>, vector<1x128xf32>, vector<1x128xf32>, vector<1x128xf32>, vector<1x128xf32>, vector<1x128xf32>, vector<1x128xf32>, vector<1x128xf32> -> vector<16x128xf32>
    %cst_106 = arith.constant 0.000000e+00 : f32
    %410 = vector.broadcast %cst_106 : f32 to vector<16x128xf32>
    %411 = arith.maximumf %409, %410 : vector<16x128xf32>
    %412 = arith.truncf %411 : vector<16x128xf32> to vector<16x128xbf16>
    %cst_107 = arith.constant dense<0.000000e+00> : vector<16x64xf32>
    %413 = tpu.matmul %412, %30, %cst_107 {dimension_numbers = #tpu.dot_dimension_numbers<[1], [0], [0], [1], [0, 0, 1, 1], [], []>} : vector<16x128xbf16>, vector<128x64xbf16>, vector<16x64xf32> -> vector<16x64xf32>
    %414 = vector.broadcast %31 : vector<1x64xf32> to vector<16x64xf32>
    %415 = arith.addf %413, %414 : vector<16x64xf32>
    %cst_108 = arith.constant 0.000000e+00 : f32
    %416 = vector.broadcast %cst_108 : f32 to vector<16x64xf32>
    %417 = arith.maximumf %415, %416 : vector<16x64xf32>
    %418 = arith.truncf %417 : vector<16x64xf32> to vector<16x64xbf16>
    %cst_109 = arith.constant dense<0.000000e+00> : vector<16x64xf32>
    %419 = tpu.matmul %418, %32, %cst_109 {dimension_numbers = #tpu.dot_dimension_numbers<[1], [0], [0], [1], [0, 0, 1, 1], [], []>} : vector<16x64xbf16>, vector<64x64xbf16>, vector<16x64xf32> -> vector<16x64xf32>
    %420 = vector.broadcast %33 : vector<1x64xf32> to vector<16x64xf32>
    %421 = arith.addf %419, %420 : vector<16x64xf32>
    %cst_110 = arith.constant 0.000000e+00 : f32
    %422 = vector.broadcast %cst_110 : f32 to vector<16x64xf32>
    %423 = arith.maximumf %421, %422 : vector<16x64xf32>
    %424 = arith.truncf %423 : vector<16x64xf32> to vector<16x64xbf16>
    %cst_111 = arith.constant dense<0.000000e+00> : vector<16x128xf32>
    %425 = tpu.matmul %424, %34, %cst_111 {dimension_numbers = #tpu.dot_dimension_numbers<[1], [0], [0], [1], [0, 0, 1, 1], [], []>} : vector<16x64xbf16>, vector<64x128xbf16>, vector<16x128xf32> -> vector<16x128xf32>
    %426 = vector.broadcast %35 : vector<1x128xf32> to vector<16x128xf32>
    %427 = arith.addf %425, %426 : vector<16x128xf32>
    %428 = arith.index_cast %38 : i32 to index
    %c0_112 = arith.constant 0 : index
    %429 = vector.load %arg17[%428, %c0_112] : memref<16x128xf32, #tpu.memory_space<vmem>>, vector<16x128xf32>
    tpu.vector_store %arg17[%428, %c0_112], %427 {strides = array<i32>} : memref<16x128xf32, #tpu.memory_space<vmem>>, vector<16x128xf32>,
    %c1_i32 = arith.constant 1 : i32
    %c0_113 = arith.constant 0 : index
    %c0_114 = arith.constant 0 : index
    %430 = vector.load %arg19[%c0_113, %c0_114] : memref<1x128xf32, #tpu.memory_space<vmem>>, vector<1x128xf32>
    tpu.vector_store %arg19[%c0_113, %c0_114], %408 {strides = array<i32>} : memref<1x128xf32, #tpu.memory_space<vmem>>, vector<1x128xf32>,
    return
  }
  func.func @transform_0(%arg0: i32) -> (i32, i32) {
    %c0_i32 = arith.constant 0 : i32
    %c0_i32_0 = arith.constant 0 : i32
    return %arg0, %c0_i32 : i32, i32
  }
  func.func @transform_1(%arg0: i32) -> (i32, i32) {
    %c0_i32 = arith.constant 0 : i32
    %c0_i32_0 = arith.constant 0 : i32
    %c0_i32_1 = arith.constant 0 : i32
    return %c0_i32, %c0_i32_0 : i32, i32
  }
  func.func @transform_2(%arg0: i32) -> (i32, i32) {
    %c0_i32 = arith.constant 0 : i32
    %c0_i32_0 = arith.constant 0 : i32
    %c0_i32_1 = arith.constant 0 : i32
    return %c0_i32, %c0_i32_0 : i32, i32
  }
  func.func @transform_3(%arg0: i32) -> (i32, i32) {
    %c0_i32 = arith.constant 0 : i32
    %c0_i32_0 = arith.constant 0 : i32
    %c0_i32_1 = arith.constant 0 : i32
    return %c0_i32, %c0_i32_0 : i32, i32
  }
  func.func @transform_4(%arg0: i32) -> (i32, i32) {
    %c0_i32 = arith.constant 0 : i32
    %c0_i32_0 = arith.constant 0 : i32
    %c0_i32_1 = arith.constant 0 : i32
    return %c0_i32, %c0_i32_0 : i32, i32
  }
  func.func @transform_5(%arg0: i32) -> (i32, i32) {
    %c0_i32 = arith.constant 0 : i32
    %c0_i32_0 = arith.constant 0 : i32
    %c0_i32_1 = arith.constant 0 : i32
    return %c0_i32, %c0_i32_0 : i32, i32
  }
  func.func @transform_6(%arg0: i32) -> (i32, i32) {
    %c0_i32 = arith.constant 0 : i32
    %c0_i32_0 = arith.constant 0 : i32
    %c0_i32_1 = arith.constant 0 : i32
    return %c0_i32, %c0_i32_0 : i32, i32
  }
  func.func @transform_7(%arg0: i32) -> (i32, i32) {
    %c0_i32 = arith.constant 0 : i32
    %c0_i32_0 = arith.constant 0 : i32
    %c0_i32_1 = arith.constant 0 : i32
    return %c0_i32, %c0_i32_0 : i32, i32
  }
  func.func @transform_8(%arg0: i32) -> (i32, i32) {
    %c0_i32 = arith.constant 0 : i32
    %c0_i32_0 = arith.constant 0 : i32
    %c0_i32_1 = arith.constant 0 : i32
    return %c0_i32, %c0_i32_0 : i32, i32
  }
  func.func @transform_9(%arg0: i32) -> (i32, i32) {
    %c0_i32 = arith.constant 0 : i32
    %c0_i32_0 = arith.constant 0 : i32
    %c0_i32_1 = arith.constant 0 : i32
    return %c0_i32, %c0_i32_0 : i32, i32
  }
  func.func @transform_10(%arg0: i32) -> (i32, i32) {
    %c0_i32 = arith.constant 0 : i32
    %c0_i32_0 = arith.constant 0 : i32
    %c0_i32_1 = arith.constant 0 : i32
    return %c0_i32, %c0_i32_0 : i32, i32
  }
  func.func @transform_11(%arg0: i32) -> (i32, i32) {
    %c0_i32 = arith.constant 0 : i32
    %c0_i32_0 = arith.constant 0 : i32
    %c0_i32_1 = arith.constant 0 : i32
    return %c0_i32, %c0_i32_0 : i32, i32
  }
  func.func @transform_12(%arg0: i32) -> (i32, i32) {
    %c0_i32 = arith.constant 0 : i32
    %c0_i32_0 = arith.constant 0 : i32
    %c0_i32_1 = arith.constant 0 : i32
    return %c0_i32, %c0_i32_0 : i32, i32
  }
  func.func @transform_13(%arg0: i32) -> (i32, i32) {
    %c0_i32 = arith.constant 0 : i32
    %c0_i32_0 = arith.constant 0 : i32
    %c0_i32_1 = arith.constant 0 : i32
    return %c0_i32, %c0_i32_0 : i32, i32
  }
  func.func @transform_14(%arg0: i32) -> (i32, i32) {
    %c0_i32 = arith.constant 0 : i32
    %c0_i32_0 = arith.constant 0 : i32
    %c0_i32_1 = arith.constant 0 : i32
    return %c0_i32, %c0_i32_0 : i32, i32
  }
  func.func @transform_15(%arg0: i32) -> (i32, i32) {
    %c0_i32 = arith.constant 0 : i32
    %c0_i32_0 = arith.constant 0 : i32
    %c0_i32_1 = arith.constant 0 : i32
    return %c0_i32, %c0_i32_0 : i32, i32
  }
  func.func @transform_16(%arg0: i32) -> (i32, i32) {
    %c0_i32 = arith.constant 0 : i32
    %c0_i32_0 = arith.constant 0 : i32
    return %arg0, %c0_i32 : i32, i32
  }
}

</mosaic_0001>

<bundles_post_ra>
// kernel: tpu_custom_call.1
= control target key start
LH: loop header
LB: loop body
LE: loop exit
PB: predicated region body
PF: predicated region fallthrough
CT: control target
= control target key end

     0   :  { %s5500_s0 = inlined_call_operand.vmem [shape: f32[16,8], index: 0, kind: input, shape index: {}]   ;;  %s5501_s1 = inlined_call_operand.vmem [shape: bf16[8,128], index: 1, kind: input, shape index: {}]   ;;  %s5502_s2 = inlined_call_operand.hbm [shape: f32[1,128], index: 2, kind: input, shape index: {}]   ;;  %s5503_s3 = inlined_call_operand.hbm [shape: bf16[128,128], index: 3, kind: input, shape index: {}]   ;;  %s5504_s4 = inlined_call_operand.hbm [shape: f32[1,128], index: 4, kind: input, shape index: {}]   ;;  %s5505_s5 = inlined_call_operand.hbm [shape: bf16[128,384], index: 5, kind: input, shape index: {}]   ;;  %s5506_s6 = inlined_call_operand.hbm [shape: f32[1,384], index: 6, kind: input, shape index: {}]   ;;  %s5507_s7 = inlined_call_operand.vmem [shape: bf16[128,256], index: 7, kind: input, shape index: {}]   ;;  %s5508_s8 = inlined_call_operand.hbm [shape: bf16[128,128], index: 8, kind: input, shape index: {}]   ;;  %s5509_s9 = inlined_call_operand.vmem [shape: f32[1,128], index: 9, kind: input, shape index: {}]   ;;  %s5510_s10 = inlined_call_operand.vmem [shape: bf16[128,64], index: 10, kind: input, shape index: {}]   ;;  %s5511_s11 = inlined_call_operand.vmem [shape: f32[1,64], index: 11, kind: input, shape index: {}]   ;;  %s5512_s12 = inlined_call_operand.hbm [shape: bf16[64,64], index: 12, kind: input, shape index: {}]   ;;  %s5513_s13 = inlined_call_operand.vmem [shape: f32[1,64], index: 13, kind: input, shape index: {}]   ;;  %s5514_s14 = inlined_call_operand.hbm [shape: bf16[64,128], index: 14, kind: input, shape index: {}]   ;;  %s5515_s15 = inlined_call_operand.vmem [shape: f32[1,128], index: 15, kind: input, shape index: {}]   ;;  %s5516_s16 = inlined_call_operand.hbm [shape: f32[16,128], index: 16, kind: output, shape index: {}]  }
   0x1   :  { %5518 = sst [smem:[#allocation25_spill]] %s5500_s0 }
   0x2   :  { %21 = vsyncpa [#allocation5], 0 }
   0x3   :  { %22 = vsyncpa [#allocation8], 0 }
   0x4   :  { %23 = vsyncpa [#allocation11], 0 }
   0x5   :  { %24 = vsyncpa [#allocation14], 0 }
   0x6   :  { %25 = vsyncpa [#allocation17], 0 }
   0x7   :  { %26 = vsyncpa [#allocation6], 0  ;;  %s4194_s21 = smov [#allocation7]  }
   0x8   :  { %s46_s22 = sshll.u32 %s4194_s21, 4  ;;  %s47_s22 = int_to_ptr.vmem [resolvable:$true] %s46_s22 }
   0x9   :  { %s4010_s23 = scalar_lea.vmem %s47_s22, 1024  ;;  %p4015_p1 = scmp.lt.s32.totalorder %s47_s22, %s47_s22 }
   0xa   :  { %p4011_p0 = scmp.ne.s32.totalorder %s47_s22, %s4010_s23  ;;  %p4016_p2 = scmp.lt.s32.totalorder %s4010_s23, %s4010_s23 }
   0xc   :  { %p4017_p3 = por %p4016_p2, %p4015_p1 }
   0xe   :  { %p4018_p4 = pnand %p4017_p3, %p4011_p0 }
  0x10   :  { %4021 = shalt.err (!%p4018_p4)
}
  0x11   :  { %s4195_s24 = smov 64   ;;  %s4196_s25 = smov 4  }
  0x12   :  { %52 = dma.hbm_to_vmem [thread:$0]  %s5503_s3, 1024, %s47_s22, [#allocation8], %s4195_s24, %s4195_s24, %s4196_s25  }
  0x13   :  { %s4197_s28 = smov [#allocation10]  }
  0x14   :  { %s68_s29 = sshll.u32 %s4197_s28, 4  ;;  %s69_s29 = int_to_ptr.vmem [resolvable:$true] %s68_s29 }
  0x15   :  { %s4030_s30 = scalar_lea.vmem %s69_s29, 3072  ;;  %p4035_p6 = scmp.lt.s32.totalorder %s69_s29, %s69_s29 }
  0x16   :  { %p4031_p5 = scmp.ne.s32.totalorder %s69_s29, %s4030_s30  ;;  %p4036_p7 = scmp.lt.s32.totalorder %s4030_s30, %s4030_s30 }
  0x18   :  { %p4037_p8 = por %p4036_p7, %p4035_p6 }
  0x1a   :  { %p4038_p9 = pnand %p4037_p8, %p4031_p5 }
  0x1c   :  { %4041 = shalt.err (!%p4038_p9)
}
  0x1d   :  { %s4198_s0 = smov 192   ;;  %s4199_s17 = smov 12  }
  0x1e   :  { %74 = dma.hbm_to_vmem [thread:$0]  %s5505_s5, 3072, %s69_s29, [#allocation11], %s4198_s0, %s4198_s0, %s4199_s17  }
  0x1f   :  { %s4200_s20 = smov [#allocation13]   ;;  %s4201_s23 = smov [#allocation4]  }
  0x20   :  { %s92_s21 = sshll.u32 %s4200_s20, 4  ;;  %s37_s3 = sshll.u32 %s4201_s23, 4  ;;  %s93_s21 = int_to_ptr.vmem [resolvable:$true] %s92_s21  ;;  %s38_s3 = int_to_ptr.vmem [resolvable:$true] %s37_s3 }
  0x21   :  { %s4050_s22 = scalar_lea.vmem %s93_s21, 1024  ;;  %p4055_p11 = scmp.lt.s32.totalorder %s93_s21, %s93_s21 }
  0x22   :  { %p4051_p10 = scmp.ne.s32.totalorder %s93_s21, %s4050_s22  ;;  %p4056_p12 = scmp.lt.s32.totalorder %s4050_s22, %s4050_s22 }
  0x24   :  { %p4057_p13 = por %p4056_p12, %p4055_p11 }
  0x26   :  { %p4058_p0 = pnand %p4057_p13, %p4051_p10 }
  0x28   :  { %4061 = shalt.err (!%p4058_p0)
}
  0x29   :  { %98 = dma.hbm_to_vmem [thread:$0]  %s5508_s8, 1024, %s93_s21, [#allocation14], %s4195_s24, %s4195_s24, %s4196_s25  }
  0x2a   :  { %s4070_s5 = scalar_lea.vmem %s38_s3, 16  ;;  %s4074_s28 = scalar_lea.vmem %s38_s3, 32 }
  0x2b   :  { %p4071_p1 = scmp.ne.s32.totalorder %s38_s3, %s4070_s5  ;;  %p4075_p2 = scmp.lt.s32.totalorder %s38_s3, %s38_s3 }
  0x2c   :  { %p4076_p3 = scmp.lt.s32.totalorder %s4074_s28, %s4070_s5 }
  0x2e   :  { %p4077_p4 = por %p4076_p3, %p4075_p2 }
  0x30   :  { %p4078_p5 = pnand %p4077_p4, %p4071_p1 }
  0x32   :  { %4081 = shalt.err (!%p4078_p5)
}
  0x33   :  { %40 = dma.hbm_to_vmem [thread:$0]  %s5502_s2, 16, %s38_s3, [#allocation5]  }
  0x34   :  { %s4202_s0 = smov [#allocation9]   ;;  %s4203_s18 = smov [#allocation12]  }
  0x35   :  { %s59_s17 = sshll.u32 %s4202_s0, 4  ;;  %s81_s19 = sshll.u32 %s4203_s18, 4  ;;  %s60_s17 = int_to_ptr.vmem [resolvable:$true] %s59_s17  ;;  %s82_s19 = int_to_ptr.vmem [resolvable:$true] %s81_s19 }
  0x36   :  { %s4090_s20 = scalar_lea.vmem %s60_s17, 16  ;;  %s4094_s8 = scalar_lea.vmem %s60_s17, 32 }
  0x37   :  { %p4091_p6 = scmp.ne.s32.totalorder %s60_s17, %s4090_s20  ;;  %p4095_p7 = scmp.lt.s32.totalorder %s60_s17, %s60_s17 }
  0x38   :  { %p4096_p8 = scmp.lt.s32.totalorder %s4094_s8, %s4090_s20 }
  0x3a   :  { %p4097_p9 = por %p4096_p8, %p4095_p7 }
  0x3c   :  { %p4098_p10 = pnand %p4097_p9, %p4091_p6 }
  0x3e   :  { %4101 = shalt.err (!%p4098_p10)
}
  0x3f   :  { %62 = dma.hbm_to_vmem [thread:$0]  %s5504_s4, 16, %s60_s17, [#allocation8]  }
  0x40   :  { %s4110_s22 = scalar_lea.vmem %s82_s19, 48  ;;  %s4114_s2 = scalar_lea.vmem %s82_s19, 64 }
  0x41   :  { %p4111_p11 = scmp.ne.s32.totalorder %s82_s19, %s4110_s22  ;;  %p4115_p12 = scmp.lt.s32.totalorder %s82_s19, %s82_s19 }
  0x42   :  { %p4116_p13 = scmp.lt.s32.totalorder %s4114_s2, %s4110_s22 }
  0x44   :  { %p4117_p0 = por %p4116_p13, %p4115_p12 }
  0x46   :  { %p4118_p1 = pnand %p4117_p0, %p4111_p11 }
  0x48   :  { %4121 = shalt.err (!%p4118_p1)
}
  0x49   :  { %84 = dma.hbm_to_vmem [thread:$0]  %s5506_s6, 48, %s82_s19, [#allocation11]  }
  0x4a   :  { %s4204_s27 = smov [#allocation15]   ;;  %s4205_s28 = smov [#allocation16]  }
  0x4b   :  { %s110_s5 = sshll.u32 %s4204_s27, 4  ;;  %s124_s29 = sshll.u32 %s4205_s28, 4  ;;  %s111_s5 = int_to_ptr.vmem [resolvable:$true] %s110_s5  ;;  %s125_s29 = int_to_ptr.vmem [resolvable:$true] %s124_s29 }
  0x4c   :  { %s4130_s30 = scalar_lea.vmem %s111_s5, 512  ;;  %p4135_p3 = scmp.lt.s32.totalorder %s111_s5, %s111_s5 }
  0x4d   :  { %p4131_p2 = scmp.ne.s32.totalorder %s111_s5, %s4130_s30  ;;  %p4136_p4 = scmp.lt.s32.totalorder %s4130_s30, %s4130_s30 }
  0x4f   :  { %p4137_p5 = por %p4136_p4, %p4135_p3 }
  0x51   :  { %p4138_p6 = pnand %p4137_p5, %p4131_p2 }
  0x53   :  { %4141 = shalt.err (!%p4138_p6)
}
  0x54   :  { %116 = dma.hbm_to_vmem [thread:$0]  %s5512_s12, 512, %s111_s5, [#allocation14], %s4195_s24, %s4195_s24, %s4196_s25  }
  0x55   :  { %s4150_s6 = scalar_lea.vmem %s125_s29, 512  ;;  %p4155_p8 = scmp.lt.s32.totalorder %s125_s29, %s125_s29 }
  0x56   :  { %p4151_p7 = scmp.ne.s32.totalorder %s125_s29, %s4150_s6  ;;  %p4156_p9 = scmp.lt.s32.totalorder %s4150_s6, %s4150_s6 }
  0x58   :  { %p4157_p10 = por %p4156_p9, %p4155_p8 }
  0x5a   :  { %p4158_p11 = pnand %p4157_p10, %p4151_p7 }
  0x5c   :  { %4161 = shalt.err (!%p4158_p11)
}
  0x5d   :  { %130 = dma.hbm_to_vmem [thread:$0]  %s5514_s14, 512, %s125_s29, [#allocation17], %s4195_s24, %s4195_s24, %s4196_s25  }
  0x5e   :  { %4182 = dma.done.wait [#allocation5], 16  }
  0x5f   :  { %4183 = vsyncadd [#allocation5], 4294967280 }
  0x60   :  { %4184 = dma.done.wait [#allocation8], 1040  }
  0x61   :  { %4185 = vsyncadd [#allocation8], 4294966256 }
  0x62   :  { %4186 = dma.done.wait [#allocation11], 3120  }
  0x63   :  { %4187 = vsyncadd [#allocation11], 4294964176 }
  0x64   :  { %4188 = dma.done.wait [#allocation14], 1536  }
  0x65   :  { %4189 = vsyncadd [#allocation14], 4294965760 }
  0x66   :  { %4190 = dma.done.wait [#allocation17], 512  }
  0x67   :  { %4191 = vsyncadd [#allocation17], 4294966784  ;;  %v4206_v0 = vmov 0.0   ;;  %vm4207_vm0 = vmmov 0   ;;  %vm178_vm1 = vcmask 1043456   ;;  %s5519_s19 = sld [smem:[#allocation25_spill]] }
  0x68   :  { %3276 = vmatprep.subr.bf16.mxu0 %v4206_v0  ;;  %162 = vst [vmem:[#allocation3] sm:$0x1] %v4206_v0  ;;  %3278 = vmatprep.mubr.msk.bf16.mxu0 %vm4207_vm0, %v4206_v0  ;;  %v166_v1 = vld [vmem:[%s5501_s1] sm:$0xf]  ;;  %vm174_vm2 = vcmask 64512   ;;  %v3705_v7 = vld [vmem:[#allocation7 + $0x30] sm:$0xff]  }
  0x69   :  { %3282 = vmatprep.subr.bf16.mxu1 %v4206_v0  ;;  %3298 = vmatprep.mubr.msk.bf16.mxu1 %vm4207_vm0, %v4206_v0  ;;  %v180_v4 = vsel %vm178_vm1, %v166_v1, 0  ;;  %v3704_v6 = vld [vmem:[#allocation7 + $0x38] sm:$0xff]   ;;  %v3706_v8 = vld [vmem:[#allocation7 + $0x28] sm:$0xff]   ;;  %v3707_v9 = vld [vmem:[#allocation7 + $0x20] sm:$0xff]   ;;  %v4208_v49 = vmov 0   ;;  %vm2684_vm3 = vcmask 1040384  }
  0x6a   :  { %3277 = vmatpush3.bf16.msra.mxu0 %v180_v4  ;;  %3283 = vmatpush3.bf16.msra.mxu1 %v3704_v6  ;;  %v3708_v10 = vld [vmem:[#allocation7 + $0x18] sm:$0xff]   ;;  %v3709_v11 = vld [vmem:[#allocation7 + $0x10] sm:$0xff]   ;;  %v3710_v12 = vld [vmem:[#allocation7 + $0x8] sm:$0xff]   ;;  %vm2686_vm4 = vcmask 1041408   ;;  %vm2688_vm5 = vcmask 1042432   ;;  %vm2691_vm6 = vcmask 1044480  }
  0x6b   :  { %3284 = vmatprep.subr.bf16.mxu1 %v4206_v0  ;;  %v3711_v13 = vld [vmem:[#allocation7] sm:$0xff]   ;;  %v3712_v14 = vld [vmem:[#allocation10 + $0xa8] ss:$12 sps:$4 sm:$0xff]   ;;  %v3714_v15 = vld [vmem:[#allocation10 + $0xac] ss:$12 sps:$4 sm:$0xff]   ;;  %vm2693_vm7 = vcmask 1045504  }
  0x6c   :  { %v3718_v16 = vld [vmem:[#allocation10 + $0x94] ss:$12 sps:$4 sm:$0xff]   ;;  %518 = vmatprep.subr.bf16.mxu0 %v3714_v15  ;;  %v3716_v17 = vld [vmem:[#allocation10 + $0x90] ss:$12 sps:$4 sm:$0xff]   ;;  %v3720_v19 = vld [vmem:[#allocation10 + $0x78] ss:$12 sps:$4 sm:$0xff]  }
  0x6d   :  { %v163_v2 = vld [vmem:[%s5519_s19] sm:$0xff]  ;;  %v164_v3 = vld [vmem:[%s5519_s19 + $0x8] sm:$0xff]  ;;  %v4370_v48 = vld [vmem:[%s5507_s7 + $0x74] ss:$8 sps:$4 sm:$0xff]   ;;  %vm2695_vm8 = vcmask 1046528   ;;  %vm2835_vm9 = vcmask 523264  }
  0x6e   :  { %v165_v5 = vpack.c.bf16 %v164_v3, %v163_v2  ;;  %3285 = vmatpush3.bf16.msra.mxu1 %v3705_v7  ;;  %v3722_v18 = vld [vmem:[#allocation10 + $0x7c] ss:$12 sps:$4 sm:$0xff]   ;;  %v3726_v20 = vld [vmem:[#allocation10 + $0x64] ss:$12 sps:$4 sm:$0xff]   ;;  %v3724_v21 = vld [vmem:[#allocation10 + $0x60] ss:$12 sps:$4 sm:$0xff]  }
  0x6f   :  { %3286 = vmatprep.subr.bf16.mxu1 %v4206_v0  ;;  %v3730_v22 = vld [vmem:[#allocation10 + $0x4c] ss:$12 sps:$4 sm:$0xff]   ;;  %v3728_v23 = vld [vmem:[#allocation10 + $0x48] ss:$12 sps:$4 sm:$0xff]   ;;  %v3732_v25 = vld [vmem:[#allocation10 + $0x30] ss:$12 sps:$4 sm:$0xff]  }
  0x70   :  { %3279 = vmatmul.mubr.msk.bf16.vlgmr.msra.gmra.mxu0 %vm174_vm2, %v165_v5  ;;  %v3734_v24 = vld [vmem:[#allocation10 + $0x34] ss:$12 sps:$4 sm:$0xff]   ;;  %v2981_v26 = vld [vmem:[#allocation4] ss:$0 sm:$0xff]  ;;  %v3719_v37 = vld [vmem:[#allocation10 + $0x98] ss:$12 sps:$4 sm:$0xff]  }
  0x71   :  { %519 = vmatpush1.bf16.msra.mxu0 %v3712_v14  ;;  %v3715_v35 = vld [vmem:[#allocation10 + $0xb0] ss:$12 sps:$4 sm:$0xff]   ;;  %v3723_v38 = vld [vmem:[#allocation10 + $0x80] ss:$12 sps:$4 sm:$0xff]   ;;  %v3727_v39 = vld [vmem:[#allocation10 + $0x68] ss:$12 sps:$4 sm:$0xff]   ;;  %550 = vmatprep.mubr.bf16.mxu0 %v4208_v49 }
  0x72   :  { %3287 = vmatpush3.bf16.msra.mxu1 %v3706_v8  ;;  %520 = vmatprep.subr.bf16.mxu0 %v3718_v16  ;;  %v3731_v40 = vld [vmem:[#allocation10 + $0x50] ss:$12 sps:$4 sm:$0xff]   ;;  %v3735_v41 = vld [vmem:[#allocation10 + $0x38] ss:$12 sps:$4 sm:$0xff]   ;;  %v3739_v44 = vld [vmem:[#allocation10 + $0x20] ss:$12 sps:$4 sm:$0xff]  }
  0x73   :  { %3288 = vmatprep.subr.bf16.mxu1 %v4206_v0  ;;  %v3738_v42 = vld [vmem:[#allocation10 + $0x1c] ss:$12 sps:$4 sm:$0xff]   ;;  %v3736_v43 = vld [vmem:[#allocation10 + $0x18] ss:$12 sps:$4 sm:$0xff]   ;;  %v3740_v46 = vld [vmem:[#allocation10] ss:$12 sps:$4 sm:$0xff]  }
  0x74   :  { %v3742_v45 = vld [vmem:[#allocation10 + $0x4] ss:$12 sps:$4 sm:$0xff]   ;;  %v3743_v47 = vld [vmem:[#allocation10 + $0x8] ss:$12 sps:$4 sm:$0xff]   ;;  %v2983_v50 = vld [vmem:[#allocation9] ss:$0 sm:$0xff] }
  0x75   :  { %521 = vmatpush1.bf16.msra.mxu0 %v3716_v17  ;;  %v4378_v59 = vld [vmem:[%s5507_s7 + $0x70] ss:$8 sps:$4 sm:$0xff]   ;;  %v4380_v60 = vld [vmem:[#allocation13 + $0x38] sm:$0xff]   ;;  %v4400_v2 = vld [vmem:[%s5507_s7 + $0x54] ss:$8 sps:$4 sm:$0xff]   ;;  %s4209_s1 = smov [#allocation18]  }
  0x76   :  { %3289 = vmatpush3.bf16.msra.mxu1 %v3707_v9  ;;  %522 = vmatprep.subr.bf16.mxu0 %v3722_v18  ;;  %v4385_v62 = vld [vmem:[%s5507_s7 + $0x64] ss:$8 sps:$4 sm:$0xff]   ;;  %v4391_v63 = vld [vmem:[%s5507_s7 + $0x60] ss:$8 sps:$4 sm:$0xff]   ;;  %v4410_v3 = vld [vmem:[%s5507_s7 + $0x50] ss:$8 sps:$4 sm:$0xff]  }
  0x77   :  { %3290 = vmatprep.subr.bf16.mxu1 %v4206_v0  ;;  %v4394_v1 = vld [vmem:[#allocation13 + $0x30] sm:$0xff]   ;;  %v4413_v4 = vld [vmem:[#allocation13 + $0x28] sm:$0xff]   ;;  %v4419_v5 = vld [vmem:[%s5507_s7 + $0x44] ss:$8 sps:$4 sm:$0xff]   ;;  %s2965_s21 = sshll.u32 %s4209_s1, 4  ;;  %s2966_s21 = int_to_ptr.vmem [resolvable:$true] %s2965_s21 }
  0x78   :  { %v4426_v6 = vld [vmem:[%s5507_s7 + $0x40] ss:$8 sps:$4 sm:$0xff]   ;;  %v4435_v8 = vld [vmem:[%s5507_s7 + $0x34] ss:$8 sps:$4 sm:$0xff]   ;;  %v4442_v9 = vld [vmem:[%s5507_s7 + $0x30] ss:$8 sps:$4 sm:$0xff]   ;;  %p4167_p13 = scmp.lt.s32.totalorder %s2966_s21, %s2966_s21 }
  0x79   :  { %523 = vmatpush1.bf16.msra.mxu0 %v3720_v19  ;;  %v4429_v7 = vld [vmem:[#allocation13 + $0x20] sm:$0xff]   ;;  %v4467_v14 = vld [vmem:[%s5507_s7 + $0x14] ss:$8 sps:$4 sm:$0xff]   ;;  %v4492_v19 = vld [vmem:[#allocation3] sm:$0x1] }
  0x7a   :  { %3291 = vmatpush3.bf16.msra.mxu1 %v3708_v10  ;;  %524 = vmatprep.subr.bf16.mxu0 %v3726_v20  ;;  %v4445_v10 = vld [vmem:[#allocation13 + $0x18] sm:$0xff]   ;;  %v4474_v15 = vld [vmem:[%s5507_s7 + $0x10] ss:$8 sps:$4 sm:$0xff]  }
  0x7b   :  { %3292 = vmatprep.subr.bf16.mxu1 %v4206_v0  ;;  %v4477_v16 = vld [vmem:[#allocation13 + $0x8] sm:$0xff]   ;;  %v4483_v17 = vld [vmem:[%s5507_s7 + $0x4] ss:$8 sps:$4 sm:$0xff]   ;;  %v4490_v18 = vld [vmem:[%s5507_s7] ss:$8 sps:$4 sm:$0xff]  }
  0x7c   :  { %v4495_v20 = vld [vmem:[#allocation13] sm:$0xff]  }
  0x7d   :  { %525 = vmatpush1.bf16.msra.mxu0 %v3724_v21  ;;  %v686_v21 = vpack.c.bf16 %v4492_v19, %v4492_v19 }
  0x7e   :  { %3293 = vmatpush3.bf16.msra.mxu1 %v3709_v11  ;;  %526 = vmatprep.subr.bf16.mxu0 %v3730_v22  ;;  %v4451_v11 = vld [vmem:[%s5507_s7 + $0x24] ss:$8 sps:$4 sm:$0xff]   ;;  %v375_v22 = vlaneseq }
  0x7f   :  { %3294 = vmatprep.subr.bf16.mxu1 %v4206_v0 }
  0x81   :  { %527 = vmatpush1.bf16.msra.mxu0 %v3728_v23  ;;  %v376_v23 = vshrl.u32 %v375_v22, 7  ;;  %v4555_v22 = vld [vmem:[%s5509_s9] sm:$0x1] }
  0x82   :  { %3295 = vmatpush3.bf16.msra.mxu1 %v3710_v12  ;;  %528 = vmatprep.subr.bf16.mxu0 %v3734_v24  ;;  %v4458_v12 = vld [vmem:[%s5507_s7 + $0x20] ss:$8 sps:$4 sm:$0xff]  }
  0x83   :  { %3296 = vmatprep.subr.bf16.mxu1 %v4206_v0  ;;  %v377_v24 = vsub.s32 0, %v376_v23 }
  0x85   :  { %529 = vmatpush1.bf16.msra.mxu0 %v3732_v25  ;;  %v385_v25 = vsub.s32 2, %v376_v23 }
  0x86   :  { %3297 = vmatpush3.bf16.msra.mxu1 %v3711_v13  ;;  %530 = vmatprep.subr.bf16.mxu0 %v3738_v42  ;;  %v4461_v13 = vld [vmem:[#allocation13 + $0x10] sm:$0xff]  }
  0x87   :  { %3302 = vmatprep.subr.bf16.mxu1 %v4206_v0 }
  0x89   :  { %531 = vmatpush1.bf16.msra.mxu0 %v3736_v43 }
  0x8a   :  { %532 = vmatprep.subr.bf16.mxu0 %v3742_v45 }
  0x8d   :  { %533 = vmatpush1.bf16.msra.mxu0 %v3740_v46 }
  0x8e   :  { %767 = vmatprep.subr.bf16.mxu0 %v4370_v48 }
 0x130   :  { %v216_v27 = vpop.f32.mrf.mxu0 }
 0x131   :  { %v217_v29 = vadd.f32 %v2981_v26, %v216_v27 }
 0x132   :  { %v3280_v28 = vpop.f32.mrf.mxu0 }
 0x133   :  { %v223_v33 = vmax.f32 %v217_v29, 0.0  ;;  %v381_v29 = vsub.s32 1, %v376_v23 }
 0x134   :  { %v219_v30 = vpop.f32.mrf.mxu0 }
 0x135   :  { %v220_v31 = vadd.f32 %v2981_v26, %v219_v30  ;;  %v373_v26 = vld [vmem:[#allocation12] sm:$0x7] }
 0x136   :  { %v3281_v32 = vpop.f32.mrf.mxu0 }
 0x137   :  { %v224_v34 = vmax.f32 %v220_v31, 0.0  ;;  %v378_v32 = vrot.slane %v373_v26, %v377_v24 }
 0x139   :  { %v225_v36 = vpack.c.bf16 %v224_v34, %v223_v33  ;;  %v386_v33 = vrot.slane %v373_v26, %v385_v25 }
 0x13b   :  { %3299 = vmatmul.mubr.bf16.vlgmr.msra.gmra.mxu1 %v225_v36  ;;  %v382_v36 = vrot.slane %v373_v26, %v381_v29 }
 0x13c   :  { %3303 = vmatpush3.bf16.msra.mxu1 %v3715_v35  ;;  %3318 = vmatprep.mubr.msk.bf16.mxu1 %vm4207_vm0, %v4206_v0 }
 0x13d   :  { %3304 = vmatprep.subr.bf16.mxu1 %v4206_v0 }
 0x140   :  { %3305 = vmatpush3.bf16.msra.mxu1 %v3719_v37 }
 0x141   :  { %3306 = vmatprep.subr.bf16.mxu1 %v4206_v0 }
 0x144   :  { %3307 = vmatpush3.bf16.msra.mxu1 %v3723_v38 }
 0x145   :  { %3308 = vmatprep.subr.bf16.mxu1 %v4206_v0 }
 0x148   :  { %3309 = vmatpush3.bf16.msra.mxu1 %v3727_v39 }
 0x149   :  { %3310 = vmatprep.subr.bf16.mxu1 %v4206_v0 }
 0x14c   :  { %3311 = vmatpush3.bf16.msra.mxu1 %v3731_v40 }
 0x14d   :  { %3312 = vmatprep.subr.bf16.mxu1 %v4206_v0 }
 0x150   :  { %3313 = vmatpush3.bf16.msra.mxu1 %v3735_v41 }
 0x151   :  { %3314 = vmatprep.subr.bf16.mxu1 %v4206_v0 }
 0x154   :  { %3315 = vmatpush3.bf16.msra.mxu1 %v3739_v44 }
 0x155   :  { %3316 = vmatprep.subr.bf16.mxu1 %v4206_v0 }
 0x158   :  { %3317 = vmatpush3.bf16.msra.mxu1 %v3743_v47 }
 0x159   :  { %3322 = vmatprep.subr.bf16.mxu1 %v4206_v0 }
 0x1fb   :  { %v331_v51 = vpop.f32.mrf.mxu1 }
 0x1fc   :  { %v332_v53 = vadd.f32 %v2983_v50, %v331_v51 }
 0x1fd   :  { %v3300_v52 = vpop.f32.mrf.mxu1 }
 0x1fe   :  { %v338_v57 = vmax.f32 %v332_v53, 0.0 }
 0x1ff   :  { %v334_v54 = vpop.f32.mrf.mxu1 }
 0x200   :  { %v335_v55 = vadd.f32 %v2983_v50, %v334_v54 }
 0x201   :  { %v3301_v56 = vpop.f32.mrf.mxu1 }
 0x202   :  { %v339_v58 = vmax.f32 %v335_v55, 0.0 }
 0x204   :  { %v340_v61 = vpack.c.bf16 %v339_v58, %v338_v57 }
 0x206   :  { %551 = vmatmul.mubr.bf16.vlgmr.msra.gmra.mxu0 %v340_v61  ;;  %3319 = vmatmul.mubr.bf16.vlgmr.msra.gmra.mxu1 %v340_v61 }
 0x207   :  { %768 = vmatpush1.bf16.msra.mxu0 %v4378_v59  ;;  %3323 = vmatpush3.bf16.msra.mxu1 %v4380_v60 }
 0x208   :  { %769 = vmatprep.subr.bf16.mxu0 %v4385_v62  ;;  %3324 = vmatprep.subr.bf16.mxu1 %v4206_v0 }
 0x209   :  { %799 = vmatprep.mubr.bf16.mxu0 %v4208_v49  ;;  %3338 = vmatprep.mubr.msk.bf16.mxu1 %vm4207_vm0, %v4206_v0 }
 0x20b   :  { %770 = vmatpush1.bf16.msra.mxu0 %v4391_v63  ;;  %3325 = vmatpush3.bf16.msra.mxu1 %v4394_v1 }
 0x20c   :  { %771 = vmatprep.subr.bf16.mxu0 %v4400_v2  ;;  %3326 = vmatprep.subr.bf16.mxu1 %v4206_v0 }
 0x20f   :  { %772 = vmatpush1.bf16.msra.mxu0 %v4410_v3  ;;  %3327 = vmatpush3.bf16.msra.mxu1 %v4413_v4 }
 0x210   :  { %773 = vmatprep.subr.bf16.mxu0 %v4419_v5  ;;  %3328 = vmatprep.subr.bf16.mxu1 %v4206_v0 }
 0x213   :  { %774 = vmatpush1.bf16.msra.mxu0 %v4426_v6  ;;  %3329 = vmatpush3.bf16.msra.mxu1 %v4429_v7 }
 0x214   :  { %775 = vmatprep.subr.bf16.mxu0 %v4435_v8  ;;  %3330 = vmatprep.subr.bf16.mxu1 %v4206_v0 }
 0x217   :  { %776 = vmatpush1.bf16.msra.mxu0 %v4442_v9  ;;  %3331 = vmatpush3.bf16.msra.mxu1 %v4445_v10 }
 0x218   :  { %777 = vmatprep.subr.bf16.mxu0 %v4451_v11  ;;  %3332 = vmatprep.subr.bf16.mxu1 %v4206_v0 }
 0x21b   :  { %778 = vmatpush1.bf16.msra.mxu0 %v4458_v12  ;;  %3333 = vmatpush3.bf16.msra.mxu1 %v4461_v13 }
 0x21c   :  { %779 = vmatprep.subr.bf16.mxu0 %v4467_v14  ;;  %3334 = vmatprep.subr.bf16.mxu1 %v4206_v0 }
 0x21f   :  { %780 = vmatpush1.bf16.msra.mxu0 %v4474_v15  ;;  %3335 = vmatpush3.bf16.msra.mxu1 %v4477_v16 }
 0x220   :  { %781 = vmatprep.subr.bf16.mxu0 %v4483_v17  ;;  %3336 = vmatprep.subr.bf16.mxu1 %v4206_v0 }
 0x223   :  { %782 = vmatpush1.bf16.msra.mxu0 %v4490_v18  ;;  %3337 = vmatpush3.bf16.msra.mxu1 %v4495_v20 }
 0x224   :  { %918 = vmatprep.subr.bf16.mxu0 %v4370_v48  ;;  %3342 = vmatprep.subr.bf16.mxu1 %v4206_v0 }
 0x226   :  { %800 = vmatmul.mubr.bf16.vlgmr.msra.gmra.mxu0 %v686_v21  ;;  %3339 = vmatmul.mubr.bf16.vlgmr.msra.gmra.mxu1 %v686_v21 }
 0x227   :  { %919 = vmatpush1.bf16.msra.mxu0 %v4378_v59  ;;  %3343 = vmatpush3.bf16.msra.mxu1 %v4380_v60 }
 0x228   :  { %920 = vmatprep.subr.bf16.mxu0 %v4385_v62  ;;  %3344 = vmatprep.subr.bf16.mxu1 %v4206_v0 }
 0x229   :  { %950 = vmatprep.mubr.bf16.mxu0 %v4208_v49  ;;  %3358 = vmatprep.mubr.msk.bf16.mxu1 %vm4207_vm0, %v4206_v0 }
 0x22b   :  { %921 = vmatpush1.bf16.msra.mxu0 %v4391_v63  ;;  %3345 = vmatpush3.bf16.msra.mxu1 %v4394_v1 }
 0x22c   :  { %922 = vmatprep.subr.bf16.mxu0 %v4400_v2  ;;  %3346 = vmatprep.subr.bf16.mxu1 %v4206_v0 }
 0x22f   :  { %923 = vmatpush1.bf16.msra.mxu0 %v4410_v3  ;;  %3347 = vmatpush3.bf16.msra.mxu1 %v4413_v4 }
 0x230   :  { %924 = vmatprep.subr.bf16.mxu0 %v4419_v5  ;;  %3348 = vmatprep.subr.bf16.mxu1 %v4206_v0 }
 0x233   :  { %925 = vmatpush1.bf16.msra.mxu0 %v4426_v6  ;;  %3349 = vmatpush3.bf16.msra.mxu1 %v4429_v7 }
 0x234   :  { %926 = vmatprep.subr.bf16.mxu0 %v4435_v8  ;;  %3350 = vmatprep.subr.bf16.mxu1 %v4206_v0 }
 0x237   :  { %927 = vmatpush1.bf16.msra.mxu0 %v4442_v9  ;;  %3351 = vmatpush3.bf16.msra.mxu1 %v4445_v10 }
 0x238   :  { %928 = vmatprep.subr.bf16.mxu0 %v4451_v11  ;;  %3352 = vmatprep.subr.bf16.mxu1 %v4206_v0 }
 0x23b   :  { %929 = vmatpush1.bf16.msra.mxu0 %v4458_v12  ;;  %3353 = vmatpush3.bf16.msra.mxu1 %v4461_v13 }
 0x23c   :  { %930 = vmatprep.subr.bf16.mxu0 %v4467_v14  ;;  %3354 = vmatprep.subr.bf16.mxu1 %v4206_v0 }
 0x23f   :  { %931 = vmatpush1.bf16.msra.mxu0 %v4474_v15  ;;  %3355 = vmatpush3.bf16.msra.mxu1 %v4477_v16 }
 0x240   :  { %932 = vmatprep.subr.bf16.mxu0 %v4483_v17  ;;  %3356 = vmatprep.subr.bf16.mxu1 %v4206_v0 }
 0x243   :  { %933 = vmatpush1.bf16.msra.mxu0 %v4490_v18  ;;  %3357 = vmatpush3.bf16.msra.mxu1 %v4495_v20 }
 0x244   :  { %1037 = vmatprep.subr.bf16.mxu0 %v4370_v48  ;;  %3362 = vmatprep.subr.bf16.mxu1 %v4206_v0 }
 0x2c6   :  { %v552_v27 = vpop.f32.mrf.mxu0  ;;  %v595_v28 = vpop.f32.mrf.mxu1 }
 0x2c7   :  { %v4546_v42 = vadd.f32 %v552_v27, %v378_v32  ;;  %v4558_v26 = vadd.f32 %v595_v28, %v386_v33 }
 0x2c8   :  { %v554_v30 = vpop.f32.mrf.mxu0  ;;  %v3320_v31 = vpop.f32.mrf.mxu1 }
 0x2c9   :  { %v4549_v53 = vadd.f32 %v554_v30, %v382_v36 }
 0x2ca   :  { %v556_v34 = vpop.f32.mrf.mxu0  ;;  %v598_v35 = vpop.f32.mrf.mxu1 }
 0x2cb   :  { %v4540_v37 = vadd.f32 %v556_v34, %v378_v32  ;;  %v4542_v38 = vadd.f32 %v598_v35, %v386_v33 }
 0x2cc   :  { %v558_v39 = vpop.f32.mrf.mxu0  ;;  %v3321_v40 = vpop.f32.mrf.mxu1 }
 0x2cd   :  { %v4544_v41 = vadd.f32 %v558_v39, %v382_v36 }
 0x2e6   :  { %v801_v43 = vpop.f32.mrf.mxu0  ;;  %v904_v44 = vpop.f32.mrf.mxu1 }
 0x2e7   :  { %v808_v45 = vadd.f32 %v801_v43, %v4546_v42  ;;  %v905_v24 = vadd.f32 %v904_v44, %v4555_v22 }
 0x2e8   :  { %v803_v46 = vpop.f32.mrf.mxu0  ;;  %v3340_v47 = vpop.f32.mrf.mxu1 }
 0x2e9   :  { %v3032_v50 = vmul.f32 -1.442695, %v808_v45  ;;  %v809_v56 = vadd.f32 %v803_v46, %v4549_v53 }
 0x2ea   :  { %v805_v51 = vpop.f32.mrf.mxu0  ;;  %v907_v52 = vpop.f32.mrf.mxu1 }
 0x2eb   :  { %3792 = vpow2.f32 %v3032_v50  ;;  %v3033_v57 = vmul.f32 -1.442695, %v809_v56 }
 0x2ec   :  { %v806_v54 = vpop.f32.mrf.mxu0  ;;  %v3341_v55 = vpop.f32.mrf.mxu1 }
 0x2ed   :  { %3794 = vpow2.f32 %v3033_v57 }
 0x2f8   :  { %v3793_v58 = vpop.eup %3792 }
 0x2f9   :  { %v816_v61 = vadd.f32 1.0, %v3793_v58 }
 0x2fa   :  { %v3795_v21 = vpop.eup %3794 }
 0x2fb   :  { %3796 = vrcp.f32 %v816_v61  ;;  %v817_v23 = vadd.f32 1.0, %v3795_v21 }
 0x2fd   :  { %3798 = vrcp.f32 %v817_v23 }
 0x308   :  { %v3797_v25 = vpop.eup %3796 }
 0x309   :  { %v910_v27 = vmul.f32 %v3797_v25, %v905_v24 }
 0x30a   :  { %v3799_v30 = vpop.eup %3798 }
 0x30b   :  { %v911_v29 = vadd.f32 %v910_v27, %v4558_v26  ;;  %v913_v31 = vsub.f32 1.0, %v3799_v30  ;;  %v915_v35 = vmul.f32 %v3799_v30, %v4492_v19 }
 0x30d   :  { %3800 = vtanh.f32 %v911_v29 }
 0x31a   :  { %v3801_v32 = vpop.eup %3800 }
 0x31b   :  { %v914_v34 = vmul.f32 %v3801_v32, %v913_v31 }
 0x31d   :  { %v4562_v36 = vadd.f32 %v915_v35, %v914_v34 }
 0x31f   :  { %v917_v39 = vpack.c.bf16 %v4562_v36, %v4562_v36  ;;  %v1028_v31 = vrot.slane %v4562_v36, 7 }
 0x321   :  { %951 = vmatmul.mubr.bf16.vlgmr.msra.gmra.mxu0 %v917_v39  ;;  %3359 = vmatmul.mubr.bf16.vlgmr.msra.gmra.mxu1 %v917_v39 }
 0x322   :  { %1038 = vmatpush1.bf16.msra.mxu0 %v4378_v59  ;;  %3363 = vmatpush3.bf16.msra.mxu1 %v4380_v60 }
 0x323   :  { %1039 = vmatprep.subr.bf16.mxu0 %v4385_v62  ;;  %3364 = vmatprep.subr.bf16.mxu1 %v4206_v0 }
 0x324   :  { %1069 = vmatprep.mubr.bf16.mxu0 %v4208_v49  ;;  %3378 = vmatprep.mubr.msk.bf16.mxu1 %vm4207_vm0, %v4206_v0 }
 0x326   :  { %1040 = vmatpush1.bf16.msra.mxu0 %v4391_v63  ;;  %3365 = vmatpush3.bf16.msra.mxu1 %v4394_v1 }
 0x327   :  { %1041 = vmatprep.subr.bf16.mxu0 %v4400_v2  ;;  %3366 = vmatprep.subr.bf16.mxu1 %v4206_v0 }
 0x32a   :  { %1042 = vmatpush1.bf16.msra.mxu0 %v4410_v3  ;;  %3367 = vmatpush3.bf16.msra.mxu1 %v4413_v4 }
 0x32b   :  { %1043 = vmatprep.subr.bf16.mxu0 %v4419_v5  ;;  %3368 = vmatprep.subr.bf16.mxu1 %v4206_v0 }
 0x32e   :  { %1044 = vmatpush1.bf16.msra.mxu0 %v4426_v6  ;;  %3369 = vmatpush3.bf16.msra.mxu1 %v4429_v7 }
 0x32f   :  { %1045 = vmatprep.subr.bf16.mxu0 %v4435_v8  ;;  %3370 = vmatprep.subr.bf16.mxu1 %v4206_v0 }
 0x332   :  { %1046 = vmatpush1.bf16.msra.mxu0 %v4442_v9  ;;  %3371 = vmatpush3.bf16.msra.mxu1 %v4445_v10 }
 0x333   :  { %1047 = vmatprep.subr.bf16.mxu0 %v4451_v11  ;;  %3372 = vmatprep.subr.bf16.mxu1 %v4206_v0 }
 0x336   :  { %1048 = vmatpush1.bf16.msra.mxu0 %v4458_v12  ;;  %3373 = vmatpush3.bf16.msra.mxu1 %v4461_v13 }
 0x337   :  { %1049 = vmatprep.subr.bf16.mxu0 %v4467_v14  ;;  %3374 = vmatprep.subr.bf16.mxu1 %v4206_v0 }
 0x33a   :  { %1050 = vmatpush1.bf16.msra.mxu0 %v4474_v15  ;;  %3375 = vmatpush3.bf16.msra.mxu1 %v4477_v16 }
 0x33b   :  { %1051 = vmatprep.subr.bf16.mxu0 %v4483_v17  ;;  %3376 = vmatprep.subr.bf16.mxu1 %v4206_v0 }
 0x33e   :  { %1052 = vmatpush1.bf16.msra.mxu0 %v4490_v18  ;;  %3377 = vmatpush3.bf16.msra.mxu1 %v4495_v20 }
 0x33f   :  { %1155 = vmatprep.subr.bf16.mxu0 %v4370_v48  ;;  %3382 = vmatprep.subr.bf16.mxu1 %v4206_v0 }
 0x3e1   :  { %v952_v19 = vpop.f32.mrf.mxu0  ;;  %v1013_v28 = vpop.f32.mrf.mxu1 }
 0x3e2   :  { %v961_v33 = vrot.slane %v952_v19, 7  ;;  %v1014_v61 = vadd.f32 %v1013_v28, %v4555_v22 }
 0x3e3   :  { %v954_v40 = vpop.f32.mrf.mxu0  ;;  %v3360_v43 = vpop.f32.mrf.mxu1 }
 0x3e4   :  { %v965_v44 = vadd.f32 %v961_v33, %v4546_v42  ;;  %v962_v50 = vrot.slane %v954_v40, 7  ;;  %v1020_v23 = vrot.slane %v1014_v61, 7 }
 0x3e5   :  { %v956_v45 = vpop.f32.mrf.mxu0  ;;  %v1016_v46 = vpop.f32.mrf.mxu1 }
 0x3e6   :  { %v3042_v47 = vmul.f32 -1.442695, %v965_v44  ;;  %v966_v54 = vadd.f32 %v962_v50, %v4549_v53 }
 0x3e7   :  { %v957_v51 = vpop.f32.mrf.mxu0  ;;  %v3361_v52 = vpop.f32.mrf.mxu1 }
 0x3e8   :  { %3802 = vpow2.f32 %v3042_v47  ;;  %v3043_v55 = vmul.f32 -1.442695, %v966_v54 }
 0x3ea   :  { %3804 = vpow2.f32 %v3043_v55 }
 0x3f5   :  { %v3803_v56 = vpop.eup %3802 }
 0x3f6   :  { %v973_v57 = vadd.f32 1.0, %v3803_v56 }
 0x3f7   :  { %v3805_v58 = vpop.eup %3804 }
 0x3f8   :  { %3806 = vrcp.f32 %v973_v57  ;;  %v974_v21 = vadd.f32 1.0, %v3805_v58 }
 0x3fa   :  { %3808 = vrcp.f32 %v974_v21 }
 0x405   :  { %v3807_v24 = vpop.eup %3806 }
 0x406   :  { %v1022_v25 = vmul.f32 %v3807_v24, %v1020_v23 }
 0x407   :  { %v3809_v29 = vpop.eup %3808 }
 0x408   :  { %v1023_v27 = vadd.f32 %v1022_v25, %v4558_v26  ;;  %v1025_v30 = vsub.f32 1.0, %v3809_v29  ;;  %v1030_v35 = vmul.f32 %v3809_v29, %v1028_v31 }
 0x40a   :  { %3810 = vtanh.f32 %v1023_v27 }
 0x417   :  { %v3811_v32 = vpop.eup %3810 }
 0x418   :  { %v1026_v34 = vmul.f32 %v3811_v32, %v1025_v30 }
 0x41a   :  { %v4606_v39 = vadd.f32 %v1030_v35, %v1026_v34 }
 0x41c   :  { %v1032_v19 = vpack.c.bf16 %v4606_v39, %v4606_v39  ;;  %v1147_v34 = vrot.slane %v4606_v39, 7 }
 0x41e   :  { %v1034_v28 = vshrl.u32 %v1032_v19, 16 }
 0x420   :  { %1070 = vmatmul.mubr.bf16.vlgmr.msra.gmra.mxu0 %v1034_v28  ;;  %3379 = vmatmul.mubr.bf16.vlgmr.msra.gmra.mxu1 %v1034_v28 }
 0x421   :  { %1156 = vmatpush1.bf16.msra.mxu0 %v4378_v59  ;;  %3383 = vmatpush3.bf16.msra.mxu1 %v4380_v60 }
 0x422   :  { %1157 = vmatprep.subr.bf16.mxu0 %v4385_v62  ;;  %3384 = vmatprep.subr.bf16.mxu1 %v4206_v0 }
 0x423   :  { %1187 = vmatprep.mubr.bf16.mxu0 %v4208_v49  ;;  %3398 = vmatprep.mubr.msk.bf16.mxu1 %vm4207_vm0, %v4206_v0 }
 0x425   :  { %1158 = vmatpush1.bf16.msra.mxu0 %v4391_v63  ;;  %3385 = vmatpush3.bf16.msra.mxu1 %v4394_v1 }
 0x426   :  { %1159 = vmatprep.subr.bf16.mxu0 %v4400_v2  ;;  %3386 = vmatprep.subr.bf16.mxu1 %v4206_v0 }
 0x429   :  { %1160 = vmatpush1.bf16.msra.mxu0 %v4410_v3  ;;  %3387 = vmatpush3.bf16.msra.mxu1 %v4413_v4 }
 0x42a   :  { %1161 = vmatprep.subr.bf16.mxu0 %v4419_v5  ;;  %3388 = vmatprep.subr.bf16.mxu1 %v4206_v0 }
 0x42d   :  { %1162 = vmatpush1.bf16.msra.mxu0 %v4426_v6  ;;  %3389 = vmatpush3.bf16.msra.mxu1 %v4429_v7 }
 0x42e   :  { %1163 = vmatprep.subr.bf16.mxu0 %v4435_v8  ;;  %3390 = vmatprep.subr.bf16.mxu1 %v4206_v0 }
 0x431   :  { %1164 = vmatpush1.bf16.msra.mxu0 %v4442_v9  ;;  %3391 = vmatpush3.bf16.msra.mxu1 %v4445_v10 }
 0x432   :  { %1165 = vmatprep.subr.bf16.mxu0 %v4451_v11  ;;  %3392 = vmatprep.subr.bf16.mxu1 %v4206_v0 }
 0x435   :  { %1166 = vmatpush1.bf16.msra.mxu0 %v4458_v12  ;;  %3393 = vmatpush3.bf16.msra.mxu1 %v4461_v13 }
 0x436   :  { %1167 = vmatprep.subr.bf16.mxu0 %v4467_v14  ;;  %3394 = vmatprep.subr.bf16.mxu1 %v4206_v0 }
 0x439   :  { %1168 = vmatpush1.bf16.msra.mxu0 %v4474_v15  ;;  %3395 = vmatpush3.bf16.msra.mxu1 %v4477_v16 }
 0x43a   :  { %1169 = vmatprep.subr.bf16.mxu0 %v4483_v17  ;;  %3396 = vmatprep.subr.bf16.mxu1 %v4206_v0 }
 0x43d   :  { %1170 = vmatpush1.bf16.msra.mxu0 %v4490_v18  ;;  %3397 = vmatpush3.bf16.msra.mxu1 %v4495_v20 }
 0x43e   :  { %1275 = vmatprep.subr.bf16.mxu0 %v4370_v48  ;;  %3402 = vmatprep.subr.bf16.mxu1 %v4206_v0 }
 0x4e0   :  { %v1071_v33 = vpop.f32.mrf.mxu0  ;;  %v1132_v40 = vpop.f32.mrf.mxu1 }
 0x4e1   :  { %v1080_v43 = vrot.slane %v1071_v33, 6  ;;  %v1133_v23 = vadd.f32 %v1132_v40, %v4555_v22  ;;  %v2685_v40 = vsel %vm2684_vm3, %v4562_v36, %v4606_v39 }
 0x4e2   :  { %v1073_v44 = vpop.f32.mrf.mxu0  ;;  %v3380_v45 = vpop.f32.mrf.mxu1 }
 0x4e3   :  { %v1084_v46 = vadd.f32 %v1080_v43, %v4546_v42  ;;  %v1081_v52 = vrot.slane %v1073_v44, 6  ;;  %v1139_v25 = vrot.slane %v1133_v23, 6 }
 0x4e4   :  { %v1075_v47 = vpop.f32.mrf.mxu0  ;;  %v1135_v50 = vpop.f32.mrf.mxu1 }
 0x4e5   :  { %v3044_v51 = vmul.f32 -1.442695, %v1084_v46  ;;  %v1085_v56 = vadd.f32 %v1081_v52, %v4549_v53 }
 0x4e6   :  { %v1076_v54 = vpop.f32.mrf.mxu0  ;;  %v3381_v55 = vpop.f32.mrf.mxu1 }
 0x4e7   :  { %3812 = vpow2.f32 %v3044_v51  ;;  %v3045_v57 = vmul.f32 -1.442695, %v1085_v56 }
 0x4e9   :  { %3814 = vpow2.f32 %v3045_v57 }
 0x4f4   :  { %v3813_v58 = vpop.eup %3812 }
 0x4f5   :  { %v1092_v61 = vadd.f32 1.0, %v3813_v58 }
 0x4f6   :  { %v3815_v21 = vpop.eup %3814 }
 0x4f7   :  { %3816 = vrcp.f32 %v1092_v61  ;;  %v1093_v24 = vadd.f32 1.0, %v3815_v21 }
 0x4f9   :  { %3818 = vrcp.f32 %v1093_v24 }
 0x504   :  { %v3817_v27 = vpop.eup %3816 }
 0x505   :  { %v1141_v29 = vmul.f32 %v3817_v27, %v1139_v25 }
 0x506   :  { %v3819_v31 = vpop.eup %3818 }
 0x507   :  { %v1142_v30 = vadd.f32 %v1141_v29, %v4558_v26  ;;  %v1144_v32 = vsub.f32 1.0, %v3819_v31  ;;  %v1149_v28 = vmul.f32 %v3819_v31, %v1147_v34 }
 0x509   :  { %3820 = vtanh.f32 %v1142_v30 }
 0x516   :  { %v3821_v35 = vpop.eup %3820 }
 0x517   :  { %v1145_v19 = vmul.f32 %v3821_v35, %v1144_v32 }
 0x519   :  { %v4650_v33 = vadd.f32 %v1149_v28, %v1145_v19 }
 0x51b   :  { %v1151_v43 = vpack.c.bf16 %v4650_v33, %v4650_v33  ;;  %v4659_v44 = vsel %vm2686_vm4, %v2685_v40, %v4650_v33  ;;  %v1265_v28 = vrot.slane %v4650_v33, 7 }
 0x51d   :  { %v1153_v45 = vrot.slane %v1151_v43, 1 }
 0x51f   :  { %1188 = vmatmul.mubr.bf16.vlgmr.msra.gmra.mxu0 %v1153_v45  ;;  %3399 = vmatmul.mubr.bf16.vlgmr.msra.gmra.mxu1 %v1153_v45 }
 0x520   :  { %1276 = vmatpush1.bf16.msra.mxu0 %v4378_v59  ;;  %3403 = vmatpush3.bf16.msra.mxu1 %v4380_v60 }
 0x521   :  { %1277 = vmatprep.subr.bf16.mxu0 %v4385_v62  ;;  %3404 = vmatprep.subr.bf16.mxu1 %v4206_v0 }
 0x522   :  { %1307 = vmatprep.mubr.bf16.mxu0 %v4208_v49  ;;  %3418 = vmatprep.mubr.msk.bf16.mxu1 %vm4207_vm0, %v4206_v0 }
 0x524   :  { %1278 = vmatpush1.bf16.msra.mxu0 %v4391_v63  ;;  %3405 = vmatpush3.bf16.msra.mxu1 %v4394_v1 }
 0x525   :  { %1279 = vmatprep.subr.bf16.mxu0 %v4400_v2  ;;  %3406 = vmatprep.subr.bf16.mxu1 %v4206_v0 }
 0x528   :  { %1280 = vmatpush1.bf16.msra.mxu0 %v4410_v3  ;;  %3407 = vmatpush3.bf16.msra.mxu1 %v4413_v4 }
 0x529   :  { %1281 = vmatprep.subr.bf16.mxu0 %v4419_v5  ;;  %3408 = vmatprep.subr.bf16.mxu1 %v4206_v0 }
 0x52c   :  { %1282 = vmatpush1.bf16.msra.mxu0 %v4426_v6  ;;  %3409 = vmatpush3.bf16.msra.mxu1 %v4429_v7 }
 0x52d   :  { %1283 = vmatprep.subr.bf16.mxu0 %v4435_v8  ;;  %3410 = vmatprep.subr.bf16.mxu1 %v4206_v0 }
 0x530   :  { %1284 = vmatpush1.bf16.msra.mxu0 %v4442_v9  ;;  %3411 = vmatpush3.bf16.msra.mxu1 %v4445_v10 }
 0x531   :  { %1285 = vmatprep.subr.bf16.mxu0 %v4451_v11  ;;  %3412 = vmatprep.subr.bf16.mxu1 %v4206_v0 }
 0x534   :  { %1286 = vmatpush1.bf16.msra.mxu0 %v4458_v12  ;;  %3413 = vmatpush3.bf16.msra.mxu1 %v4461_v13 }
 0x535   :  { %1287 = vmatprep.subr.bf16.mxu0 %v4467_v14  ;;  %3414 = vmatprep.subr.bf16.mxu1 %v4206_v0 }
 0x538   :  { %1288 = vmatpush1.bf16.msra.mxu0 %v4474_v15  ;;  %3415 = vmatpush3.bf16.msra.mxu1 %v4477_v16 }
 0x539   :  { %1289 = vmatprep.subr.bf16.mxu0 %v4483_v17  ;;  %3416 = vmatprep.subr.bf16.mxu1 %v4206_v0 }
 0x53c   :  { %1290 = vmatpush1.bf16.msra.mxu0 %v4490_v18  ;;  %3417 = vmatpush3.bf16.msra.mxu1 %v4495_v20 }
 0x53d   :  { %1393 = vmatprep.subr.bf16.mxu0 %v4370_v48  ;;  %3422 = vmatprep.subr.bf16.mxu1 %v4206_v0 }
 0x5df   :  { %v1189_v36 = vpop.f32.mrf.mxu0  ;;  %v1250_v39 = vpop.f32.mrf.mxu1 }
 0x5e0   :  { %v1198_v46 = vrot.slane %v1189_v36, 5  ;;  %v1251_v27 = vadd.f32 %v1250_v39, %v4555_v22 }
 0x5e1   :  { %v1191_v47 = vpop.f32.mrf.mxu0  ;;  %v3400_v50 = vpop.f32.mrf.mxu1 }
 0x5e2   :  { %v1202_v51 = vadd.f32 %v1198_v46, %v4546_v42  ;;  %v1199_v56 = vrot.slane %v1191_v47, 5  ;;  %v1257_v30 = vrot.slane %v1251_v27, 5 }
 0x5e3   :  { %v1193_v52 = vpop.f32.mrf.mxu0  ;;  %v1253_v54 = vpop.f32.mrf.mxu1 }
 0x5e4   :  { %v3046_v55 = vmul.f32 -1.442695, %v1202_v51  ;;  %v1203_v61 = vadd.f32 %v1199_v56, %v4549_v53 }
 0x5e5   :  { %v1194_v57 = vpop.f32.mrf.mxu0  ;;  %v3401_v58 = vpop.f32.mrf.mxu1 }
 0x5e6   :  { %3822 = vpow2.f32 %v3046_v55  ;;  %v3047_v21 = vmul.f32 -1.442695, %v1203_v61 }
 0x5e8   :  { %3824 = vpow2.f32 %v3047_v21 }
 0x5f3   :  { %v3823_v23 = vpop.eup %3822 }
 0x5f4   :  { %v1210_v24 = vadd.f32 1.0, %v3823_v23 }
 0x5f5   :  { %v3825_v25 = vpop.eup %3824 }
 0x5f6   :  { %3826 = vrcp.f32 %v1210_v24  ;;  %v1211_v29 = vadd.f32 1.0, %v3825_v25 }
 0x5f8   :  { %3828 = vrcp.f32 %v1211_v29 }
 0x603   :  { %v3827_v31 = vpop.eup %3826 }
 0x604   :  { %v1259_v32 = vmul.f32 %v3827_v31, %v1257_v30 }
 0x605   :  { %v3829_v35 = vpop.eup %3828 }
 0x606   :  { %v1260_v34 = vadd.f32 %v1259_v32, %v4558_v26  ;;  %v1262_v19 = vsub.f32 1.0, %v3829_v35  ;;  %v1267_v45 = vmul.f32 %v3829_v35, %v1265_v28 }
 0x608   :  { %3830 = vtanh.f32 %v1260_v34 }
 0x615   :  { %v3831_v40 = vpop.eup %3830 }
 0x616   :  { %v1263_v43 = vmul.f32 %v3831_v40, %v1262_v19 }
 0x618   :  { %v4701_v36 = vadd.f32 %v1267_v45, %v1263_v43 }
 0x61a   :  { %v1269_v39 = vpack.c.bf16 %v4701_v36, %v4701_v36  ;;  %v4708_v46 = vsel %vm2688_vm5, %v4659_v44, %v4701_v36  ;;  %v1385_v45 = vrot.slane %v4701_v36, 7 }
 0x61c   :  { %v1271_v47 = vshrl.u32 %v1269_v39, 16 }
 0x61e   :  { %v1273_v50 = vrot.slane %v1271_v47, 1 }
 0x620   :  { %1308 = vmatmul.mubr.bf16.vlgmr.msra.gmra.mxu0 %v1273_v50  ;;  %3419 = vmatmul.mubr.bf16.vlgmr.msra.gmra.mxu1 %v1273_v50 }
 0x621   :  { %1394 = vmatpush1.bf16.msra.mxu0 %v4378_v59  ;;  %3423 = vmatpush3.bf16.msra.mxu1 %v4380_v60 }
 0x622   :  { %1395 = vmatprep.subr.bf16.mxu0 %v4385_v62  ;;  %3424 = vmatprep.subr.bf16.mxu1 %v4206_v0 }
 0x623   :  { %1425 = vmatprep.mubr.bf16.mxu0 %v4208_v49  ;;  %3438 = vmatprep.mubr.msk.bf16.mxu1 %vm4207_vm0, %v4206_v0 }
 0x625   :  { %1396 = vmatpush1.bf16.msra.mxu0 %v4391_v63  ;;  %3425 = vmatpush3.bf16.msra.mxu1 %v4394_v1 }
 0x626   :  { %1397 = vmatprep.subr.bf16.mxu0 %v4400_v2  ;;  %3426 = vmatprep.subr.bf16.mxu1 %v4206_v0 }
 0x629   :  { %1398 = vmatpush1.bf16.msra.mxu0 %v4410_v3  ;;  %3427 = vmatpush3.bf16.msra.mxu1 %v4413_v4 }
 0x62a   :  { %1399 = vmatprep.subr.bf16.mxu0 %v4419_v5  ;;  %3428 = vmatprep.subr.bf16.mxu1 %v4206_v0 }
 0x62d   :  { %1400 = vmatpush1.bf16.msra.mxu0 %v4426_v6  ;;  %3429 = vmatpush3.bf16.msra.mxu1 %v4429_v7 }
 0x62e   :  { %1401 = vmatprep.subr.bf16.mxu0 %v4435_v8  ;;  %3430 = vmatprep.subr.bf16.mxu1 %v4206_v0 }
 0x631   :  { %1402 = vmatpush1.bf16.msra.mxu0 %v4442_v9  ;;  %3431 = vmatpush3.bf16.msra.mxu1 %v4445_v10 }
 0x632   :  { %1403 = vmatprep.subr.bf16.mxu0 %v4451_v11  ;;  %3432 = vmatprep.subr.bf16.mxu1 %v4206_v0 }
 0x635   :  { %1404 = vmatpush1.bf16.msra.mxu0 %v4458_v12  ;;  %3433 = vmatpush3.bf16.msra.mxu1 %v4461_v13 }
 0x636   :  { %1405 = vmatprep.subr.bf16.mxu0 %v4467_v14  ;;  %3434 = vmatprep.subr.bf16.mxu1 %v4206_v0 }
 0x639   :  { %1406 = vmatpush1.bf16.msra.mxu0 %v4474_v15  ;;  %3435 = vmatpush3.bf16.msra.mxu1 %v4477_v16 }
 0x63a   :  { %1407 = vmatprep.subr.bf16.mxu0 %v4483_v17  ;;  %3436 = vmatprep.subr.bf16.mxu1 %v4206_v0 }
 0x63d   :  { %1408 = vmatpush1.bf16.msra.mxu0 %v4490_v18  ;;  %3437 = vmatpush3.bf16.msra.mxu1 %v4495_v20 }
 0x63e   :  { %1513 = vmatprep.subr.bf16.mxu0 %v4370_v48  ;;  %3442 = vmatprep.subr.bf16.mxu1 %v4206_v0 }
 0x6e0   :  { %v1309_v33 = vpop.f32.mrf.mxu0  ;;  %v1370_v44 = vpop.f32.mrf.mxu1 }
 0x6e1   :  { %v1318_v51 = vrot.slane %v1309_v33, 4  ;;  %v1371_v31 = vadd.f32 %v1370_v44, %v4555_v22 }
 0x6e2   :  { %v1311_v52 = vpop.f32.mrf.mxu0  ;;  %v3420_v54 = vpop.f32.mrf.mxu1 }
 0x6e3   :  { %v1322_v55 = vadd.f32 %v1318_v51, %v4546_v42  ;;  %v1319_v61 = vrot.slane %v1311_v52, 4  ;;  %v1377_v34 = vrot.slane %v1371_v31, 4  ;;  %v4830_v31 = vld [vmem:[%s5507_s7 + $0x60] ss:$8 sps:$4 sm:$0xff]  }
 0x6e4   :  { %v1313_v56 = vpop.f32.mrf.mxu0  ;;  %v1373_v57 = vpop.f32.mrf.mxu1 }
 0x6e5   :  { %v3048_v58 = vmul.f32 -1.442695, %v1322_v55  ;;  %v1323_v24 = vadd.f32 %v1319_v61, %v4549_v53 }
 0x6e6   :  { %v1314_v21 = vpop.f32.mrf.mxu0  ;;  %v3421_v23 = vpop.f32.mrf.mxu1 }
 0x6e7   :  { %3832 = vpow2.f32 %v3048_v58  ;;  %v3049_v25 = vmul.f32 -1.442695, %v1323_v24 }
 0x6e9   :  { %3834 = vpow2.f32 %v3049_v25 }
 0x6f4   :  { %v3833_v27 = vpop.eup %3832 }
 0x6f5   :  { %v1330_v29 = vadd.f32 1.0, %v3833_v27  ;;  %v4811_v27 = vld [vmem:[%s5507_s7 + $0x70] ss:$8 sps:$4 sm:$0xff]  }
 0x6f6   :  { %v3835_v30 = vpop.eup %3834 }
 0x6f7   :  { %3836 = vrcp.f32 %v1330_v29  ;;  %v1331_v32 = vadd.f32 1.0, %v3835_v30  ;;  %v4814_v29 = vld [vmem:[#allocation13 + $0x38] sm:$0xff]  }
 0x6f8   :  { %v4820_v30 = vld [vmem:[%s5507_s7 + $0x64] ss:$8 sps:$4 sm:$0xff]  }
 0x6f9   :  { %3838 = vrcp.f32 %v1331_v32  ;;  %v4833_v32 = vld [vmem:[#allocation13 + $0x30] sm:$0xff]  }
 0x704   :  { %v3837_v35 = vpop.eup %3836 }
 0x705   :  { %v1379_v19 = vmul.f32 %v3837_v35, %v1377_v34  ;;  %v4839_v34 = vld [vmem:[%s5507_s7 + $0x54] ss:$8 sps:$4 sm:$0xff]   ;;  %v4846_v35 = vld [vmem:[%s5507_s7 + $0x50] ss:$8 sps:$4 sm:$0xff]  }
 0x706   :  { %v3839_v40 = vpop.eup %3838 }
 0x707   :  { %v1380_v28 = vadd.f32 %v1379_v19, %v4558_v26  ;;  %v1382_v43 = vsub.f32 1.0, %v3839_v40  ;;  %v1387_v50 = vmul.f32 %v3839_v40, %v1385_v45  ;;  %v4849_v19 = vld [vmem:[#allocation13 + $0x28] sm:$0xff]   ;;  %v4862_v40 = vld [vmem:[%s5507_s7 + $0x40] ss:$8 sps:$4 sm:$0xff]  }
 0x708   :  { %v4871_v45 = vld [vmem:[%s5507_s7 + $0x34] ss:$8 sps:$4 sm:$0xff]  }
 0x709   :  { %3840 = vtanh.f32 %v1380_v28  ;;  %v4855_v28 = vld [vmem:[%s5507_s7 + $0x44] ss:$8 sps:$4 sm:$0xff]  }
 0x716   :  { %v3841_v39 = vpop.eup %3840 }
 0x717   :  { %v1383_v47 = vmul.f32 %v3841_v39, %v1382_v43  ;;  %v4865_v43 = vld [vmem:[#allocation13 + $0x20] sm:$0xff]  }
 0x718   :  { %v4878_v39 = vld [vmem:[%s5507_s7 + $0x30] ss:$8 sps:$4 sm:$0xff]  }
 0x719   :  { %v4750_v33 = vadd.f32 %v1387_v50, %v1383_v47  ;;  %v4881_v47 = vld [vmem:[#allocation13 + $0x18] sm:$0xff]  }
 0x71a   :  { %v4887_v50 = vld [vmem:[%s5507_s7 + $0x24] ss:$8 sps:$4 sm:$0xff]  }
 0x71b   :  { %v1389_v44 = vpack.c.bf16 %v4750_v33, %v4750_v33  ;;  %v4757_v51 = vsel %vm178_vm1, %v4708_v46, %v4750_v33  ;;  %v1503_v55 = vrot.slane %v4750_v33, 7  ;;  %v4894_v33 = vld [vmem:[%s5507_s7 + $0x20] ss:$8 sps:$4 sm:$0xff]  }
 0x71d   :  { %v1391_v52 = vrot.slane %v1389_v44, 2  ;;  %v4897_v44 = vld [vmem:[#allocation13 + $0x10] sm:$0xff]  }
 0x71f   :  { %1426 = vmatmul.mubr.bf16.vlgmr.msra.gmra.mxu0 %v1391_v52  ;;  %3439 = vmatmul.mubr.bf16.vlgmr.msra.gmra.mxu1 %v1391_v52  ;;  %v4910_v52 = vld [vmem:[%s5507_s7 + $0x10] ss:$8 sps:$4 sm:$0xff]  }
 0x720   :  { %1514 = vmatpush1.bf16.msra.mxu0 %v4378_v59  ;;  %3443 = vmatpush3.bf16.msra.mxu1 %v4380_v60 }
 0x721   :  { %1515 = vmatprep.subr.bf16.mxu0 %v4385_v62  ;;  %3444 = vmatprep.subr.bf16.mxu1 %v4206_v0 }
 0x722   :  { %1545 = vmatprep.mubr.bf16.mxu0 %v4208_v49  ;;  %3458 = vmatprep.mubr.msk.bf16.mxu1 %vm4207_vm0, %v4206_v0 }
 0x724   :  { %1516 = vmatpush1.bf16.msra.mxu0 %v4391_v63  ;;  %3445 = vmatpush3.bf16.msra.mxu1 %v4394_v1 }
 0x725   :  { %1517 = vmatprep.subr.bf16.mxu0 %v4400_v2  ;;  %3446 = vmatprep.subr.bf16.mxu1 %v4206_v0 }
 0x728   :  { %1518 = vmatpush1.bf16.msra.mxu0 %v4410_v3  ;;  %3447 = vmatpush3.bf16.msra.mxu1 %v4413_v4 }
 0x729   :  { %1519 = vmatprep.subr.bf16.mxu0 %v4419_v5  ;;  %3448 = vmatprep.subr.bf16.mxu1 %v4206_v0 }
 0x72c   :  { %1520 = vmatpush1.bf16.msra.mxu0 %v4426_v6  ;;  %3449 = vmatpush3.bf16.msra.mxu1 %v4429_v7 }
 0x72d   :  { %1521 = vmatprep.subr.bf16.mxu0 %v4435_v8  ;;  %3450 = vmatprep.subr.bf16.mxu1 %v4206_v0 }
 0x730   :  { %1522 = vmatpush1.bf16.msra.mxu0 %v4442_v9  ;;  %3451 = vmatpush3.bf16.msra.mxu1 %v4445_v10 }
 0x731   :  { %1523 = vmatprep.subr.bf16.mxu0 %v4451_v11  ;;  %3452 = vmatprep.subr.bf16.mxu1 %v4206_v0 }
 0x734   :  { %1524 = vmatpush1.bf16.msra.mxu0 %v4458_v12  ;;  %3453 = vmatpush3.bf16.msra.mxu1 %v4461_v13 }
 0x735   :  { %1525 = vmatprep.subr.bf16.mxu0 %v4467_v14  ;;  %3454 = vmatprep.subr.bf16.mxu1 %v4206_v0 }
 0x738   :  { %1526 = vmatpush1.bf16.msra.mxu0 %v4474_v15  ;;  %3455 = vmatpush3.bf16.msra.mxu1 %v4477_v16 }
 0x739   :  { %1527 = vmatprep.subr.bf16.mxu0 %v4483_v17  ;;  %3456 = vmatprep.subr.bf16.mxu1 %v4206_v0 }
 0x73c   :  { %1528 = vmatpush1.bf16.msra.mxu0 %v4490_v18  ;;  %3457 = vmatpush3.bf16.msra.mxu1 %v4495_v20 }
 0x73d   :  { %1631 = vmatprep.subr.bf16.mxu0 %v4370_v48  ;;  %3462 = vmatprep.subr.bf16.mxu1 %v4206_v0 }
 0x7df   :  { %v1427_v59 = vpop.f32.mrf.mxu0  ;;  %v1488_v60 = vpop.f32.mrf.mxu1 }
 0x7e0   :  { %v1436_v62 = vrot.slane %v1427_v59, 3  ;;  %v1489_v13 = vadd.f32 %v1488_v60, %v4555_v22  ;;  %v4913_v59 = vld [vmem:[#allocation13 + $0x8] sm:$0xff]   ;;  %v4919_v60 = vld [vmem:[%s5507_s7 + $0x4] ss:$8 sps:$4 sm:$0xff]  }
 0x7e1   :  { %v1429_v63 = vpop.f32.mrf.mxu0  ;;  %v3440_v1 = vpop.f32.mrf.mxu1 }
 0x7e2   :  { %v1440_v2 = vadd.f32 %v1436_v62, %v4546_v42  ;;  %v1437_v6 = vrot.slane %v1429_v63, 3  ;;  %v1495_v15 = vrot.slane %v1489_v13, 3  ;;  %v4928_v62 = vld [vmem:[%s5507_s7 + $0x74] ss:$8 sps:$4 sm:$0xff]  }
 0x7e3   :  { %v1431_v3 = vpop.f32.mrf.mxu0  ;;  %v1491_v4 = vpop.f32.mrf.mxu1 }
 0x7e4   :  { %v3050_v5 = vmul.f32 -1.442695, %v1440_v2  ;;  %v1441_v9 = vadd.f32 %v1437_v6, %v4549_v53 }
 0x7e5   :  { %v1432_v7 = vpop.f32.mrf.mxu0  ;;  %v3441_v8 = vpop.f32.mrf.mxu1 }
 0x7e6   :  { %3842 = vpow2.f32 %v3050_v5  ;;  %v3051_v10 = vmul.f32 -1.442695, %v1441_v9 }
 0x7e8   :  { %3844 = vpow2.f32 %v3051_v10 }
 0x7f3   :  { %v3843_v48 = vpop.eup %3842 }
 0x7f4   :  { %v1448_v11 = vadd.f32 1.0, %v3843_v48 }
 0x7f5   :  { %v3845_v12 = vpop.eup %3844 }
 0x7f6   :  { %3846 = vrcp.f32 %v1448_v11  ;;  %v1449_v14 = vadd.f32 1.0, %v3845_v12 }
 0x7f8   :  { %3848 = vrcp.f32 %v1449_v14 }
 0x803   :  { %v3847_v16 = vpop.eup %3846 }
 0x804   :  { %v1497_v17 = vmul.f32 %v3847_v16, %v1495_v15 }
 0x805   :  { %v3849_v46 = vpop.eup %3848 }
 0x806   :  { %v1498_v36 = vadd.f32 %v1497_v17, %v4558_v26  ;;  %v1500_v54 = vsub.f32 1.0, %v3849_v46  ;;  %v1505_v58 = vmul.f32 %v3849_v46, %v1503_v55 }
 0x808   :  { %3850 = vtanh.f32 %v1498_v36 }
 0x815   :  { %v3851_v56 = vpop.eup %3850 }
 0x816   :  { %v1501_v57 = vmul.f32 %v3851_v56, %v1500_v54 }
 0x818   :  { %v4799_v61 = vadd.f32 %v1505_v58, %v1501_v57 }
 0x81a   :  { %v1507_v21 = vpack.c.bf16 %v4799_v61, %v4799_v61  ;;  %v4806_v23 = vsel %vm2691_vm6, %v4757_v51, %v4799_v61  ;;  %v4903_v51 = vld [vmem:[%s5507_s7 + $0x14] ss:$8 sps:$4 sm:$0xff]   ;;  %v1623_v56 = vrot.slane %v4799_v61, 7  ;;  %v4980_v61 = vld [vmem:[%s5507_s7] ss:$8 sps:$4 sm:$0xff]  }
 0x81c   :  { %v1509_v24 = vshrl.u32 %v1507_v21, 16 }
 0x81e   :  { %v1511_v25 = vrot.slane %v1509_v24, 2 }
 0x820   :  { %1546 = vmatmul.mubr.bf16.vlgmr.msra.gmra.mxu0 %v1511_v25  ;;  %3459 = vmatmul.mubr.bf16.vlgmr.msra.gmra.mxu1 %v1511_v25 }
 0x821   :  { %1632 = vmatpush1.bf16.msra.mxu0 %v4811_v27  ;;  %3463 = vmatpush3.bf16.msra.mxu1 %v4814_v29 }
 0x822   :  { %1633 = vmatprep.subr.bf16.mxu0 %v4820_v30  ;;  %3464 = vmatprep.subr.bf16.mxu1 %v4206_v0 }
 0x823   :  { %1663 = vmatprep.mubr.bf16.mxu0 %v4208_v49  ;;  %3478 = vmatprep.mubr.msk.bf16.mxu1 %vm4207_vm0, %v4206_v0 }
 0x825   :  { %1634 = vmatpush1.bf16.msra.mxu0 %v4830_v31  ;;  %3465 = vmatpush3.bf16.msra.mxu1 %v4833_v32 }
 0x826   :  { %1635 = vmatprep.subr.bf16.mxu0 %v4839_v34  ;;  %3466 = vmatprep.subr.bf16.mxu1 %v4206_v0 }
 0x829   :  { %1636 = vmatpush1.bf16.msra.mxu0 %v4846_v35  ;;  %3467 = vmatpush3.bf16.msra.mxu1 %v4849_v19 }
 0x82a   :  { %1637 = vmatprep.subr.bf16.mxu0 %v4855_v28  ;;  %3468 = vmatprep.subr.bf16.mxu1 %v4206_v0 }
 0x82d   :  { %1638 = vmatpush1.bf16.msra.mxu0 %v4862_v40  ;;  %3469 = vmatpush3.bf16.msra.mxu1 %v4865_v43 }
 0x82e   :  { %1639 = vmatprep.subr.bf16.mxu0 %v4871_v45  ;;  %3470 = vmatprep.subr.bf16.mxu1 %v4206_v0 }
 0x831   :  { %1640 = vmatpush1.bf16.msra.mxu0 %v4878_v39  ;;  %3471 = vmatpush3.bf16.msra.mxu1 %v4881_v47 }
 0x832   :  { %1641 = vmatprep.subr.bf16.mxu0 %v4887_v50  ;;  %3472 = vmatprep.subr.bf16.mxu1 %v4206_v0 }
 0x835   :  { %1642 = vmatpush1.bf16.msra.mxu0 %v4894_v33  ;;  %3473 = vmatpush3.bf16.msra.mxu1 %v4897_v44 }
 0x836   :  { %1643 = vmatprep.subr.bf16.mxu0 %v4903_v51  ;;  %3474 = vmatprep.subr.bf16.mxu1 %v4206_v0 }
 0x839   :  { %1644 = vmatpush1.bf16.msra.mxu0 %v4910_v52  ;;  %3475 = vmatpush3.bf16.msra.mxu1 %v4913_v59 }
 0x83a   :  { %1645 = vmatprep.subr.bf16.mxu0 %v4919_v60  ;;  %3476 = vmatprep.subr.bf16.mxu1 %v4206_v0 }
 0x83d   :  { %1646 = vmatpush1.bf16.msra.mxu0 %v4490_v18  ;;  %3477 = vmatpush3.bf16.msra.mxu1 %v4495_v20 }
 0x83e   :  { %1751 = vmatprep.subr.bf16.mxu0 %v4928_v62  ;;  %3482 = vmatprep.subr.bf16.mxu1 %v4206_v0 }
 0x8e0   :  { %v1547_v63 = vpop.f32.mrf.mxu0  ;;  %v1608_v1 = vpop.f32.mrf.mxu1 }
 0x8e1   :  { %v1556_v2 = vrot.slane %v1547_v63, 2  ;;  %v1609_v14 = vadd.f32 %v1608_v1, %v4555_v22 }
 0x8e2   :  { %v1549_v3 = vpop.f32.mrf.mxu0  ;;  %v3460_v4 = vpop.f32.mrf.mxu1 }
 0x8e3   :  { %v1560_v5 = vadd.f32 %v1556_v2, %v4546_v42  ;;  %v1557_v20 = vrot.slane %v1549_v3, 2  ;;  %v1615_v16 = vrot.slane %v1609_v14, 2 }
 0x8e4   :  { %v1551_v6 = vpop.f32.mrf.mxu0  ;;  %v1611_v18 = vpop.f32.mrf.mxu1 }
 0x8e5   :  { %v3052_v7 = vmul.f32 -1.442695, %v1560_v5  ;;  %v1561_v10 = vadd.f32 %v1557_v20, %v4549_v53 }
 0x8e6   :  { %v1552_v8 = vpop.f32.mrf.mxu0  ;;  %v3461_v9 = vpop.f32.mrf.mxu1 }
 0x8e7   :  { %3852 = vpow2.f32 %v3052_v7  ;;  %v3053_v48 = vmul.f32 -1.442695, %v1561_v10 }
 0x8e9   :  { %3854 = vpow2.f32 %v3053_v48 }
 0x8f4   :  { %v3853_v11 = vpop.eup %3852 }
 0x8f5   :  { %v1568_v12 = vadd.f32 1.0, %v3853_v11 }
 0x8f6   :  { %v3855_v13 = vpop.eup %3854 }
 0x8f7   :  { %3856 = vrcp.f32 %v1568_v12  ;;  %v1569_v15 = vadd.f32 1.0, %v3855_v13 }
 0x8f9   :  { %3858 = vrcp.f32 %v1569_v15  ;;  %v4993_v15 = vld [vmem:[%s5509_s9] sm:$0x1] }
 0x904   :  { %v3857_v17 = vpop.eup %3856 }
 0x905   :  { %v1617_v36 = vmul.f32 %v3857_v17, %v1615_v16 }
 0x906   :  { %v3859_v54 = vpop.eup %3858 }
 0x907   :  { %v1618_v46 = vadd.f32 %v1617_v36, %v4558_v26  ;;  %v1620_v55 = vsub.f32 1.0, %v3859_v54  ;;  %v1625_v21 = vmul.f32 %v3859_v54, %v1623_v56 }
 0x909   :  { %3860 = vtanh.f32 %v1618_v46 }
 0x916   :  { %v3861_v57 = vpop.eup %3860 }
 0x917   :  { %v1621_v58 = vmul.f32 %v3861_v57, %v1620_v55 }
 0x919   :  { %v4937_v24 = vadd.f32 %v1625_v21, %v1621_v58 }
 0x91b   :  { %v1627_v22 = vpack.c.bf16 %v4937_v24, %v4937_v24  ;;  %v4944_v25 = vsel %vm2693_vm7, %v4806_v23, %v4937_v24  ;;  %v4983_v23 = vld [vmem:[#allocation13] sm:$0xff]   ;;  %v1741_v56 = vrot.slane %v4937_v24, 7 }
 0x91d   :  { %v1629_v63 = vrot.slane %v1627_v22, 3 }
 0x91f   :  { %1664 = vmatmul.mubr.bf16.vlgmr.msra.gmra.mxu0 %v1629_v63  ;;  %3479 = vmatmul.mubr.bf16.vlgmr.msra.gmra.mxu1 %v1629_v63 }
 0x920   :  { %1752 = vmatpush1.bf16.msra.mxu0 %v4811_v27  ;;  %3483 = vmatpush3.bf16.msra.mxu1 %v4814_v29 }
 0x921   :  { %1753 = vmatprep.subr.bf16.mxu0 %v4820_v30  ;;  %3484 = vmatprep.subr.bf16.mxu1 %v4206_v0 }
 0x922   :  { %1783 = vmatprep.mubr.bf16.mxu0 %v4208_v49  ;;  %3498 = vmatprep.mubr.msk.bf16.mxu1 %vm4207_vm0, %v4206_v0 }
 0x924   :  { %1754 = vmatpush1.bf16.msra.mxu0 %v4830_v31  ;;  %3485 = vmatpush3.bf16.msra.mxu1 %v4833_v32 }
 0x925   :  { %1755 = vmatprep.subr.bf16.mxu0 %v4839_v34  ;;  %3486 = vmatprep.subr.bf16.mxu1 %v4206_v0 }
 0x928   :  { %1756 = vmatpush1.bf16.msra.mxu0 %v4846_v35  ;;  %3487 = vmatpush3.bf16.msra.mxu1 %v4849_v19 }
 0x929   :  { %1757 = vmatprep.subr.bf16.mxu0 %v4855_v28  ;;  %3488 = vmatprep.subr.bf16.mxu1 %v4206_v0 }
 0x92c   :  { %1758 = vmatpush1.bf16.msra.mxu0 %v4862_v40  ;;  %3489 = vmatpush3.bf16.msra.mxu1 %v4865_v43 }
 0x92d   :  { %1759 = vmatprep.subr.bf16.mxu0 %v4871_v45  ;;  %3490 = vmatprep.subr.bf16.mxu1 %v4206_v0 }
 0x930   :  { %1760 = vmatpush1.bf16.msra.mxu0 %v4878_v39  ;;  %3491 = vmatpush3.bf16.msra.mxu1 %v4881_v47 }
 0x931   :  { %1761 = vmatprep.subr.bf16.mxu0 %v4887_v50  ;;  %3492 = vmatprep.subr.bf16.mxu1 %v4206_v0 }
 0x934   :  { %1762 = vmatpush1.bf16.msra.mxu0 %v4894_v33  ;;  %3493 = vmatpush3.bf16.msra.mxu1 %v4897_v44 }
 0x935   :  { %1763 = vmatprep.subr.bf16.mxu0 %v4903_v51  ;;  %3494 = vmatprep.subr.bf16.mxu1 %v4206_v0 }
 0x938   :  { %1764 = vmatpush1.bf16.msra.mxu0 %v4910_v52  ;;  %3495 = vmatpush3.bf16.msra.mxu1 %v4913_v59 }
 0x939   :  { %1765 = vmatprep.subr.bf16.mxu0 %v4919_v60  ;;  %3496 = vmatprep.subr.bf16.mxu1 %v4206_v0 }
 0x93c   :  { %1766 = vmatpush1.bf16.msra.mxu0 %v4980_v61  ;;  %3497 = vmatpush3.bf16.msra.mxu1 %v4983_v23 }
 0x93d   :  { %1857 = vmatprep.subr.bf16.mxu0 %v4928_v62  ;;  %3502 = vmatprep.subr.bf16.mxu1 %v4206_v0 }
 0x9df   :  { %v1665_v1 = vpop.f32.mrf.mxu0  ;;  %v1726_v2 = vpop.f32.mrf.mxu1 }
 0x9e0   :  { %v1674_v3 = vrot.slane %v1665_v1, 1 }
 0x9e1   :  { %v1667_v4 = vpop.f32.mrf.mxu0  ;;  %v3480_v5 = vpop.f32.mrf.mxu1 }
 0x9e2   :  { %v1678_v6 = vadd.f32 %v1674_v3, %v4546_v42  ;;  %v1675_v8 = vrot.slane %v1667_v4, 1  ;;  %v1727_v42 = vadd.f32 %v4993_v15, %v1726_v2 }
 0x9e3   :  { %v1669_v18 = vpop.f32.mrf.mxu0  ;;  %v1729_v7 = vpop.f32.mrf.mxu1 }
 0x9e4   :  { %v3054_v20 = vmul.f32 -1.442695, %v1678_v6  ;;  %v1679_v48 = vadd.f32 %v1675_v8, %v4549_v53  ;;  %v1733_v17 = vrot.slane %v1727_v42, 1 }
 0x9e5   :  { %v1670_v9 = vpop.f32.mrf.mxu0  ;;  %v3481_v10 = vpop.f32.mrf.mxu1 }
 0x9e6   :  { %3862 = vpow2.f32 %v3054_v20  ;;  %v3055_v11 = vmul.f32 -1.442695, %v1679_v48 }
 0x9e8   :  { %3864 = vpow2.f32 %v3055_v11 }
 0x9f3   :  { %v3863_v12 = vpop.eup %3862 }
 0x9f4   :  { %v1686_v13 = vadd.f32 1.0, %v3863_v12 }
 0x9f5   :  { %v3865_v14 = vpop.eup %3864 }
 0x9f6   :  { %3866 = vrcp.f32 %v1686_v13  ;;  %v1687_v16 = vadd.f32 1.0, %v3865_v14 }
 0x9f8   :  { %3868 = vrcp.f32 %v1687_v16 }
 0xa03   :  { %v3867_v36 = vpop.eup %3866 }
 0xa04   :  { %v1735_v46 = vmul.f32 %v3867_v36, %v1733_v17 }
 0xa05   :  { %v3869_v54 = vpop.eup %3868 }
 0xa06   :  { %v1736_v53 = vadd.f32 %v1735_v46, %v4558_v26  ;;  %v1738_v55 = vsub.f32 1.0, %v3869_v54  ;;  %v1743_v21 = vmul.f32 %v3869_v54, %v1741_v56 }
 0xa08   :  { %3870 = vtanh.f32 %v1736_v53 }
 0xa15   :  { %v3871_v57 = vpop.eup %3870 }
 0xa16   :  { %v1739_v58 = vmul.f32 %v3871_v57, %v1738_v55 }
 0xa18   :  { %v4998_v22 = vadd.f32 %v1743_v21, %v1739_v58 }
 0xa1a   :  { %v1745_v63 = vpack.c.bf16 %v4998_v22, %v4998_v22  ;;  %v5005_v1 = vsel %vm2695_vm8, %v4944_v25, %v4998_v22  ;;  %v1852_v53 = vrot.slane %v4998_v22, 7 }
 0xa1c   :  { %v1747_v26 = vshrl.u32 %v1745_v63, 16 }
 0xa1e   :  { %v1749_v2 = vrot.slane %v1747_v26, 3 }
 0xa20   :  { %1784 = vmatmul.mubr.bf16.vlgmr.msra.gmra.mxu0 %v1749_v2  ;;  %3499 = vmatmul.mubr.bf16.vlgmr.msra.gmra.mxu1 %v1749_v2 }
 0xa21   :  { %1858 = vmatpush1.bf16.msra.mxu0 %v4811_v27  ;;  %3503 = vmatpush3.bf16.msra.mxu1 %v4814_v29 }
 0xa22   :  { %1859 = vmatprep.subr.bf16.mxu0 %v4820_v30  ;;  %3504 = vmatprep.subr.bf16.mxu1 %v4206_v0 }
 0xa23   :  { %1889 = vmatprep.mubr.bf16.mxu0 %v4208_v49  ;;  %3518 = vmatprep.mubr.msk.bf16.mxu1 %vm4207_vm0, %v4206_v0 }
 0xa25   :  { %1860 = vmatpush1.bf16.msra.mxu0 %v4830_v31  ;;  %3505 = vmatpush3.bf16.msra.mxu1 %v4833_v32 }
 0xa26   :  { %1861 = vmatprep.subr.bf16.mxu0 %v4839_v34  ;;  %3506 = vmatprep.subr.bf16.mxu1 %v4206_v0 }
 0xa29   :  { %1862 = vmatpush1.bf16.msra.mxu0 %v4846_v35  ;;  %3507 = vmatpush3.bf16.msra.mxu1 %v4849_v19 }
 0xa2a   :  { %1863 = vmatprep.subr.bf16.mxu0 %v4855_v28  ;;  %3508 = vmatprep.subr.bf16.mxu1 %v4206_v0 }
 0xa2d   :  { %1864 = vmatpush1.bf16.msra.mxu0 %v4862_v40  ;;  %3509 = vmatpush3.bf16.msra.mxu1 %v4865_v43 }
 0xa2e   :  { %1865 = vmatprep.subr.bf16.mxu0 %v4871_v45  ;;  %3510 = vmatprep.subr.bf16.mxu1 %v4206_v0 }
 0xa31   :  { %1866 = vmatpush1.bf16.msra.mxu0 %v4878_v39  ;;  %3511 = vmatpush3.bf16.msra.mxu1 %v4881_v47 }
 0xa32   :  { %1867 = vmatprep.subr.bf16.mxu0 %v4887_v50  ;;  %3512 = vmatprep.subr.bf16.mxu1 %v4206_v0 }
 0xa35   :  { %1868 = vmatpush1.bf16.msra.mxu0 %v4894_v33  ;;  %3513 = vmatpush3.bf16.msra.mxu1 %v4897_v44 }
 0xa36   :  { %1869 = vmatprep.subr.bf16.mxu0 %v4903_v51  ;;  %3514 = vmatprep.subr.bf16.mxu1 %v4206_v0 }
 0xa39   :  { %1870 = vmatpush1.bf16.msra.mxu0 %v4910_v52  ;;  %3515 = vmatpush3.bf16.msra.mxu1 %v4913_v59 }
 0xa3a   :  { %1871 = vmatprep.subr.bf16.mxu0 %v4919_v60  ;;  %3516 = vmatprep.subr.bf16.mxu1 %v4206_v0 }
 0xa3d   :  { %1872 = vmatpush1.bf16.msra.mxu0 %v4980_v61  ;;  %3517 = vmatpush3.bf16.msra.mxu1 %v4983_v23 }
 0xa3e   :  { %1976 = vmatprep.subr.bf16.mxu0 %v4928_v62  ;;  %3522 = vmatprep.subr.bf16.mxu1 %v4206_v0 }
 0xae0   :  { %v1785_v24 = vpop.f32.mrf.mxu0  ;;  %v1840_v25 = vpop.f32.mrf.mxu1 }
 0xae1   :  { %v1792_v3 = vadd.f32 %v1785_v24, %v4540_v37  ;;  %v1841_v14 = vadd.f32 %v4993_v15, %v1840_v25 }
 0xae2   :  { %v1787_v4 = vpop.f32.mrf.mxu0  ;;  %v3500_v5 = vpop.f32.mrf.mxu1 }
 0xae3   :  { %v3056_v6 = vmul.f32 -1.442695, %v1792_v3  ;;  %v1793_v9 = vadd.f32 %v1787_v4, %v4544_v41 }
 0xae4   :  { %v1789_v18 = vpop.f32.mrf.mxu0  ;;  %v1843_v7 = vpop.f32.mrf.mxu1 }
 0xae5   :  { %3872 = vpow2.f32 %v3056_v6  ;;  %v3057_v10 = vmul.f32 -1.442695, %v1793_v9 }
 0xae6   :  { %v1790_v20 = vpop.f32.mrf.mxu0  ;;  %v3501_v8 = vpop.f32.mrf.mxu1 }
 0xae7   :  { %3874 = vpow2.f32 %v3057_v10 }
 0xaf2   :  { %v3873_v48 = vpop.eup %3872 }
 0xaf3   :  { %v1800_v11 = vadd.f32 1.0, %v3873_v48 }
 0xaf4   :  { %v3875_v12 = vpop.eup %3874 }
 0xaf5   :  { %3876 = vrcp.f32 %v1800_v11  ;;  %v1801_v13 = vadd.f32 1.0, %v3875_v12 }
 0xaf7   :  { %3878 = vrcp.f32 %v1801_v13 }
 0xb02   :  { %v3877_v42 = vpop.eup %3876 }
 0xb03   :  { %v1846_v16 = vmul.f32 %v3877_v42, %v1841_v14 }
 0xb04   :  { %v3879_v36 = vpop.eup %3878 }
 0xb05   :  { %v1847_v17 = vadd.f32 %v1846_v16, %v4542_v38  ;;  %v1849_v46 = vsub.f32 1.0, %v3879_v36  ;;  %v1854_v56 = vmul.f32 %v3879_v36, %v1852_v53 }
 0xb07   :  { %3880 = vtanh.f32 %v1847_v17 }
 0xb14   :  { %v3881_v54 = vpop.eup %3880 }
 0xb15   :  { %v1850_v55 = vmul.f32 %v3881_v54, %v1849_v46 }
 0xb17   :  { %v5047_v57 = vadd.f32 %v1854_v56, %v1850_v55 }
 0xb19   :  { %v1856_v58 = vpack.c.bf16 %v5047_v57, %v5047_v57  ;;  %v1967_v36 = vrot.slane %v5047_v57, 7 }
 0xb1b   :  { %1890 = vmatmul.mubr.bf16.vlgmr.msra.gmra.mxu0 %v1856_v58  ;;  %3519 = vmatmul.mubr.bf16.vlgmr.msra.gmra.mxu1 %v1856_v58 }
 0xb1c   :  { %1977 = vmatpush1.bf16.msra.mxu0 %v4811_v27  ;;  %3523 = vmatpush3.bf16.msra.mxu1 %v4814_v29 }
 0xb1d   :  { %1978 = vmatprep.subr.bf16.mxu0 %v4820_v30  ;;  %3524 = vmatprep.subr.bf16.mxu1 %v4206_v0 }
 0xb1e   :  { %2008 = vmatprep.mubr.bf16.mxu0 %v4208_v49  ;;  %3538 = vmatprep.mubr.msk.bf16.mxu1 %vm4207_vm0, %v4206_v0 }
 0xb20   :  { %1979 = vmatpush1.bf16.msra.mxu0 %v4830_v31  ;;  %3525 = vmatpush3.bf16.msra.mxu1 %v4833_v32 }
 0xb21   :  { %1980 = vmatprep.subr.bf16.mxu0 %v4839_v34  ;;  %3526 = vmatprep.subr.bf16.mxu1 %v4206_v0 }
 0xb24   :  { %1981 = vmatpush1.bf16.msra.mxu0 %v4846_v35  ;;  %3527 = vmatpush3.bf16.msra.mxu1 %v4849_v19 }
 0xb25   :  { %1982 = vmatprep.subr.bf16.mxu0 %v4855_v28  ;;  %3528 = vmatprep.subr.bf16.mxu1 %v4206_v0 }
 0xb28   :  { %1983 = vmatpush1.bf16.msra.mxu0 %v4862_v40  ;;  %3529 = vmatpush3.bf16.msra.mxu1 %v4865_v43 }
 0xb29   :  { %1984 = vmatprep.subr.bf16.mxu0 %v4871_v45  ;;  %3530 = vmatprep.subr.bf16.mxu1 %v4206_v0 }
 0xb2c   :  { %1985 = vmatpush1.bf16.msra.mxu0 %v4878_v39  ;;  %3531 = vmatpush3.bf16.msra.mxu1 %v4881_v47 }
 0xb2d   :  { %1986 = vmatprep.subr.bf16.mxu0 %v4887_v50  ;;  %3532 = vmatprep.subr.bf16.mxu1 %v4206_v0 }
 0xb30   :  { %1987 = vmatpush1.bf16.msra.mxu0 %v4894_v33  ;;  %3533 = vmatpush3.bf16.msra.mxu1 %v4897_v44 }
 0xb31   :  { %1988 = vmatprep.subr.bf16.mxu0 %v4903_v51  ;;  %3534 = vmatprep.subr.bf16.mxu1 %v4206_v0 }
 0xb34   :  { %1989 = vmatpush1.bf16.msra.mxu0 %v4910_v52  ;;  %3535 = vmatpush3.bf16.msra.mxu1 %v4913_v59 }
 0xb35   :  { %1990 = vmatprep.subr.bf16.mxu0 %v4919_v60  ;;  %3536 = vmatprep.subr.bf16.mxu1 %v4206_v0 }
 0xb38   :  { %1991 = vmatpush1.bf16.msra.mxu0 %v4980_v61  ;;  %3537 = vmatpush3.bf16.msra.mxu1 %v4983_v23 }
 0xb39   :  { %2094 = vmatprep.subr.bf16.mxu0 %v4928_v62  ;;  %3542 = vmatprep.subr.bf16.mxu1 %v4206_v0 }
 0xbdb   :  { %v1891_v21 = vpop.f32.mrf.mxu0  ;;  %v1952_v22 = vpop.f32.mrf.mxu1 }
 0xbdc   :  { %v1900_v63 = vrot.slane %v1891_v21, 7  ;;  %v1953_v48 = vadd.f32 %v4993_v15, %v1952_v22 }
 0xbdd   :  { %v1893_v26 = vpop.f32.mrf.mxu0  ;;  %v3520_v2 = vpop.f32.mrf.mxu1 }
 0xbde   :  { %v1904_v24 = vadd.f32 %v1900_v63, %v4540_v37  ;;  %v1901_v5 = vrot.slane %v1893_v26, 7  ;;  %v1959_v12 = vrot.slane %v1953_v48, 7 }
 0xbdf   :  { %v1895_v25 = vpop.f32.mrf.mxu0  ;;  %v1955_v3 = vpop.f32.mrf.mxu1 }
 0xbe0   :  { %v3058_v4 = vmul.f32 -1.442695, %v1904_v24  ;;  %v1905_v7 = vadd.f32 %v1901_v5, %v4544_v41 }
 0xbe1   :  { %v1896_v6 = vpop.f32.mrf.mxu0  ;;  %v3521_v18 = vpop.f32.mrf.mxu1 }
 0xbe2   :  { %3882 = vpow2.f32 %v3058_v4  ;;  %v3059_v20 = vmul.f32 -1.442695, %v1905_v7 }
 0xbe4   :  { %3884 = vpow2.f32 %v3059_v20 }
 0xbef   :  { %v3883_v8 = vpop.eup %3882 }
 0xbf0   :  { %v1912_v9 = vadd.f32 1.0, %v3883_v8 }
 0xbf1   :  { %v3885_v10 = vpop.eup %3884 }
 0xbf2   :  { %3886 = vrcp.f32 %v1912_v9  ;;  %v1913_v11 = vadd.f32 1.0, %v3885_v10 }
 0xbf4   :  { %3888 = vrcp.f32 %v1913_v11 }
 0xbff   :  { %v3887_v13 = vpop.eup %3886 }
 0xc00   :  { %v1961_v14 = vmul.f32 %v3887_v13, %v1959_v12 }
 0xc01   :  { %v3889_v16 = vpop.eup %3888 }
 0xc02   :  { %v1962_v42 = vadd.f32 %v1961_v14, %v4542_v38  ;;  %v1964_v17 = vsub.f32 1.0, %v3889_v16  ;;  %v1969_v54 = vmul.f32 %v3889_v16, %v1967_v36 }
 0xc04   :  { %3890 = vtanh.f32 %v1962_v42 }
 0xc11   :  { %v3891_v46 = vpop.eup %3890 }
 0xc12   :  { %v1965_v53 = vmul.f32 %v3891_v46, %v1964_v17 }
 0xc14   :  { %v5091_v55 = vadd.f32 %v1969_v54, %v1965_v53 }
 0xc16   :  { %v1971_v56 = vpack.c.bf16 %v5091_v55, %v5091_v55  ;;  %v2086_v36 = vrot.slane %v5091_v55, 7 }
 0xc18   :  { %v1973_v58 = vshrl.u32 %v1971_v56, 16 }
 0xc1a   :  { %2009 = vmatmul.mubr.bf16.vlgmr.msra.gmra.mxu0 %v1973_v58  ;;  %3539 = vmatmul.mubr.bf16.vlgmr.msra.gmra.mxu1 %v1973_v58  ;;  %v2697_v58 = vsel %vm2684_vm3, %v5047_v57, %v5091_v55 }
 0xc1b   :  { %2095 = vmatpush1.bf16.msra.mxu0 %v4811_v27  ;;  %3543 = vmatpush3.bf16.msra.mxu1 %v4814_v29 }
 0xc1c   :  { %2096 = vmatprep.subr.bf16.mxu0 %v4820_v30  ;;  %3544 = vmatprep.subr.bf16.mxu1 %v4206_v0 }
 0xc1d   :  { %2126 = vmatprep.mubr.bf16.mxu0 %v4208_v49  ;;  %3558 = vmatprep.mubr.msk.bf16.mxu1 %vm4207_vm0, %v4206_v0 }
 0xc1f   :  { %2097 = vmatpush1.bf16.msra.mxu0 %v4830_v31  ;;  %3545 = vmatpush3.bf16.msra.mxu1 %v4833_v32 }
 0xc20   :  { %2098 = vmatprep.subr.bf16.mxu0 %v4839_v34  ;;  %3546 = vmatprep.subr.bf16.mxu1 %v4206_v0 }
 0xc23   :  { %2099 = vmatpush1.bf16.msra.mxu0 %v4846_v35  ;;  %3547 = vmatpush3.bf16.msra.mxu1 %v4849_v19 }
 0xc24   :  { %2100 = vmatprep.subr.bf16.mxu0 %v4855_v28  ;;  %3548 = vmatprep.subr.bf16.mxu1 %v4206_v0 }
 0xc27   :  { %2101 = vmatpush1.bf16.msra.mxu0 %v4862_v40  ;;  %3549 = vmatpush3.bf16.msra.mxu1 %v4865_v43 }
 0xc28   :  { %2102 = vmatprep.subr.bf16.mxu0 %v4871_v45  ;;  %3550 = vmatprep.subr.bf16.mxu1 %v4206_v0 }
 0xc2b   :  { %2103 = vmatpush1.bf16.msra.mxu0 %v4878_v39  ;;  %3551 = vmatpush3.bf16.msra.mxu1 %v4881_v47 }
 0xc2c   :  { %2104 = vmatprep.subr.bf16.mxu0 %v4887_v50  ;;  %3552 = vmatprep.subr.bf16.mxu1 %v4206_v0 }
 0xc2f   :  { %2105 = vmatpush1.bf16.msra.mxu0 %v4894_v33  ;;  %3553 = vmatpush3.bf16.msra.mxu1 %v4897_v44 }
 0xc30   :  { %2106 = vmatprep.subr.bf16.mxu0 %v4903_v51  ;;  %3554 = vmatprep.subr.bf16.mxu1 %v4206_v0 }
 0xc33   :  { %2107 = vmatpush1.bf16.msra.mxu0 %v4910_v52  ;;  %3555 = vmatpush3.bf16.msra.mxu1 %v4913_v59 }
 0xc34   :  { %2108 = vmatprep.subr.bf16.mxu0 %v4919_v60  ;;  %3556 = vmatprep.subr.bf16.mxu1 %v4206_v0 }
 0xc37   :  { %2109 = vmatpush1.bf16.msra.mxu0 %v4980_v61  ;;  %3557 = vmatpush3.bf16.msra.mxu1 %v4983_v23 }
 0xc38   :  { %2214 = vmatprep.subr.bf16.mxu0 %v4928_v62  ;;  %3562 = vmatprep.subr.bf16.mxu1 %v4206_v0 }
 0xcda   :  { %v2010_v21 = vpop.f32.mrf.mxu0  ;;  %v2071_v22 = vpop.f32.mrf.mxu1 }
 0xcdb   :  { %v2019_v63 = vrot.slane %v2010_v21, 6  ;;  %v2072_v48 = vadd.f32 %v4993_v15, %v2071_v22 }
 0xcdc   :  { %v2012_v26 = vpop.f32.mrf.mxu0  ;;  %v3540_v2 = vpop.f32.mrf.mxu1 }
 0xcdd   :  { %v2023_v24 = vadd.f32 %v2019_v63, %v4540_v37  ;;  %v2020_v5 = vrot.slane %v2012_v26, 6  ;;  %v2078_v12 = vrot.slane %v2072_v48, 6 }
 0xcde   :  { %v2014_v25 = vpop.f32.mrf.mxu0  ;;  %v2074_v3 = vpop.f32.mrf.mxu1 }
 0xcdf   :  { %v3060_v4 = vmul.f32 -1.442695, %v2023_v24  ;;  %v2024_v7 = vadd.f32 %v2020_v5, %v4544_v41 }
 0xce0   :  { %v2015_v6 = vpop.f32.mrf.mxu0  ;;  %v3541_v18 = vpop.f32.mrf.mxu1 }
 0xce1   :  { %3892 = vpow2.f32 %v3060_v4  ;;  %v3061_v20 = vmul.f32 -1.442695, %v2024_v7 }
 0xce3   :  { %3894 = vpow2.f32 %v3061_v20 }
 0xcee   :  { %v3893_v8 = vpop.eup %3892 }
 0xcef   :  { %v2031_v9 = vadd.f32 1.0, %v3893_v8 }
 0xcf0   :  { %v3895_v10 = vpop.eup %3894 }
 0xcf1   :  { %3896 = vrcp.f32 %v2031_v9  ;;  %v2032_v11 = vadd.f32 1.0, %v3895_v10 }
 0xcf3   :  { %3898 = vrcp.f32 %v2032_v11 }
 0xcfe   :  { %v3897_v13 = vpop.eup %3896 }
 0xcff   :  { %v2080_v14 = vmul.f32 %v3897_v13, %v2078_v12 }
 0xd00   :  { %v3899_v16 = vpop.eup %3898 }
 0xd01   :  { %v2081_v42 = vadd.f32 %v2080_v14, %v4542_v38  ;;  %v2083_v17 = vsub.f32 1.0, %v3899_v16  ;;  %v2088_v54 = vmul.f32 %v3899_v16, %v2086_v36 }
 0xd03   :  { %3900 = vtanh.f32 %v2081_v42 }
 0xd10   :  { %v3901_v46 = vpop.eup %3900 }
 0xd11   :  { %v2084_v53 = vmul.f32 %v3901_v46, %v2083_v17 }
 0xd13   :  { %v5135_v56 = vadd.f32 %v2088_v54, %v2084_v53 }
 0xd15   :  { %v2090_v21 = vpack.c.bf16 %v5135_v56, %v5135_v56  ;;  %v5144_v22 = vsel %vm2686_vm4, %v2697_v58, %v5135_v56  ;;  %v2204_v46 = vrot.slane %v5135_v56, 7 }
 0xd17   :  { %v2092_v63 = vrot.slane %v2090_v21, 1 }
 0xd19   :  { %2127 = vmatmul.mubr.bf16.vlgmr.msra.gmra.mxu0 %v2092_v63  ;;  %3559 = vmatmul.mubr.bf16.vlgmr.msra.gmra.mxu1 %v2092_v63 }
 0xd1a   :  { %2215 = vmatpush1.bf16.msra.mxu0 %v4811_v27  ;;  %3563 = vmatpush3.bf16.msra.mxu1 %v4814_v29 }
 0xd1b   :  { %2216 = vmatprep.subr.bf16.mxu0 %v4820_v30  ;;  %3564 = vmatprep.subr.bf16.mxu1 %v4206_v0 }
 0xd1c   :  { %2246 = vmatprep.mubr.bf16.mxu0 %v4208_v49  ;;  %3578 = vmatprep.mubr.msk.bf16.mxu1 %vm4207_vm0, %v4206_v0 }
 0xd1e   :  { %2217 = vmatpush1.bf16.msra.mxu0 %v4830_v31  ;;  %3565 = vmatpush3.bf16.msra.mxu1 %v4833_v32 }
 0xd1f   :  { %2218 = vmatprep.subr.bf16.mxu0 %v4839_v34  ;;  %3566 = vmatprep.subr.bf16.mxu1 %v4206_v0 }
 0xd22   :  { %2219 = vmatpush1.bf16.msra.mxu0 %v4846_v35  ;;  %3567 = vmatpush3.bf16.msra.mxu1 %v4849_v19 }
 0xd23   :  { %2220 = vmatprep.subr.bf16.mxu0 %v4855_v28  ;;  %3568 = vmatprep.subr.bf16.mxu1 %v4206_v0 }
 0xd26   :  { %2221 = vmatpush1.bf16.msra.mxu0 %v4862_v40  ;;  %3569 = vmatpush3.bf16.msra.mxu1 %v4865_v43 }
 0xd27   :  { %2222 = vmatprep.subr.bf16.mxu0 %v4871_v45  ;;  %3570 = vmatprep.subr.bf16.mxu1 %v4206_v0 }
 0xd2a   :  { %2223 = vmatpush1.bf16.msra.mxu0 %v4878_v39  ;;  %3571 = vmatpush3.bf16.msra.mxu1 %v4881_v47 }
 0xd2b   :  { %2224 = vmatprep.subr.bf16.mxu0 %v4887_v50  ;;  %3572 = vmatprep.subr.bf16.mxu1 %v4206_v0 }
 0xd2e   :  { %2225 = vmatpush1.bf16.msra.mxu0 %v4894_v33  ;;  %3573 = vmatpush3.bf16.msra.mxu1 %v4897_v44 }
 0xd2f   :  { %2226 = vmatprep.subr.bf16.mxu0 %v4903_v51  ;;  %3574 = vmatprep.subr.bf16.mxu1 %v4206_v0 }
 0xd32   :  { %2227 = vmatpush1.bf16.msra.mxu0 %v4910_v52  ;;  %3575 = vmatpush3.bf16.msra.mxu1 %v4913_v59 }
 0xd33   :  { %2228 = vmatprep.subr.bf16.mxu0 %v4919_v60  ;;  %3576 = vmatprep.subr.bf16.mxu1 %v4206_v0 }
 0xd36   :  { %2229 = vmatpush1.bf16.msra.mxu0 %v4980_v61  ;;  %3577 = vmatpush3.bf16.msra.mxu1 %v4983_v23 }
 0xd37   :  { %2332 = vmatprep.subr.bf16.mxu0 %v4928_v62  ;;  %3582 = vmatprep.subr.bf16.mxu1 %v4206_v0 }
 0xdd9   :  { %v2128_v57 = vpop.f32.mrf.mxu0  ;;  %v2189_v55 = vpop.f32.mrf.mxu1 }
 0xdda   :  { %v2137_v26 = vrot.slane %v2128_v57, 5  ;;  %v2190_v11 = vadd.f32 %v4993_v15, %v2189_v55 }
 0xddb   :  { %v2130_v2 = vpop.f32.mrf.mxu0  ;;  %v3560_v24 = vpop.f32.mrf.mxu1 }
 0xddc   :  { %v2141_v25 = vadd.f32 %v2137_v26, %v4540_v37  ;;  %v2138_v6 = vrot.slane %v2130_v2, 5  ;;  %v2196_v13 = vrot.slane %v2190_v11, 5  ;;  %v5275_v11 = vld [vmem:[%s5507_s7 + $0x54] ss:$8 sps:$4 sm:$0xff]  }
 0xddd   :  { %v2132_v3 = vpop.f32.mrf.mxu0  ;;  %v2192_v4 = vpop.f32.mrf.mxu1 }
 0xdde   :  { %v3062_v5 = vmul.f32 -1.442695, %v2141_v25  ;;  %v2142_v20 = vadd.f32 %v2138_v6, %v4544_v41 }
 0xddf   :  { %v2133_v18 = vpop.f32.mrf.mxu0  ;;  %v3561_v7 = vpop.f32.mrf.mxu1 }
 0xde0   :  { %3902 = vpow2.f32 %v3062_v5  ;;  %v3063_v8 = vmul.f32 -1.442695, %v2142_v20  ;;  %v5247_v20 = vld [vmem:[%s5507_s7 + $0x70] ss:$8 sps:$4 sm:$0xff]  }
 0xde2   :  { %3904 = vpow2.f32 %v3063_v8  ;;  %v5250_v8 = vld [vmem:[#allocation13 + $0x38] sm:$0xff]  }
 0xded   :  { %v3903_v9 = vpop.eup %3902 }
 0xdee   :  { %v2149_v10 = vadd.f32 1.0, %v3903_v9  ;;  %v5256_v9 = vld [vmem:[%s5507_s7 + $0x64] ss:$8 sps:$4 sm:$0xff]  }
 0xdef   :  { %v3905_v48 = vpop.eup %3904 }
 0xdf0   :  { %3906 = vrcp.f32 %v2149_v10  ;;  %v2150_v12 = vadd.f32 1.0, %v3905_v48  ;;  %v5266_v10 = vld [vmem:[%s5507_s7 + $0x60] ss:$8 sps:$4 sm:$0xff]  }
 0xdf1   :  { %v5269_v48 = vld [vmem:[#allocation13 + $0x30] sm:$0xff]  }
 0xdf2   :  { %3908 = vrcp.f32 %v2150_v12  ;;  %v5282_v12 = vld [vmem:[%s5507_s7 + $0x50] ss:$8 sps:$4 sm:$0xff]  }
 0xdfd   :  { %v3907_v14 = vpop.eup %3906 }
 0xdfe   :  { %v2198_v42 = vmul.f32 %v3907_v14, %v2196_v13  ;;  %v5285_v13 = vld [vmem:[#allocation13 + $0x28] sm:$0xff]   ;;  %v5291_v14 = vld [vmem:[%s5507_s7 + $0x44] ss:$8 sps:$4 sm:$0xff]  }
 0xdff   :  { %v3909_v17 = vpop.eup %3908 }
 0xe00   :  { %v2199_v16 = vadd.f32 %v2198_v42, %v4542_v38  ;;  %v2201_v36 = vsub.f32 1.0, %v3909_v17  ;;  %v2206_v58 = vmul.f32 %v3909_v17, %v2204_v46  ;;  %v5298_v42 = vld [vmem:[%s5507_s7 + $0x40] ss:$8 sps:$4 sm:$0xff]   ;;  %v5307_v17 = vld [vmem:[%s5507_s7 + $0x34] ss:$8 sps:$4 sm:$0xff]  }
 0xe01   :  { %v5317_v46 = vld [vmem:[#allocation13 + $0x18] sm:$0xff]  }
 0xe02   :  { %3910 = vtanh.f32 %v2199_v16  ;;  %v5301_v16 = vld [vmem:[#allocation13 + $0x20] sm:$0xff]  }
 0xe0f   :  { %v3911_v53 = vpop.eup %3910 }
 0xe10   :  { %v2202_v54 = vmul.f32 %v3911_v53, %v2201_v36  ;;  %v5314_v36 = vld [vmem:[%s5507_s7 + $0x30] ss:$8 sps:$4 sm:$0xff]   ;;  %v5323_v53 = vld [vmem:[%s5507_s7 + $0x24] ss:$8 sps:$4 sm:$0xff]  }
 0xe12   :  { %v5186_v21 = vadd.f32 %v2206_v58, %v2202_v54  ;;  %v5330_v54 = vld [vmem:[%s5507_s7 + $0x20] ss:$8 sps:$4 sm:$0xff]  }
 0xe13   :  { %v5333_v58 = vld [vmem:[#allocation13 + $0x10] sm:$0xff]  }
 0xe14   :  { %v2208_v63 = vpack.c.bf16 %v5186_v21, %v5186_v21  ;;  %v5193_v57 = vsel %vm2688_vm5, %v5144_v22, %v5186_v21  ;;  %v2324_v24 = vrot.slane %v5186_v21, 7  ;;  %v5339_v21 = vld [vmem:[%s5507_s7 + $0x14] ss:$8 sps:$4 sm:$0xff]  }
 0xe16   :  { %v2210_v55 = vshrl.u32 %v2208_v63, 16  ;;  %v5346_v63 = vld [vmem:[%s5507_s7 + $0x10] ss:$8 sps:$4 sm:$0xff]  }
 0xe18   :  { %v2212_v26 = vrot.slane %v2210_v55, 1  ;;  %v5355_v55 = vld [vmem:[%s5507_s7 + $0x4] ss:$8 sps:$4 sm:$0xff]  }
 0xe1a   :  { %2247 = vmatmul.mubr.bf16.vlgmr.msra.gmra.mxu0 %v2212_v26  ;;  %3579 = vmatmul.mubr.bf16.vlgmr.msra.gmra.mxu1 %v2212_v26  ;;  %v3998_v26 = vld [vmem:[%s5507_s7 + $0x74] ss:$8 sps:$4 sm:$0xff]  }
 0xe1b   :  { %2333 = vmatpush1.bf16.msra.mxu0 %v4811_v27  ;;  %3583 = vmatpush3.bf16.msra.mxu1 %v4814_v29 }
 0xe1c   :  { %2334 = vmatprep.subr.bf16.mxu0 %v4820_v30  ;;  %3584 = vmatprep.subr.bf16.mxu1 %v4206_v0 }
 0xe1d   :  { %2364 = vmatprep.mubr.bf16.mxu0 %v4208_v49  ;;  %3598 = vmatprep.mubr.msk.bf16.mxu1 %vm4207_vm0, %v4206_v0 }
 0xe1f   :  { %2335 = vmatpush1.bf16.msra.mxu0 %v4830_v31  ;;  %3585 = vmatpush3.bf16.msra.mxu1 %v4833_v32 }
 0xe20   :  { %2336 = vmatprep.subr.bf16.mxu0 %v4839_v34  ;;  %3586 = vmatprep.subr.bf16.mxu1 %v4206_v0 }
 0xe23   :  { %2337 = vmatpush1.bf16.msra.mxu0 %v4846_v35  ;;  %3587 = vmatpush3.bf16.msra.mxu1 %v4849_v19 }
 0xe24   :  { %2338 = vmatprep.subr.bf16.mxu0 %v4855_v28  ;;  %3588 = vmatprep.subr.bf16.mxu1 %v4206_v0 }
 0xe27   :  { %2339 = vmatpush1.bf16.msra.mxu0 %v4862_v40  ;;  %3589 = vmatpush3.bf16.msra.mxu1 %v4865_v43 }
 0xe28   :  { %2340 = vmatprep.subr.bf16.mxu0 %v4871_v45  ;;  %3590 = vmatprep.subr.bf16.mxu1 %v4206_v0 }
 0xe2b   :  { %2341 = vmatpush1.bf16.msra.mxu0 %v4878_v39  ;;  %3591 = vmatpush3.bf16.msra.mxu1 %v4881_v47 }
 0xe2c   :  { %2342 = vmatprep.subr.bf16.mxu0 %v4887_v50  ;;  %3592 = vmatprep.subr.bf16.mxu1 %v4206_v0 }
 0xe2f   :  { %2343 = vmatpush1.bf16.msra.mxu0 %v4894_v33  ;;  %3593 = vmatpush3.bf16.msra.mxu1 %v4897_v44 }
 0xe30   :  { %2344 = vmatprep.subr.bf16.mxu0 %v4903_v51  ;;  %3594 = vmatprep.subr.bf16.mxu1 %v4206_v0 }
 0xe33   :  { %2345 = vmatpush1.bf16.msra.mxu0 %v4910_v52  ;;  %3595 = vmatpush3.bf16.msra.mxu1 %v4913_v59 }
 0xe34   :  { %2346 = vmatprep.subr.bf16.mxu0 %v4919_v60  ;;  %3596 = vmatprep.subr.bf16.mxu1 %v4206_v0 }
 0xe37   :  { %2347 = vmatpush1.bf16.msra.mxu0 %v4980_v61  ;;  %3597 = vmatpush3.bf16.msra.mxu1 %v4983_v23 }
 0xe38   :  { %2452 = vmatprep.subr.bf16.mxu0 %v4928_v62  ;;  %3602 = vmatprep.subr.bf16.mxu1 %v4206_v0 }
 0xeda   :  { %v2248_v27 = vpop.f32.mrf.mxu0  ;;  %v2309_v29 = vpop.f32.mrf.mxu1 }
 0xedb   :  { %v2257_v30 = vrot.slane %v2248_v27, 4  ;;  %v2310_v51 = vadd.f32 %v4993_v15, %v2309_v29 }
 0xedc   :  { %v2250_v31 = vpop.f32.mrf.mxu0  ;;  %v3580_v32 = vpop.f32.mrf.mxu1 }
 0xedd   :  { %v2261_v34 = vadd.f32 %v2257_v30, %v4540_v37  ;;  %v2258_v40 = vrot.slane %v2250_v31, 4  ;;  %v2316_v59 = vrot.slane %v2310_v51, 4 }
 0xede   :  { %v2252_v35 = vpop.f32.mrf.mxu0  ;;  %v2312_v19 = vpop.f32.mrf.mxu1 }
 0xedf   :  { %v3064_v28 = vmul.f32 -1.442695, %v2261_v34  ;;  %v2262_v39 = vadd.f32 %v2258_v40, %v4544_v41 }
 0xee0   :  { %v2253_v43 = vpop.f32.mrf.mxu0  ;;  %v3581_v45 = vpop.f32.mrf.mxu1 }
 0xee1   :  { %3912 = vpow2.f32 %v3064_v28  ;;  %v3065_v47 = vmul.f32 -1.442695, %v2262_v39 }
 0xee3   :  { %3914 = vpow2.f32 %v3065_v47 }
 0xeee   :  { %v3913_v50 = vpop.eup %3912 }
 0xeef   :  { %v2269_v33 = vadd.f32 1.0, %v3913_v50 }
 0xef0   :  { %v3915_v44 = vpop.eup %3914 }
 0xef1   :  { %3916 = vrcp.f32 %v2269_v33  ;;  %v2270_v52 = vadd.f32 1.0, %v3915_v44 }
 0xef3   :  { %3918 = vrcp.f32 %v2270_v52 }
 0xefe   :  { %v3917_v60 = vpop.eup %3916 }
 0xeff   :  { %v2318_v62 = vmul.f32 %v3917_v60, %v2316_v59 }
 0xf00   :  { %v3919_v22 = vpop.eup %3918 }
 0xf01   :  { %v2319_v56 = vadd.f32 %v2318_v62, %v4542_v38  ;;  %v2321_v2 = vsub.f32 1.0, %v3919_v22  ;;  %v2326_v4 = vmul.f32 %v3919_v22, %v2324_v24 }
 0xf03   :  { %3920 = vtanh.f32 %v2319_v56 }
 0xf10   :  { %v3921_v25 = vpop.eup %3920 }
 0xf11   :  { %v2322_v3 = vmul.f32 %v3921_v25, %v2321_v2 }
 0xf13   :  { %v5235_v5 = vadd.f32 %v2326_v4, %v2322_v3 }
 0xf15   :  { %v2328_v6 = vpack.c.bf16 %v5235_v5, %v5235_v5  ;;  %v5242_v18 = vsel %vm178_vm1, %v5193_v57, %v5235_v5  ;;  %v5349_v57 = vld [vmem:[#allocation13 + $0x8] sm:$0xff]   ;;  %v2442_v22 = vrot.slane %v5235_v5, 7  ;;  %v4000_v5 = vld [vmem:[#allocation13] sm:$0xff]  }
 0xf17   :  { %v2330_v7 = vrot.slane %v2328_v6, 2 }
 0xf19   :  { %2365 = vmatmul.mubr.bf16.vlgmr.msra.gmra.mxu0 %v2330_v7  ;;  %3599 = vmatmul.mubr.bf16.vlgmr.msra.gmra.mxu1 %v2330_v7 }
 0xf1a   :  { %2453 = vmatpush1.bf16.msra.mxu0 %v5247_v20  ;;  %3603 = vmatpush3.bf16.msra.mxu1 %v5250_v8 }
 0xf1b   :  { %2454 = vmatprep.subr.bf16.mxu0 %v5256_v9  ;;  %3604 = vmatprep.subr.bf16.mxu1 %v4206_v0 }
 0xf1c   :  { %2484 = vmatprep.mubr.bf16.mxu0 %v4208_v49  ;;  %3618 = vmatprep.mubr.msk.bf16.mxu1 %vm4207_vm0, %v4206_v0 }
 0xf1e   :  { %2455 = vmatpush1.bf16.msra.mxu0 %v5266_v10  ;;  %3605 = vmatpush3.bf16.msra.mxu1 %v5269_v48 }
 0xf1f   :  { %2456 = vmatprep.subr.bf16.mxu0 %v5275_v11  ;;  %3606 = vmatprep.subr.bf16.mxu1 %v4206_v0 }
 0xf22   :  { %2457 = vmatpush1.bf16.msra.mxu0 %v5282_v12  ;;  %3607 = vmatpush3.bf16.msra.mxu1 %v5285_v13 }
 0xf23   :  { %2458 = vmatprep.subr.bf16.mxu0 %v5291_v14  ;;  %3608 = vmatprep.subr.bf16.mxu1 %v4206_v0 }
 0xf26   :  { %2459 = vmatpush1.bf16.msra.mxu0 %v5298_v42  ;;  %3609 = vmatpush3.bf16.msra.mxu1 %v5301_v16 }
 0xf27   :  { %2460 = vmatprep.subr.bf16.mxu0 %v5307_v17  ;;  %3610 = vmatprep.subr.bf16.mxu1 %v4206_v0 }
 0xf2a   :  { %2461 = vmatpush1.bf16.msra.mxu0 %v5314_v36  ;;  %3611 = vmatpush3.bf16.msra.mxu1 %v5317_v46 }
 0xf2b   :  { %2462 = vmatprep.subr.bf16.mxu0 %v5323_v53  ;;  %3612 = vmatprep.subr.bf16.mxu1 %v4206_v0 }
 0xf2e   :  { %2463 = vmatpush1.bf16.msra.mxu0 %v5330_v54  ;;  %3613 = vmatpush3.bf16.msra.mxu1 %v5333_v58 }
 0xf2f   :  { %2464 = vmatprep.subr.bf16.mxu0 %v5339_v21  ;;  %3614 = vmatprep.subr.bf16.mxu1 %v4206_v0 }
 0xf32   :  { %2465 = vmatpush1.bf16.msra.mxu0 %v5346_v63  ;;  %3615 = vmatpush3.bf16.msra.mxu1 %v5349_v57 }
 0xf33   :  { %2466 = vmatprep.subr.bf16.mxu0 %v5355_v55  ;;  %3616 = vmatprep.subr.bf16.mxu1 %v4206_v0 }
 0xf36   :  { %2467 = vmatpush1.bf16.msra.mxu0 %v4980_v61  ;;  %3617 = vmatpush3.bf16.msra.mxu1 %v4983_v23 }
 0xf37   :  { %2570 = vmatprep.subr.bf16.mxu0 %v3998_v26  ;;  %3622 = vmatprep.subr.bf16.mxu1 %v4206_v0 }
 0xfd9   :  { %v2366_v27 = vpop.f32.mrf.mxu0  ;;  %v2427_v29 = vpop.f32.mrf.mxu1 }
 0xfda   :  { %v2375_v30 = vrot.slane %v2366_v27, 3  ;;  %v2428_v33 = vadd.f32 %v4993_v15, %v2427_v29 }
 0xfdb   :  { %v2368_v31 = vpop.f32.mrf.mxu0  ;;  %v3600_v32 = vpop.f32.mrf.mxu1 }
 0xfdc   :  { %v2379_v34 = vadd.f32 %v2375_v30, %v4540_v37  ;;  %v2376_v61 = vrot.slane %v2368_v31, 3  ;;  %v2434_v51 = vrot.slane %v2428_v33, 3  ;;  %v3782_v33 = vld [vmem:[%s5510_s10 + $0x8] sm:$0xff]  }
 0xfdd   :  { %v2370_v35 = vpop.f32.mrf.mxu0  ;;  %v2430_v19 = vpop.f32.mrf.mxu1 }
 0xfde   :  { %v3066_v28 = vmul.f32 -1.442695, %v2379_v34  ;;  %v2380_v43 = vadd.f32 %v2376_v61, %v4544_v41 }
 0xfdf   :  { %v2371_v40 = vpop.f32.mrf.mxu0  ;;  %v3601_v23 = vpop.f32.mrf.mxu1 }
 0xfe0   :  { %3922 = vpow2.f32 %v3066_v28  ;;  %v3067_v45 = vmul.f32 -1.442695, %v2380_v43  ;;  %v3776_v23 = vld [vmem:[%s5510_s10 + $0x38] sm:$0xff]   ;;  %v3777_v43 = vld [vmem:[%s5510_s10 + $0x30] sm:$0xff]  }
 0xfe2   :  { %3924 = vpow2.f32 %v3067_v45  ;;  %v3778_v45 = vld [vmem:[%s5510_s10 + $0x28] sm:$0xff]  }
 0xfed   :  { %v3923_v39 = vpop.eup %3922 }
 0xfee   :  { %v2387_v47 = vadd.f32 1.0, %v3923_v39  ;;  %v3779_v39 = vld [vmem:[%s5510_s10 + $0x20] sm:$0xff]  }
 0xfef   :  { %v3925_v50 = vpop.eup %3924 }
 0xff0   :  { %3926 = vrcp.f32 %v2387_v47  ;;  %v2388_v44 = vadd.f32 1.0, %v3925_v50  ;;  %v3780_v47 = vld [vmem:[%s5510_s10 + $0x18] sm:$0xff]   ;;  %v3781_v50 = vld [vmem:[%s5510_s10 + $0x10] sm:$0xff]  }
 0xff2   :  { %3928 = vrcp.f32 %v2388_v44  ;;  %v3783_v44 = vld [vmem:[%s5510_s10] sm:$0xff]  }
 0xffd   :  { %v3927_v52 = vpop.eup %3926 }
 0xffe   :  { %v2436_v59 = vmul.f32 %v3927_v52, %v2434_v51  ;;  %v3784_v51 = vld [vmem:[#allocation15 + $0x18] sm:$0xff]  }
 0xfff   :  { %v3929_v62 = vpop.eup %3928 }
0x1000   :  { %v2437_v60 = vadd.f32 %v2436_v59, %v4542_v38  ;;  %v2439_v56 = vsub.f32 1.0, %v3929_v62  ;;  %v2444_v25 = vmul.f32 %v3929_v62, %v2442_v22 }
0x1002   :  { %3930 = vtanh.f32 %v2437_v60 }
0x100f   :  { %v3931_v2 = vpop.eup %3930 }
0x1010   :  { %v2440_v24 = vmul.f32 %v3931_v2, %v2439_v56 }
0x1012   :  { %v5370_v3 = vadd.f32 %v2444_v25, %v2440_v24 }
0x1014   :  { %v2446_v15 = vpack.c.bf16 %v5370_v3, %v5370_v3  ;;  %v5377_v4 = vsel %vm2691_vm6, %v5242_v18, %v5370_v3  ;;  %v2562_v31 = vrot.slane %v5370_v3, 7 }
0x1016   :  { %v2448_v6 = vshrl.u32 %v2446_v15, 16 }
0x1018   :  { %v2450_v7 = vrot.slane %v2448_v6, 2 }
0x101a   :  { %2485 = vmatmul.mubr.bf16.vlgmr.msra.gmra.mxu0 %v2450_v7  ;;  %3619 = vmatmul.mubr.bf16.vlgmr.msra.gmra.mxu1 %v2450_v7 }
0x101b   :  { %2571 = vmatpush1.bf16.msra.mxu0 %v5247_v20  ;;  %3623 = vmatpush3.bf16.msra.mxu1 %v5250_v8 }
0x101c   :  { %2572 = vmatprep.subr.bf16.mxu0 %v5256_v9  ;;  %3624 = vmatprep.subr.bf16.mxu1 %v4206_v0 }
0x101d   :  { %2602 = vmatprep.mubr.bf16.mxu0 %v4208_v49  ;;  %3638 = vmatprep.mubr.msk.bf16.mxu1 %vm4207_vm0, %v4206_v0  ;;  %v3999_v49 = vld [vmem:[%s5507_s7] ss:$8 sps:$4 sm:$0xff]  }
0x101f   :  { %2573 = vmatpush1.bf16.msra.mxu0 %v5266_v10  ;;  %3625 = vmatpush3.bf16.msra.mxu1 %v5269_v48 }
0x1020   :  { %2574 = vmatprep.subr.bf16.mxu0 %v5275_v11  ;;  %3626 = vmatprep.subr.bf16.mxu1 %v4206_v0 }
0x1023   :  { %2575 = vmatpush1.bf16.msra.mxu0 %v5282_v12  ;;  %3627 = vmatpush3.bf16.msra.mxu1 %v5285_v13 }
0x1024   :  { %2576 = vmatprep.subr.bf16.mxu0 %v5291_v14  ;;  %3628 = vmatprep.subr.bf16.mxu1 %v4206_v0 }
0x1027   :  { %2577 = vmatpush1.bf16.msra.mxu0 %v5298_v42  ;;  %3629 = vmatpush3.bf16.msra.mxu1 %v5301_v16 }
0x1028   :  { %2578 = vmatprep.subr.bf16.mxu0 %v5307_v17  ;;  %3630 = vmatprep.subr.bf16.mxu1 %v4206_v0 }
0x102b   :  { %2579 = vmatpush1.bf16.msra.mxu0 %v5314_v36  ;;  %3631 = vmatpush3.bf16.msra.mxu1 %v5317_v46 }
0x102c   :  { %2580 = vmatprep.subr.bf16.mxu0 %v5323_v53  ;;  %3632 = vmatprep.subr.bf16.mxu1 %v4206_v0 }
0x102f   :  { %2581 = vmatpush1.bf16.msra.mxu0 %v5330_v54  ;;  %3633 = vmatpush3.bf16.msra.mxu1 %v5333_v58  ;;  %v5420_v58 = vld [vmem:[%s5509_s9] sm:$0x1] }
0x1030   :  { %2582 = vmatprep.subr.bf16.mxu0 %v5339_v21  ;;  %3634 = vmatprep.subr.bf16.mxu1 %v4206_v0 }
0x1033   :  { %2583 = vmatpush1.bf16.msra.mxu0 %v5346_v63  ;;  %3635 = vmatpush3.bf16.msra.mxu1 %v5349_v57 }
0x1034   :  { %2584 = vmatprep.subr.bf16.mxu0 %v5355_v55  ;;  %3636 = vmatprep.subr.bf16.mxu1 %v4206_v0 }
0x1037   :  { %2585 = vmatpush1.bf16.msra.mxu0 %v3999_v49  ;;  %3637 = vmatpush3.bf16.msra.mxu1 %v4000_v5 }
0x1038   :  { %3642 = vmatprep.subr.bf16.mxu0 %v4206_v0  ;;  %3662 = vmatprep.subr.bf16.mxu1 %v4206_v0 }
0x10da   :  { %v2486_v18 = vpop.f32.mrf.mxu0  ;;  %v2547_v20 = vpop.f32.mrf.mxu1 }
0x10db   :  { %v2495_v8 = vrot.slane %v2486_v18, 2  ;;  %v2548_v21 = vadd.f32 %v5420_v58, %v2547_v20 }
0x10dc   :  { %v2488_v9 = vpop.f32.mrf.mxu0  ;;  %v3620_v10 = vpop.f32.mrf.mxu1 }
0x10dd   :  { %v2499_v48 = vadd.f32 %v2495_v8, %v4540_v37  ;;  %v2496_v14 = vrot.slane %v2488_v9, 2  ;;  %v2554_v57 = vrot.slane %v2548_v21, 2  ;;  %v3788_v21 = vld [vmem:[#allocation16 + $0x18] sm:$0xff]  }
0x10de   :  { %v2490_v11 = vpop.f32.mrf.mxu0  ;;  %v2550_v12 = vpop.f32.mrf.mxu1 }
0x10df   :  { %v3068_v13 = vmul.f32 -1.442695, %v2499_v48  ;;  %v2500_v17 = vadd.f32 %v2496_v14, %v4544_v41 }
0x10e0   :  { %v2491_v42 = vpop.f32.mrf.mxu0  ;;  %v3621_v16 = vpop.f32.mrf.mxu1 }
0x10e1   :  { %3932 = vpow2.f32 %v3068_v13  ;;  %v3069_v36 = vmul.f32 -1.442695, %v2500_v17 }
0x10e3   :  { %3934 = vpow2.f32 %v3069_v36  ;;  %v2704_v36 = vmax.f32 %v5005_v1, 0.0  ;;  %v3072_v1 = vld [vmem:[%s5511_s11] ss:$0 sm:$0xff] }
0x10ee   :  { %v3933_v46 = vpop.eup %3932 }
0x10ef   :  { %v2507_v53 = vadd.f32 1.0, %v3933_v46 }
0x10f0   :  { %v3935_v54 = vpop.eup %3934 }
0x10f1   :  { %3936 = vrcp.f32 %v2507_v53  ;;  %v2508_v63 = vadd.f32 1.0, %v3935_v54  ;;  %v3786_v54 = vld [vmem:[#allocation15 + $0x8] sm:$0xff]  }
0x10f3   :  { %3938 = vrcp.f32 %v2508_v63 }
0x10fe   :  { %v3937_v55 = vpop.eup %3936 }
0x10ff   :  { %v2556_v26 = vmul.f32 %v3937_v55, %v2554_v57 }
0x1100   :  { %v3939_v29 = vpop.eup %3938 }
0x1101   :  { %v2557_v27 = vadd.f32 %v2556_v26, %v4542_v38  ;;  %v2559_v30 = vsub.f32 1.0, %v3939_v29  ;;  %v2564_v35 = vmul.f32 %v3939_v29, %v2562_v31 }
0x1103   :  { %3940 = vtanh.f32 %v2557_v27 }
0x1110   :  { %v3941_v32 = vpop.eup %3940 }
0x1111   :  { %v2560_v34 = vmul.f32 %v3941_v32, %v2559_v30 }
0x1113   :  { %v5425_v19 = vadd.f32 %v2564_v35, %v2560_v34  ;;  %v3789_v34 = vld [vmem:[#allocation16 + $0x10] sm:$0xff]   ;;  %v3790_v35 = vld [vmem:[#allocation16 + $0x8] sm:$0xff]  }
0x1115   :  { %v2566_v28 = vpack.c.bf16 %v5425_v19, %v5425_v19  ;;  %v5432_v61 = vsel %vm2693_vm7, %v5377_v4, %v5425_v19  ;;  %v2680_v12 = vrot.slane %v5425_v19, 7  ;;  %v3791_v19 = vld [vmem:[#allocation16] sm:$0xff]  }
0x1117   :  { %v2568_v40 = vrot.slane %v2566_v28, 3  ;;  %v3081_v28 = vld [vmem:[%s5513_s13] ss:$0 sm:$0xff]  ;;  %s4162_s13 = scalar_lea.vmem %s2966_s21, 256 }
0x1118   :  { %p4163_p12 = scmp.ne.s32.totalorder %s2966_s21, %s4162_s13  ;;  %p4168_p0 = scmp.lt.s32.totalorder %s4162_s13, %s4162_s13 }
0x1119   :  { %2603 = vmatmul.mubr.bf16.vlgmr.msra.gmra.mxu0 %v2568_v40  ;;  %3639 = vmatmul.mubr.bf16.vlgmr.msra.gmra.mxu1 %v2568_v40 }
0x111a   :  { %3658 = vmatprep.mubr.msk.bf16.mxu0 %vm4207_vm0, %v4206_v0  ;;  %3670 = vmatprep.mubr.msk.bf16.mxu1 %vm4207_vm0, %v4206_v0  ;;  %p4169_p1 = por %p4168_p0, %p4167_p13 }
0x111b   :  { %3643 = vmatpush3.bf16.msra.mxu0 %v3776_v23  ;;  %3663 = vmatpush3.bf16.msra.mxu1 %v3784_v51 }
0x111c   :  { %3644 = vmatprep.subr.bf16.mxu0 %v4206_v0  ;;  %3664 = vmatprep.subr.bf16.mxu1 %v4206_v0  ;;  %p4170_p2 = pnand %p4169_p1, %p4163_p12 }
0x111f   :  { %3645 = vmatpush3.bf16.msra.mxu0 %v3777_v43 }
0x1120   :  { %3646 = vmatprep.subr.bf16.mxu0 %v4206_v0 }
0x1123   :  { %3647 = vmatpush3.bf16.msra.mxu0 %v3778_v45 }
0x1124   :  { %3648 = vmatprep.subr.bf16.mxu0 %v4206_v0 }
0x1127   :  { %3649 = vmatpush3.bf16.msra.mxu0 %v3779_v39 }
0x1128   :  { %3650 = vmatprep.subr.bf16.mxu0 %v4206_v0 }
0x112b   :  { %3651 = vmatpush3.bf16.msra.mxu0 %v3780_v47 }
0x112c   :  { %3652 = vmatprep.subr.bf16.mxu0 %v4206_v0 }
0x112f   :  { %3653 = vmatpush3.bf16.msra.mxu0 %v3781_v50 }
0x1130   :  { %3654 = vmatprep.subr.bf16.mxu0 %v4206_v0 }
0x1133   :  { %3655 = vmatpush3.bf16.msra.mxu0 %v3782_v33 }
0x1134   :  { %3656 = vmatprep.subr.bf16.mxu0 %v4206_v0 }
0x1137   :  { %3657 = vmatpush3.bf16.msra.mxu0 %v3783_v44 }
0x1138   :  { %3674 = vmatprep.subr.bf16.mxu0 %v4206_v0 }
0x11d9   :  { %v2604_v52 = vpop.f32.mrf.mxu0  ;;  %v2665_v59 = vpop.f32.mrf.mxu1 }
0x11da   :  { %v2613_v60 = vrot.slane %v2604_v52, 1  ;;  %v2666_v20 = vadd.f32 %v5420_v58, %v2665_v59  ;;  %v3787_v58 = vld [vmem:[#allocation15] sm:$0xff]  }
0x11db   :  { %v2606_v62 = vpop.f32.mrf.mxu0  ;;  %v3640_v56 = vpop.f32.mrf.mxu1 }
0x11dc   :  { %v2617_v22 = vadd.f32 %v2613_v60, %v4540_v37  ;;  %v2614_v3 = vrot.slane %v2606_v62, 1  ;;  %v2672_v9 = vrot.slane %v2666_v20, 1 }
0x11dd   :  { %v2608_v2 = vpop.f32.mrf.mxu0  ;;  %v2668_v24 = vpop.f32.mrf.mxu1 }
0x11de   :  { %v3070_v25 = vmul.f32 -1.442695, %v2617_v22  ;;  %v2618_v6 = vadd.f32 %v2614_v3, %v4544_v41 }
0x11df   :  { %v2609_v15 = vpop.f32.mrf.mxu0  ;;  %v3641_v4 = vpop.f32.mrf.mxu1 }
0x11e0   :  { %3942 = vpow2.f32 %v3070_v25  ;;  %v3071_v7 = vmul.f32 -1.442695, %v2618_v6 }
0x11e2   :  { %3944 = vpow2.f32 %v3071_v7 }
0x11ed   :  { %v3943_v49 = vpop.eup %3942 }
0x11ee   :  { %v2625_v5 = vadd.f32 1.0, %v3943_v49 }
0x11ef   :  { %v3945_v18 = vpop.eup %3944 }
0x11f0   :  { %3946 = vrcp.f32 %v2625_v5  ;;  %v2626_v8 = vadd.f32 1.0, %v3945_v18 }
0x11f2   :  { %3948 = vrcp.f32 %v2626_v8 }
0x11fd   :  { %v3947_v37 = vpop.eup %3946 }
0x11fe   :  { %v2674_v10 = vmul.f32 %v3947_v37, %v2672_v9 }
0x11ff   :  { %v3949_v11 = vpop.eup %3948 }
0x1200   :  { %v2675_v48 = vadd.f32 %v2674_v10, %v4542_v38  ;;  %v2677_v41 = vsub.f32 1.0, %v3949_v11  ;;  %v2682_v42 = vmul.f32 %v3949_v11, %v2680_v12  ;;  %v3785_v38 = vld [vmem:[#allocation15 + $0x10] sm:$0xff]  }
0x1201   :  { %3665 = vmatpush3.bf16.msra.mxu1 %v3785_v38 }
0x1202   :  { %3950 = vtanh.f32 %v2675_v48  ;;  %3666 = vmatprep.subr.bf16.mxu1 %v4206_v0 }
0x1205   :  { %3667 = vmatpush3.bf16.msra.mxu1 %v3786_v54 }
0x1206   :  { %3668 = vmatprep.subr.bf16.mxu1 %v4206_v0 }
0x1209   :  { %3669 = vmatpush3.bf16.msra.mxu1 %v3787_v58 }
0x120f   :  { %v3951_v13 = vpop.eup %3950 }
0x1210   :  { %v2678_v14 = vmul.f32 %v3951_v13, %v2677_v41 }
0x1212   :  { %v2683_v16 = vadd.f32 %v2682_v42, %v2678_v14 }
0x1214   :  { %v2703_v17 = vsel %vm2695_vm8, %v5432_v61, %v2683_v16  ;;  %2959 = vst [vmem:[#allocation3 - $0x7] sm:$0x80] %v2683_v16 }
0x1215   :  { %v2705_v46 = vmax.f32 %v2703_v17, 0.0 }
0x1217   :  { %v2706_v53 = vpack.c.bf16 %v2705_v46, %v2704_v36 }
0x1219   :  { %3659 = vmatmul.mubr.bf16.vlgmr.msra.gmra.mxu0 %v2706_v53 }
0x121a   :  { %3682 = vmatprep.mubr.msk.bf16.mxu0 %vm4207_vm0, %v4206_v0  ;;  %3675 = vmatpush3.bf16.msra.mxu0 %v3788_v21 }
0x121b   :  { %3676 = vmatprep.subr.bf16.mxu0 %v4206_v0 }
0x121e   :  { %3677 = vmatpush3.bf16.msra.mxu0 %v3789_v34 }
0x121f   :  { %3678 = vmatprep.subr.bf16.mxu0 %v4206_v0 }
0x1222   :  { %3679 = vmatpush3.bf16.msra.mxu0 %v3790_v35 }
0x1223   :  { %3680 = vmatprep.subr.bf16.mxu0 %v4206_v0  ;;  %v3087_v0 = vld [vmem:[%s5515_s15] ss:$0 sm:$0xff] }
0x1226   :  { %3681 = vmatpush3.bf16.msra.mxu0 %v3791_v19 }
0x12d9   :  { %v2795_v63 = vpop.f32.mrf.mxu0 }
0x12da   :  { %v2796_v55 = vadd.f32 %v3072_v1, %v2795_v63 }
0x12db   :  { %v3660_v57 = vpop.f32.mrf.mxu0 }
0x12dc   :  { %v2802_v30 = vmax.f32 %v2796_v55, 0.0 }
0x12dd   :  { %v2798_v26 = vpop.f32.mrf.mxu0 }
0x12de   :  { %v2799_v27 = vadd.f32 %v3072_v1, %v2798_v26 }
0x12df   :  { %v3661_v29 = vpop.f32.mrf.mxu0 }
0x12e0   :  { %v2803_v31 = vmax.f32 %v2799_v27, 0.0 }
0x12e2   :  { %v2804_v32 = vpack.c.bf16 %v2803_v31, %v2802_v30 }
0x12e4   :  { %3671 = vmatmul.mubr.msk.bf16.vlgmr.msra.gmra.mxu1 %vm2835_vm9, %v2804_v32 }
0x13a4   :  { %v2873_v61 = vpop.f32.mrf.mxu1 }
0x13a5   :  { %v2874_v23 = vadd.f32 %v3081_v28, %v2873_v61 }
0x13a6   :  { %v3672_v40 = vpop.f32.mrf.mxu1 }
0x13a7   :  { %v2880_v47 = vmax.f32 %v2874_v23, 0.0 }
0x13a8   :  { %v2876_v43 = vpop.f32.mrf.mxu1 }
0x13a9   :  { %v2877_v45 = vadd.f32 %v3081_v28, %v2876_v43 }
0x13aa   :  { %v3673_v39 = vpop.f32.mrf.mxu1 }
0x13ab   :  { %v2881_v50 = vmax.f32 %v2877_v45, 0.0 }
0x13ad   :  { %v2882_v33 = vpack.c.bf16 %v2881_v50, %v2880_v47 }
0x13af   :  { %3683 = vmatmul.mubr.msk.bf16.vlgmr.msra.gmra.mxu0 %vm2835_vm9, %v2882_v33 }
0x146f   :  { %v2950_v44 = vpop.f32.mrf.mxu0 }
0x1470   :  { %v2951_v51 = vadd.f32 %v3087_v0, %v2950_v44 }
0x1471   :  { %v3684_v52 = vpop.f32.mrf.mxu0 }
0x1472   :  { %2957 = vst [vmem:[#allocation18] sm:$0xff] %v2951_v51 }
0x1473   :  { %v2953_v59 = vpop.f32.mrf.mxu0 }
0x1474   :  { %v2954_v60 = vadd.f32 %v3087_v0, %v2953_v59 }
0x1475   :  { %v3685_v62 = vpop.f32.mrf.mxu0 }
0x1476   :  { %2958 = vst [vmem:[#allocation18 + $0x8] sm:$0xff] %v2954_v60 }
0x1477   :  { %4173 = shalt.err (!%p4170_p2)
}
0x1478   :  { %s4210_s23 = smov 128   ;;  %s4211_s15 = smov 8  }
0x1479   :  { %2971 = dma.vmem_to_hbm [thread:$0]  %s2966_s21, 256, %s5516_s16, [#allocation6], %s4210_s23, %s4210_s23, %s4211_s15  }
0x147a   :  { %4192 = dma.done.wait [#allocation6], 256  }
0x147b   :  { %4193 = vsyncadd [#allocation6], 4294967040 }
0x147c   :  { %2975 = vsyncpa [#allocation5], 1 }
0x147d   :  { %2976 = vsyncpa [#allocation8], 1 }
0x147e   :  { %2977 = vsyncpa [#allocation11], 1 }
0x147f   :  { %2978 = vsyncpa [#allocation14], 1 }
0x1480   :  { %2979 = vsyncpa [#allocation17], 1 }
0x1481   :  { %2980 = vsyncpa [#allocation6], 1 }

</bundles_post_ra>
